<compile_context>
chip_gen: v6e
topology: v6e:2x2x1
jax: 0.10.0
libtpu: 0.0.40
codegen_flags: <defaults>
</compile_context>

<pallas_src>
import functools

import jax
import jax.numpy as jnp
from jax.experimental import pallas as pl
from jax.experimental.pallas import tpu as pltpu

NUM_CLASSES = 1000
NUM_CLASSES_PAD = 1024          # lane-dense FC / logits (1000 -> 8*128)
HIDDEN = 32                     # stem conv output channels (inception Conv2d_1a_3x3)
C_IN = 3
C_PAD = 8                       # input channels padded to a sublane group
KH = KW = 3                     # 3x3 stem conv
STRIDE = 2                      # inception stem conv stride
IMAGENET_MEAN = (0.485, 0.456, 0.406)
IMAGENET_STD = (0.229, 0.224, 0.225)

# kernel-offset -> (parity, shift) decomposition for stride 2: k = 2*shift + parity
_K_DECOMP = ((0, 0), (1, 0), (0, 1))   # k = 0, 1, 2


def _round_up(x, m):
    return (x + m - 1) // m * m


# --------------------------- fused Pallas kernel ----------------------------

def _fused_stem_kernel(planes_ref, wt_ref, bc_ref, mask_ref, wf_ref, bf_ref,
                       o_ref, *, taps, width, inv_n):
    """Single-step fused forward: conv stem -> ReLU -> global avg pool -> FC.

    planes_ref: (4*C_PAD, q_pad) bf16   stride-2 parity planes, spatially
                flattened with a (ow+1) row pitch (resident)
    wt_ref    : (9, HIDDEN, C_PAD) bf16 per-tap conv weights (Normalize folded)
    bc_ref    : (HIDDEN, 1) f32         conv bias (Normalize folded)
    mask_ref  : (1, width) f32          1.0 on valid output positions
    wf_ref    : (HIDDEN, NUM_CLASSES_PAD) f32
    bf_ref    : (1, NUM_CLASSES_PAD) f32
    o_ref     : (1, NUM_CLASSES_PAD) f32
    taps      : static tuple of (plane_index, lane_offset) per (ki, kj)
    width     : static lane width of the conv feature map (multiple of 128)
    inv_n     : static 1 / (oh * ow)
    """
    acc = None
    for t, (q, off) in enumerate(taps):
        # A shifted contiguous slice of one parity plane == this tap's
        # im2col rows (built in VMEM, never materialised in HBM).
        tap = planes_ref[q * C_PAD:(q + 1) * C_PAD, off:off + width]  # (C_PAD, width)
        part = jnp.dot(wt_ref[t], tap, preferred_element_type=jnp.float32)
        acc = part if acc is None else acc + part                     # (HIDDEN, width)

    feat = jnp.maximum(acc + bc_ref[...], 0.0)        # conv bias + ReLU (f32)
    feat = feat * mask_ref[...]                       # zero junk / padded lanes

    # global average pool: single cross-lane reduce
    pooled = jnp.sum(feat, axis=1, keepdims=True) * inv_n             # (HIDDEN, 1)

    # FC head: contract the HIDDEN (sublane) axis, lane-dense 1024-wide store.
    logits = jnp.sum(wf_ref[...] * pooled, axis=0, keepdims=True)     # (1, 1024)
    o_ref[...] = logits + bf_ref[...]


# --------------------------- host-side helpers -------------------------------

def _fold_normalize(conv_w, conv_b, mean, std):
    """conv(normalize(x), w, b) == conv(x, w', b') with w'=w/std, adjusted b."""
    w_fold = conv_w / std[None, :, None, None]
    b_fold = conv_b - jnp.sum(conv_w * (mean / std)[None, :, None, None],
                              axis=(1, 2, 3))
    return w_fold, b_fold


def init_params(key):
    k1, k2, k3, k4 = jax.random.split(key, 4)
    return {
        # PyTorch conv weight layout: (C_out, C_in, KH, KW)
        "conv_w": 0.05 * jax.random.normal(k1, (HIDDEN, C_IN, KH, KW), jnp.float32),
        "conv_b": 0.01 * jax.random.normal(k2, (HIDDEN,), jnp.float32),
        "fc_w": 0.05 * jax.random.normal(k3, (HIDDEN, NUM_CLASSES), jnp.float32),
        "fc_b": 0.01 * jax.random.normal(k4, (NUM_CLASSES,), jnp.float32),
    }


def image_classifier_forward(image, params):
    """image: (3, H, W) float32 in [0, 1] (CHW, like PyTorch input_image).
    Returns logits of shape (1, NUM_CLASSES) — same as the module's forward."""
    c, h, w = image.shape
    assert c == C_IN
    oh = (h - KH) // STRIDE + 1
    ow = (w - KW) // STRIDE + 1

    mean = jnp.asarray(IMAGENET_MEAN, jnp.float32)
    std = jnp.asarray(IMAGENET_STD, jnp.float32)
    w_fold, b_fold = _fold_normalize(params["conv_w"], params["conv_b"], mean, std)

    # Per-tap conv weights (9, HIDDEN, C_PAD), bf16 (padded channels are zero).
    w_taps = jnp.transpose(w_fold, (2, 3, 0, 1)).reshape(KH * KW, HIDDEN, C_IN)
    w_taps = jnp.pad(w_taps, ((0, 0), (0, 0), (0, C_PAD - C_IN))).astype(jnp.bfloat16)

    # Stride-2 parity planes P[a,b][c,r,s] = x[c, 2r+a, 2s+b], spatially
    # flattened with row pitch (ow+1) so each of the 9 conv taps is a
    # contiguous shifted slice in-kernel.  Total bytes == image bytes (bf16).
    row_pitch = ow + 1
    he, we = 2 * (oh + 1), 2 * (ow + 1)
    img_p = jnp.pad(image, ((0, 0), (0, he - h), (0, we - w)))
    planes = img_p.reshape(c, oh + 1, 2, ow + 1, 2)          # [c, r, a, s, b]
    planes = planes.transpose(2, 4, 0, 1, 3)                 # [a, b, c, r, s]
    planes = planes.reshape(4, c, (oh + 1) * row_pitch)

    width = _round_up(oh * row_pitch, 128)                   # feature-map lanes
    q_pad = _round_up(width + row_pitch + 1, 128)            # max tap offset = row_pitch+1
    planes = jnp.pad(planes,
                     ((0, 0), (0, C_PAD - c), (0, q_pad - planes.shape[-1])))
    planes = planes.reshape(4 * C_PAD, q_pad).astype(jnp.bfloat16)

    # static (plane index, lane offset) per tap, row-major over (ki, kj)
    taps = tuple((2 * _K_DECOMP[ki][0] + _K_DECOMP[kj][0],
                  _K_DECOMP[ki][1] * row_pitch + _K_DECOMP[kj][1])
                 for ki in range(KH) for kj in range(KW))

    # valid-position lane mask (one junk column per row + padded tail)
    pidx = jnp.arange(width, dtype=jnp.int32)
    mask = ((pidx < oh * row_pitch) & (pidx % row_pitch != ow))
    mask = mask.astype(jnp.float32).reshape(1, width)

    # FC weights padded to 1024 lanes -> unmasked final store (extra cols are 0).
    fc_w = jnp.pad(params["fc_w"], ((0, 0), (0, NUM_CLASSES_PAD - NUM_CLASSES)))
    fc_b = jnp.pad(params["fc_b"], (0, NUM_CLASSES_PAD - NUM_CLASSES)).reshape(1, -1)

    kernel = functools.partial(_fused_stem_kernel, taps=taps, width=width,
                               inv_n=1.0 / float(oh * ow))

    # Everything is VMEM-resident (planes + feature map < 4 MB even at 299x299),
    # so a single grid step avoids all per-step pipeline overhead; no
    # vmem_limit override needed on any generation (v5e/v6e/v7x).
    logits = pl.pallas_call(
        kernel,
        grid=(1,),
        in_specs=[
            pl.BlockSpec((4 * C_PAD, q_pad), lambda i: (0, 0)),          # planes
            pl.BlockSpec((KH * KW, HIDDEN, C_PAD), lambda i: (0, 0, 0)), # conv w
            pl.BlockSpec((HIDDEN, 1), lambda i: (0, 0)),                 # conv b
            pl.BlockSpec((1, width), lambda i: (0, 0)),                  # mask
            pl.BlockSpec((HIDDEN, NUM_CLASSES_PAD), lambda i: (0, 0)),   # fc w
            pl.BlockSpec((1, NUM_CLASSES_PAD), lambda i: (0, 0)),        # fc b
        ],
        out_specs=pl.BlockSpec((1, NUM_CLASSES_PAD), lambda i: (0, 0)),
        out_shape=jax.ShapeDtypeStruct((1, NUM_CLASSES_PAD), jnp.float32),
        compiler_params=pltpu.CompilerParams(
            dimension_semantics=("arbitrary",)),
    )(planes, w_taps, b_fold.reshape(HIDDEN, 1), mask, fc_w, fc_b)

    return logits[:, :NUM_CLASSES]   # (1, 1000), like self.net(image_normalized[None])


def _reference_forward(image, params):
    """Pure-JAX reference: explicit Normalize -> conv -> relu -> pool -> fc."""
    mean = jnp.asarray(IMAGENET_MEAN, jnp.float32)[:, None, None]
    std = jnp.asarray(IMAGENET_STD, jnp.float32)[:, None, None]
    x = (image - mean) / std
    feat = jax.lax.conv_general_dilated(
        x[None], params["conv_w"], window_strides=(STRIDE, STRIDE),
        padding="VALID", dimension_numbers=("NCHW", "OIHW", "NCHW"),
        precision=jax.lax.Precision.HIGHEST)
    feat = jnp.maximum(feat + params["conv_b"][None, :, None, None], 0.0)
    pooled = jnp.mean(feat, axis=(2, 3))                       # (1, HIDDEN)
    return (jnp.dot(pooled, params["fc_w"], precision=jax.lax.Precision.HIGHEST)
            + params["fc_b"][None])


if __name__ == "__main__":
    key = jax.random.PRNGKey(0)
    k_img, k_params = jax.random.split(key)

    # Small synthetic CHW image in [0, 1] (predict() divides pixels by 255).
    # 95x95 gives a 47x47 conv output, exercising the junk-column mask and
    # the shifted-tap extraction on a non-128-aligned spatial size.
    image = jax.random.uniform(k_img, (3, 95, 95), jnp.float32)
    params = init_params(k_params)

    logits = image_classifier_forward(image, params)
    logits = jax.block_until_ready(logits)

    assert logits.shape == (1, NUM_CLASSES)
    assert logits.dtype == jnp.float32
    assert bool(jnp.all(jnp.isfinite(logits)))

    ref = _reference_forward(image, params)
    # bf16 image / conv-weight quantization in the kernel vs. an f32
    # HIGHEST-precision reference -> validate with a correspondingly looser
    # tolerance (observed error is ~1e-4 on logits of magnitude ~0.1).
    assert bool(jnp.allclose(logits, ref, rtol=1e-2, atol=1e-2)), (
        "max abs err %.3e" % float(jnp.max(jnp.abs(logits - ref))))

    print("KERNEL_OK")
</pallas_src>

<mosaic_0001>
module attributes {stable_mosaic.version = 11 : i64} {
  func.func @_fused_stem_kernel(%arg0: i32, %arg1: memref<32x2432xbf16, #tpu.memory_space<vmem>>, %arg2: memref<9x32x8xbf16, #tpu.memory_space<vmem>>, %arg3: memref<32x1xf32, #tpu.memory_space<vmem>>, %arg4: memref<1x2304xf32, #tpu.memory_space<vmem>>, %arg5: memref<32x1024xf32, #tpu.memory_space<vmem>>, %arg6: memref<1x1024xf32, #tpu.memory_space<vmem>>, %arg7: memref<1x1024xf32, #tpu.memory_space<vmem>>) attributes {dimension_semantics = [#tpu.dimension_semantics<arbitrary>], iteration_bounds = array<i64: 1>, scalar_prefetch = 0 : i64, scratch_operands = 0 : i64, tpu.core_type = #tpu.core_type<tc>, window_params = [{pipeline_mode = #tpu.pipeline_mode<synchronous>, transform_indices = @transform_0, window_bounds = array<i64: 32, 2432>}, {pipeline_mode = #tpu.pipeline_mode<synchronous>, transform_indices = @transform_1, window_bounds = array<i64: 9, 32, 8>}, {pipeline_mode = #tpu.pipeline_mode<synchronous>, transform_indices = @transform_2, window_bounds = array<i64: 32, 1>}, {pipeline_mode = #tpu.pipeline_mode<synchronous>, transform_indices = @transform_3, window_bounds = array<i64: 1, 2304>}, {pipeline_mode = #tpu.pipeline_mode<synchronous>, transform_indices = @transform_4, window_bounds = array<i64: 32, 1024>}, {pipeline_mode = #tpu.pipeline_mode<synchronous>, transform_indices = @transform_5, window_bounds = array<i64: 1, 1024>}, {pipeline_mode = #tpu.pipeline_mode<synchronous>, transform_indices = @transform_6, window_bounds = array<i64: 1, 1024>}]} {
    %c0 = arith.constant 0 : index
    %c0_0 = arith.constant 0 : index
    %0 = vector.load %arg1[%c0, %c0_0] : memref<32x2432xbf16, #tpu.memory_space<vmem>>, vector<8x2304xbf16>
    %c0_1 = arith.constant 0 : index
    %c0_2 = arith.constant 0 : index
    %c0_3 = arith.constant 0 : index
    %1 = vector.load %arg2[%c0_1, %c0_2, %c0_3] : memref<9x32x8xbf16, #tpu.memory_space<vmem>>, vector<1x32x8xbf16>
    %2 = vector.shape_cast %1 : vector<1x32x8xbf16> to vector<32x8xbf16>
    %cst = arith.constant dense<0.000000e+00> : vector<32x2304xf32>
    %3 = tpu.matmul %2, %0, %cst {dimension_numbers = #tpu.dot_dimension_numbers<[1], [0], [0], [1], [0, 0, 1, 1], [], []>} : vector<32x8xbf16>, vector<8x2304xbf16>, vector<32x2304xf32> -> vector<32x2304xf32>
    %c8 = arith.constant 8 : index
    %c0_4 = arith.constant 0 : index
    %4 = vector.load %arg1[%c8, %c0_4] : memref<32x2432xbf16, #tpu.memory_space<vmem>>, vector<8x2304xbf16>
    %c1 = arith.constant 1 : index
    %c0_5 = arith.constant 0 : index
    %c0_6 = arith.constant 0 : index
    %5 = vector.load %arg2[%c1, %c0_5, %c0_6] : memref<9x32x8xbf16, #tpu.memory_space<vmem>>, vector<1x32x8xbf16>
    %6 = vector.shape_cast %5 : vector<1x32x8xbf16> to vector<32x8xbf16>
    %cst_7 = arith.constant dense<0.000000e+00> : vector<32x2304xf32>
    %7 = tpu.matmul %6, %4, %cst_7 {dimension_numbers = #tpu.dot_dimension_numbers<[1], [0], [0], [1], [0, 0, 1, 1], [], []>} : vector<32x8xbf16>, vector<8x2304xbf16>, vector<32x2304xf32> -> vector<32x2304xf32>
    %8 = arith.addf %3, %7 : vector<32x2304xf32>
    %c0_8 = arith.constant 0 : index
    %c1_9 = arith.constant 1 : index
    %9 = vector.load %arg1[%c0_8, %c1_9] : memref<32x2432xbf16, #tpu.memory_space<vmem>>, vector<8x2304xbf16>
    %c2 = arith.constant 2 : index
    %c0_10 = arith.constant 0 : index
    %c0_11 = arith.constant 0 : index
    %10 = vector.load %arg2[%c2, %c0_10, %c0_11] : memref<9x32x8xbf16, #tpu.memory_space<vmem>>, vector<1x32x8xbf16>
    %11 = vector.shape_cast %10 : vector<1x32x8xbf16> to vector<32x8xbf16>
    %cst_12 = arith.constant dense<0.000000e+00> : vector<32x2304xf32>
    %12 = tpu.matmul %11, %9, %cst_12 {dimension_numbers = #tpu.dot_dimension_numbers<[1], [0], [0], [1], [0, 0, 1, 1], [], []>} : vector<32x8xbf16>, vector<8x2304xbf16>, vector<32x2304xf32> -> vector<32x2304xf32>
    %13 = arith.addf %8, %12 : vector<32x2304xf32>
    %c16 = arith.constant 16 : index
    %c0_13 = arith.constant 0 : index
    %14 = vector.load %arg1[%c16, %c0_13] : memref<32x2432xbf16, #tpu.memory_space<vmem>>, vector<8x2304xbf16>
    %c3 = arith.constant 3 : index
    %c0_14 = arith.constant 0 : index
    %c0_15 = arith.constant 0 : index
    %15 = vector.load %arg2[%c3, %c0_14, %c0_15] : memref<9x32x8xbf16, #tpu.memory_space<vmem>>, vector<1x32x8xbf16>
    %16 = vector.shape_cast %15 : vector<1x32x8xbf16> to vector<32x8xbf16>
    %cst_16 = arith.constant dense<0.000000e+00> : vector<32x2304xf32>
    %17 = tpu.matmul %16, %14, %cst_16 {dimension_numbers = #tpu.dot_dimension_numbers<[1], [0], [0], [1], [0, 0, 1, 1], [], []>} : vector<32x8xbf16>, vector<8x2304xbf16>, vector<32x2304xf32> -> vector<32x2304xf32>
    %18 = arith.addf %13, %17 : vector<32x2304xf32>
    %c24 = arith.constant 24 : index
    %c0_17 = arith.constant 0 : index
    %19 = vector.load %arg1[%c24, %c0_17] : memref<32x2432xbf16, #tpu.memory_space<vmem>>, vector<8x2304xbf16>
    %c4 = arith.constant 4 : index
    %c0_18 = arith.constant 0 : index
    %c0_19 = arith.constant 0 : index
    %20 = vector.load %arg2[%c4, %c0_18, %c0_19] : memref<9x32x8xbf16, #tpu.memory_space<vmem>>, vector<1x32x8xbf16>
    %21 = vector.shape_cast %20 : vector<1x32x8xbf16> to vector<32x8xbf16>
    %cst_20 = arith.constant dense<0.000000e+00> : vector<32x2304xf32>
    %22 = tpu.matmul %21, %19, %cst_20 {dimension_numbers = #tpu.dot_dimension_numbers<[1], [0], [0], [1], [0, 0, 1, 1], [], []>} : vector<32x8xbf16>, vector<8x2304xbf16>, vector<32x2304xf32> -> vector<32x2304xf32>
    %23 = arith.addf %18, %22 : vector<32x2304xf32>
    %c16_21 = arith.constant 16 : index
    %c1_22 = arith.constant 1 : index
    %24 = vector.load %arg1[%c16_21, %c1_22] : memref<32x2432xbf16, #tpu.memory_space<vmem>>, vector<8x2304xbf16>
    %c5 = arith.constant 5 : index
    %c0_23 = arith.constant 0 : index
    %c0_24 = arith.constant 0 : index
    %25 = vector.load %arg2[%c5, %c0_23, %c0_24] : memref<9x32x8xbf16, #tpu.memory_space<vmem>>, vector<1x32x8xbf16>
    %26 = vector.shape_cast %25 : vector<1x32x8xbf16> to vector<32x8xbf16>
    %cst_25 = arith.constant dense<0.000000e+00> : vector<32x2304xf32>
    %27 = tpu.matmul %26, %24, %cst_25 {dimension_numbers = #tpu.dot_dimension_numbers<[1], [0], [0], [1], [0, 0, 1, 1], [], []>} : vector<32x8xbf16>, vector<8x2304xbf16>, vector<32x2304xf32> -> vector<32x2304xf32>
    %28 = arith.addf %23, %27 : vector<32x2304xf32>
    %c0_26 = arith.constant 0 : index
    %c48 = arith.constant 48 : index
    %29 = vector.load %arg1[%c0_26, %c48] : memref<32x2432xbf16, #tpu.memory_space<vmem>>, vector<8x2304xbf16>
    %c6 = arith.constant 6 : index
    %c0_27 = arith.constant 0 : index
    %c0_28 = arith.constant 0 : index
    %30 = vector.load %arg2[%c6, %c0_27, %c0_28] : memref<9x32x8xbf16, #tpu.memory_space<vmem>>, vector<1x32x8xbf16>
    %31 = vector.shape_cast %30 : vector<1x32x8xbf16> to vector<32x8xbf16>
    %cst_29 = arith.constant dense<0.000000e+00> : vector<32x2304xf32>
    %32 = tpu.matmul %31, %29, %cst_29 {dimension_numbers = #tpu.dot_dimension_numbers<[1], [0], [0], [1], [0, 0, 1, 1], [], []>} : vector<32x8xbf16>, vector<8x2304xbf16>, vector<32x2304xf32> -> vector<32x2304xf32>
    %33 = arith.addf %28, %32 : vector<32x2304xf32>
    %c8_30 = arith.constant 8 : index
    %c48_31 = arith.constant 48 : index
    %34 = vector.load %arg1[%c8_30, %c48_31] : memref<32x2432xbf16, #tpu.memory_space<vmem>>, vector<8x2304xbf16>
    %c7 = arith.constant 7 : index
    %c0_32 = arith.constant 0 : index
    %c0_33 = arith.constant 0 : index
    %35 = vector.load %arg2[%c7, %c0_32, %c0_33] : memref<9x32x8xbf16, #tpu.memory_space<vmem>>, vector<1x32x8xbf16>
    %36 = vector.shape_cast %35 : vector<1x32x8xbf16> to vector<32x8xbf16>
    %cst_34 = arith.constant dense<0.000000e+00> : vector<32x2304xf32>
    %37 = tpu.matmul %36, %34, %cst_34 {dimension_numbers = #tpu.dot_dimension_numbers<[1], [0], [0], [1], [0, 0, 1, 1], [], []>} : vector<32x8xbf16>, vector<8x2304xbf16>, vector<32x2304xf32> -> vector<32x2304xf32>
    %38 = arith.addf %33, %37 : vector<32x2304xf32>
    %c0_35 = arith.constant 0 : index
    %c49 = arith.constant 49 : index
    %39 = vector.load %arg1[%c0_35, %c49] : memref<32x2432xbf16, #tpu.memory_space<vmem>>, vector<8x2304xbf16>
    %c8_36 = arith.constant 8 : index
    %c0_37 = arith.constant 0 : index
    %c0_38 = arith.constant 0 : index
    %40 = vector.load %arg2[%c8_36, %c0_37, %c0_38] : memref<9x32x8xbf16, #tpu.memory_space<vmem>>, vector<1x32x8xbf16>
    %41 = vector.shape_cast %40 : vector<1x32x8xbf16> to vector<32x8xbf16>
    %cst_39 = arith.constant dense<0.000000e+00> : vector<32x2304xf32>
    %42 = tpu.matmul %41, %39, %cst_39 {dimension_numbers = #tpu.dot_dimension_numbers<[1], [0], [0], [1], [0, 0, 1, 1], [], []>} : vector<32x8xbf16>, vector<8x2304xbf16>, vector<32x2304xf32> -> vector<32x2304xf32>
    %43 = arith.addf %38, %42 : vector<32x2304xf32>
    %c0_40 = arith.constant 0 : index
    %c0_41 = arith.constant 0 : index
    %44 = vector.load %arg3[%c0_40, %c0_41] : memref<32x1xf32, #tpu.memory_space<vmem>>, vector<32x1xf32>
    %45 = vector.broadcast %44 : vector<32x1xf32> to vector<32x2304xf32>
    %46 = arith.addf %43, %45 : vector<32x2304xf32>
    %cst_42 = arith.constant 0.000000e+00 : f32
    %47 = vector.broadcast %cst_42 : f32 to vector<32x2304xf32>
    %48 = arith.maximumf %46, %47 : vector<32x2304xf32>
    %c0_43 = arith.constant 0 : index
    %c0_44 = arith.constant 0 : index
    %49 = vector.load %arg4[%c0_43, %c0_44] : memref<1x2304xf32, #tpu.memory_space<vmem>>, vector<1x2304xf32>
    %50 = vector.broadcast %49 : vector<1x2304xf32> to vector<32x2304xf32>
    %51 = arith.mulf %48, %50 : vector<32x2304xf32>
    %cst_45 = arith.constant dense<0.000000e+00> : vector<32xf32>
    %52 = vector.multi_reduction <add>, %51, %cst_45 [1] : vector<32x2304xf32> to vector<32xf32>
    %53 = vector.shape_cast %52 : vector<32xf32> to vector<32x1xf32>
    %cst_46 = arith.constant 4.52693523E-4 : f32
    %54 = vector.broadcast %cst_46 : f32 to vector<32x1xf32>
    %55 = arith.mulf %53, %54 : vector<32x1xf32>
    %c0_47 = arith.constant 0 : index
    %c0_48 = arith.constant 0 : index
    %56 = vector.load %arg5[%c0_47, %c0_48] : memref<32x1024xf32, #tpu.memory_space<vmem>>, vector<32x1024xf32>
    %57 = vector.broadcast %55 : vector<32x1xf32> to vector<32x1024xf32>
    %58 = arith.mulf %56, %57 : vector<32x1024xf32>
    %cst_49 = arith.constant dense<0.000000e+00> : vector<1024xf32>
    %59 = vector.multi_reduction <add>, %58, %cst_49 [0] : vector<32x1024xf32> to vector<1024xf32>
    %60 = vector.shape_cast %59 : vector<1024xf32> to vector<1x1024xf32>
    %c0_50 = arith.constant 0 : index
    %c0_51 = arith.constant 0 : index
    %61 = vector.load %arg6[%c0_50, %c0_51] : memref<1x1024xf32, #tpu.memory_space<vmem>>, vector<1x1024xf32>
    %62 = arith.addf %60, %61 : vector<1x1024xf32>
    %c0_52 = arith.constant 0 : index
    %c0_53 = arith.constant 0 : index
    %63 = vector.load %arg7[%c0_52, %c0_53] : memref<1x1024xf32, #tpu.memory_space<vmem>>, vector<1x1024xf32>
    tpu.vector_store %arg7[%c0_52, %c0_53], %62 {strides = array<i32>} : memref<1x1024xf32, #tpu.memory_space<vmem>>, vector<1x1024xf32>,
    return
  }
  func.func @transform_0(%arg0: i32) -> (i32, i32) {
    %c0_i32 = arith.constant 0 : i32
    %c0_i32_0 = arith.constant 0 : i32
    %c0_i32_1 = arith.constant 0 : i32
    return %c0_i32, %c0_i32_0 : i32, i32
  }
  func.func @transform_1(%arg0: i32) -> (i32, i32, i32) {
    %c0_i32 = arith.constant 0 : i32
    %c0_i32_0 = arith.constant 0 : i32
    %c0_i32_1 = arith.constant 0 : i32
    %c0_i32_2 = arith.constant 0 : i32
    return %c0_i32, %c0_i32_0, %c0_i32_1 : i32, i32, i32
  }
  func.func @transform_2(%arg0: i32) -> (i32, i32) {
    %c0_i32 = arith.constant 0 : i32
    %c0_i32_0 = arith.constant 0 : i32
    %c0_i32_1 = arith.constant 0 : i32
    return %c0_i32, %c0_i32_0 : i32, i32
  }
  func.func @transform_3(%arg0: i32) -> (i32, i32) {
    %c0_i32 = arith.constant 0 : i32
    %c0_i32_0 = arith.constant 0 : i32
    %c0_i32_1 = arith.constant 0 : i32
    return %c0_i32, %c0_i32_0 : i32, i32
  }
  func.func @transform_4(%arg0: i32) -> (i32, i32) {
    %c0_i32 = arith.constant 0 : i32
    %c0_i32_0 = arith.constant 0 : i32
    %c0_i32_1 = arith.constant 0 : i32
    return %c0_i32, %c0_i32_0 : i32, i32
  }
  func.func @transform_5(%arg0: i32) -> (i32, i32) {
    %c0_i32 = arith.constant 0 : i32
    %c0_i32_0 = arith.constant 0 : i32
    %c0_i32_1 = arith.constant 0 : i32
    return %c0_i32, %c0_i32_0 : i32, i32
  }
  func.func @transform_6(%arg0: i32) -> (i32, i32) {
    %c0_i32 = arith.constant 0 : i32
    %c0_i32_0 = arith.constant 0 : i32
    %c0_i32_1 = arith.constant 0 : i32
    return %c0_i32, %c0_i32_0 : i32, i32
  }
}

</mosaic_0001>

<bundles_post_ra>
// kernel: tpu_custom_call.1
= control target key start
LH: loop header
LB: loop body
LE: loop exit
PB: predicated region body
PF: predicated region fallthrough
CT: control target
= control target key end

     0   :  { %11 = vsyncpa [#allocation3], 0  ;;  %s10894_s0 = inlined_call_operand.hbm [shape: bf16[32,2432], index: 0, kind: input, shape index: {}]   ;;  %s10895_s1 = inlined_call_operand.vmem [shape: bf16[9,32,8], index: 1, kind: input, shape index: {}]   ;;  %s10896_s2 = inlined_call_operand.vmem [shape: f32[32,1], index: 2, kind: input, shape index: {}]   ;;  %s10897_s3 = inlined_call_operand.vmem [shape: f32[1,2304], index: 3, kind: input, shape index: {}]   ;;  %s10898_s4 = inlined_call_operand.hbm [shape: f32[32,1024], index: 4, kind: input, shape index: {}]   ;;  %s10899_s5 = inlined_call_operand.vmem [shape: f32[1,1024], index: 5, kind: input, shape index: {}]   ;;  %s10900_s6 = inlined_call_operand.hbm [shape: f32[1,1024], index: 6, kind: output, shape index: {}]  }
   0x1   :  { %12 = vsyncpa [#allocation6], 0 }
   0x2   :  { %13 = vsyncpa [#allocation4], 0  ;;  %s7492_s21 = smov [#allocation2]  }
   0x3   :  { %s19_s22 = sshll.u32 %s7492_s21, 4  ;;  %s20_s22 = int_to_ptr.vmem [resolvable:$true] %s19_s22 }
   0x4   :  { %s7434_s23 = scalar_lea.vmem %s20_s22, 4864  ;;  %p7439_p1 = scmp.lt.s32.totalorder %s20_s22, %s20_s22 }
   0x5   :  { %p7435_p0 = scmp.ne.s32.totalorder %s20_s22, %s7434_s23  ;;  %p7440_p2 = scmp.lt.s32.totalorder %s7434_s23, %s7434_s23 }
   0x7   :  { %p7441_p3 = por %p7440_p2, %p7439_p1 }
   0x9   :  { %p7442_p4 = pnand %p7441_p3, %p7435_p0 }
   0xb   :  { %7445 = shalt.err (!%p7442_p4)
}
   0xc   :  { %s7493_s24 = smov 1216   ;;  %s7494_s25 = smov 76  }
   0xd   :  { %25 = dma.hbm_to_vmem [thread:$0]  %s10894_s0, 4864, %s20_s22, [#allocation3], %s7493_s24, %s7493_s24, %s7494_s25  }
   0xe   :  { %s7495_s28 = smov [#allocation5]  }
   0xf   :  { %s37_s29 = sshll.u32 %s7495_s28, 4  ;;  %s38_s29 = int_to_ptr.vmem [resolvable:$true] %s37_s29 }
  0x10   :  { %s7454_s30 = scalar_lea.vmem %s38_s29, 4096  ;;  %p7459_p6 = scmp.lt.s32.totalorder %s38_s29, %s38_s29 }
  0x11   :  { %p7455_p5 = scmp.ne.s32.totalorder %s38_s29, %s7454_s30  ;;  %p7460_p7 = scmp.lt.s32.totalorder %s7454_s30, %s7454_s30 }
  0x13   :  { %p7461_p8 = por %p7460_p7, %p7459_p6 }
  0x15   :  { %p7462_p9 = pnand %p7461_p8, %p7455_p5 }
  0x17   :  { %7465 = shalt.err (!%p7462_p9)
}
  0x18   :  { %s7496_s7 = smov 1024   ;;  %s7497_s8 = smov 64  }
  0x19   :  { %43 = dma.hbm_to_vmem [thread:$0]  %s10898_s4, 4096, %s38_s29, [#allocation6], %s7496_s7, %s7496_s7, %s7497_s8  }
  0x1a   :  { %7486 = dma.done.wait [#allocation3], 4864  }
  0x1b   :  { %7487 = vsyncadd [#allocation3], 4294962432 }
  0x1c   :  { %7488 = dma.done.wait [#allocation6], 4096  }
  0x1d   :  { %7489 = vsyncadd [#allocation6], 4294963200  ;;  %v10901_v0 = vmov 0   ;;  %v66_v1 = vld [vmem:[#allocation2 + $0x4c] sm:$0xff]  ;;  %vm142_vm0 = vcmask 1043456   ;;  %v1266_v2 = vld [vmem:[#allocation2] sm:$0xff] }
  0x1e   :  { %229 = vmatprep.mubr.bf16.mxu0 %v10901_v0  ;;  %239 = vmatprep.mubr.bf16.mxu1 %v10901_v0  ;;  %v6883_v3 = vcombine.high %v66_v1, %v66_v1  ;;  %v6882_v4 = vcombine.low %v66_v1, %v66_v1  ;;  %v7549_v5 = vcombine.low %v1266_v2, %v1266_v2  ;;  %v7554_v6 = vld [vmem:[%s10895_s1 + $0x10] sm:$0xff]   ;;  %v7562_v9 = vld [vmem:[%s10895_s1 + $0x18] sm:$0xff]   ;;  %v1267_v12 = vld [vmem:[#allocation2 + $0x8] sm:$0xff]  ;;  %vm135_vm1 = vcmask 64512   ;;  %s7499_s13 = smov 127   ;;  %s7500_s22 = smov 80  }
  0x1f   :  { %7312 = vset.pattern.permute.xlu1 %v10901_v0  ;;  %7313 = vset.pattern.permute.xlu0 %v10901_v0  ;;  %v67_v7 = vld [vmem:[#allocation2 + $0x54] sm:$0xff]  ;;  %v68_v13 = vld [vmem:[#allocation2 + $0x5c] sm:$0xff]  ;;  %v7564_v14 = vcombine.low %v1267_v12, %v1267_v12  ;;  %v69_v17 = vld [vmem:[#allocation2 + $0x64] sm:$0xff]  ;;  %v7570_v20 = vcombine.high %v1266_v2, %v1266_v2  ;;  %v7576_v22 = vcombine.high %v1267_v12, %v1267_v12  ;;  %vm1377_vm2 = vcmask 1039360   ;;  %s7501_s7 = smov 79  }
  0x20   :  { %6900 = vmatprep.subr.msk.bf16.mxu0 %vm142_vm0, %v6883_v3  ;;  %7298 = vmatprep.subr.msk.bf16.mxu1 %vm142_vm0, %v6883_v3  ;;  %v144_v8 = vsel %vm142_vm0, %v6882_v4, 0  ;;  %v6885_v10 = vcombine.high %v67_v7, %v67_v7  ;;  %v6884_v11 = vcombine.low %v67_v7, %v67_v7  ;;  %v6887_v15 = vcombine.high %v68_v13, %v68_v13  ;;  %v70_v18 = vld [vmem:[#allocation2 + $0x6c] sm:$0xff]  ;;  %v1269_v29 = vld [vmem:[#allocation2 + $0x18] sm:$0xff]  ;;  %v1270_v39 = vld [vmem:[#allocation2 + $0x20] sm:$0xff] }
  0x21   :  { %212 = vmatpush1.bf16.msra.mxu0 %v144_v8  ;;  %7299 = vmatpush1.bf16.msra.mxu1 %v144_v8  ;;  %v6886_v16 = vcombine.low %v68_v13, %v68_v13  ;;  %v1268_v23 = vld [vmem:[#allocation2 + $0x10] sm:$0xff]  ;;  %v6889_v24 = vcombine.high %v69_v17, %v69_v17  ;;  %v6891_v25 = vcombine.high %v70_v18, %v70_v18  ;;  %v72_v32 = vld [vmem:[#allocation2 + $0x7c] sm:$0xff]  ;;  %v1271_v40 = vld [vmem:[#allocation2 + $0x28] sm:$0xff]  ;;  %v736_v4 = vsel %vm142_vm0, %v7549_v5, 0 }
  0x22   :  { %1339 = vrot.lane.b32.xlu0 %v7549_v5, %s7499_s13  ;;  %6903 = vmatprep.subr.msk.bf16.mxu1 %vm142_vm0, %v6885_v10  ;;  %v150_v19 = vsel %vm142_vm0, %v6884_v11, 0  ;;  %v6888_v26 = vcombine.low %v69_v17, %v69_v17  ;;  %v6890_v27 = vcombine.low %v70_v18, %v70_v18  ;;  %v7585_v28 = vcombine.low %v1268_v23, %v1268_v23  ;;  %v71_v31 = vld [vmem:[#allocation2 + $0x74] sm:$0xff]  ;;  %v73_v50 = vld [vmem:[#allocation2 + $0x84] sm:$0xff]  ;;  %v74_v51 = vld [vmem:[#allocation2 + $0x8c] sm:$0xff] }
  0x23   :  { %1343 = vrot.lane.b32.xlu1 %v7564_v14, %s7499_s13  ;;  %6906 = vmatprep.subr.msk.bf16.mxu0 %vm142_vm0, %v6887_v15  ;;  %v156_v21 = vsel %vm142_vm0, %v6886_v16, 0  ;;  %v7590_v30 = vcombine.high %v1268_v23, %v1268_v23  ;;  %v7600_v35 = vcombine.low %v1269_v29, %v1269_v29  ;;  %v7602_v36 = vcombine.high %v1269_v29, %v1269_v29  ;;  %v1272_v45 = vld [vmem:[#allocation2 + $0x30] sm:$0xff]  ;;  %v1273_v52 = vld [vmem:[#allocation2 + $0x38] sm:$0xff]  ;;  %v1274_v59 = vld [vmem:[#allocation2 + $0x40] sm:$0xff] }
  0x24   :  { %6901 = vmatmul.mubr.msk.bf16.vlgmr.msra.gmra.mxu0 %vm135_vm1, %v7554_v6  ;;  %6902 = vmatmul.mubr.msk.bf16.vlgmr.msra.gmra.mxu1 %vm135_vm1, %v7562_v9  ;;  %v162_v33 = vsel %vm142_vm0, %v6888_v26, 0  ;;  %v168_v34 = vsel %vm142_vm0, %v6890_v27, 0  ;;  %v6893_v37 = vcombine.high %v71_v31, %v71_v31  ;;  %v6895_v38 = vcombine.high %v72_v32, %v72_v32  ;;  %v7678_v1 = vld [vmem:[#allocation2 + $0x48] ss:$0 sps:$4 sm:$0xff]   ;;  %v2006_v15 = vld [vmem:[#allocation2 + $0xa0] sm:$0xff] }
  0x25   :  { %265 = vmatpush1.bf16.msra.mxu1 %v150_v19  ;;  %318 = vmatpush1.bf16.msra.mxu0 %v156_v21  ;;  %v7614_v41 = vcombine.low %v1270_v39, %v1270_v39  ;;  %v7616_v42 = vcombine.high %v1270_v39, %v1270_v39  ;;  %v7624_v43 = vcombine.low %v1271_v40, %v1271_v40  ;;  %v742_v7 = vsel %vm142_vm0, %v7564_v14, 0  ;;  %v7746_v13 = vld [vmem:[%s10895_s1 + $0x8] sm:$0xff]  }
  0x26   :  { %1341 = vrot.lane.b32.xlu0 %v7570_v20, %s7499_s13  ;;  %282 = vmatprep.mubr.bf16.mxu1 %v10901_v0  ;;  %v7626_v44 = vcombine.high %v1271_v40, %v1271_v40  ;;  %v6892_v46 = vcombine.low %v71_v31, %v71_v31  ;;  %v6894_v47 = vcombine.low %v72_v32, %v72_v32  ;;  %v748_v8 = vsel %vm142_vm0, %v7585_v28, 0  ;;  %v2007_v21 = vld [vmem:[#allocation2 + $0xa8] sm:$0xff]  ;;  %v2009_v32 = vld [vmem:[#allocation2 + $0xb8] sm:$0xff] }
  0x27   :  { %335 = vmatprep.mubr.bf16.mxu0 %v10901_v0  ;;  %1345 = vrot.lane.b32.xlu1 %v7576_v22, %s7499_s13  ;;  %v7638_v48 = vcombine.low %v1272_v45, %v1272_v45  ;;  %v7640_v49 = vcombine.high %v1272_v45, %v1272_v45  ;;  %v6897_v55 = vcombine.high %v73_v50, %v73_v50  ;;  %v754_v10 = vsel %vm142_vm0, %v7600_v35, 0 }
  0x28   :  { %6909 = vmatprep.subr.msk.bf16.mxu1 %vm142_vm0, %v6889_v24  ;;  %6912 = vmatprep.subr.msk.bf16.mxu0 %vm142_vm0, %v6891_v25  ;;  %10929 = vst [vmem:[#allocation11_spill] sm:$0xff] %v7626_v44  ;;  %v174_v53 = vsel %vm142_vm0, %v6892_v46, 0  ;;  %v180_v54 = vsel %vm142_vm0, %v6894_v47, 0  ;;  %v6899_v56 = vcombine.high %v74_v51, %v74_v51  ;;  %v7652_v57 = vcombine.low %v1273_v52, %v1273_v52  ;;  %v2008_v25 = vld [vmem:[#allocation2 + $0xb0] sm:$0xff] }
  0x29   :  { %10930 = vst [vmem:[#allocation12_spill] sm:$0xff] %v7638_v48  ;;  %10931 = vst [vmem:[#allocation13_spill] sm:$0xff] %v7640_v49  ;;  %v7654_v58 = vcombine.high %v1273_v52, %v1273_v52  ;;  %v7664_v60 = vcombine.low %v1274_v59, %v1274_v59  ;;  %v7666_v61 = vcombine.high %v1274_v59, %v1274_v59  ;;  %v760_v18 = vsel %vm142_vm0, %v7614_v41, 0 }
  0x2a   :  { %1347 = vrot.lane.b32.xlu0 %v7585_v28, %s7499_s13  ;;  %10932 = vst [vmem:[#allocation14_spill] sm:$0xff] %v7652_v57  ;;  %v6896_v62 = vcombine.low %v73_v50, %v73_v50  ;;  %v6898_v63 = vcombine.low %v74_v51, %v74_v51  ;;  %v7756_v16 = vcombine.high %v2006_v15, %v2006_v15  ;;  %v766_v19 = vsel %vm142_vm0, %v7624_v43, 0 }
  0x2b   :  { %1349 = vrot.lane.b32.xlu1 %v7590_v30, %s7499_s13  ;;  %10933 = vst [vmem:[#allocation15_spill] sm:$0xff] %v7654_v58  ;;  %10934 = vst [vmem:[#allocation16_spill] sm:$0xff] %v7664_v60  ;;  %v7758_v17 = vcombine.low %v2006_v15, %v2006_v15  ;;  %v7776_v23 = vcombine.high %v2007_v21, %v2007_v21  ;;  %v7778_v24 = vcombine.low %v2007_v21, %v2007_v21  ;;  %vm4152_vm3 = vcmask 654336  }
  0x2c   :  { %6904 = vmatmul.mubr.msk.bf16.vlgmr.msra.gmra.mxu1 %vm135_vm1, %v7554_v6  ;;  %6907 = vmatmul.mubr.msk.bf16.vlgmr.msra.gmra.mxu0 %vm135_vm1, %v7554_v6  ;;  %10935 = vst [vmem:[#allocation17_spill] sm:$0xff] %v7666_v61  ;;  %v186_v2 = vsel %vm142_vm0, %v6896_v62, 0  ;;  %v192_v3 = vsel %vm142_vm0, %v6898_v63, 0  ;;  %v7792_v26 = vcombine.high %v2008_v25, %v2008_v25  ;;  %v7794_v27 = vcombine.low %v2008_v25, %v2008_v25 }
  0x2d   :  { %371 = vmatpush1.bf16.msra.mxu1 %v162_v33  ;;  %424 = vmatpush1.bf16.msra.mxu0 %v168_v34  ;;  %v772_v29 = vsel %vm142_vm0, %v7638_v48, 0  ;;  %v778_v31 = vsel %vm142_vm0, %v7652_v57, 0  ;;  %v7810_v33 = vcombine.low %v2009_v32, %v2009_v32  ;;  %v7814_v34 = vcombine.high %v2009_v32, %v2009_v32 }
  0x2e   :  { %292 = vmatprep.mubr.bf16.mxu1 %v10901_v0  ;;  %345 = vmatprep.mubr.bf16.mxu0 %v10901_v0  ;;  %v784_v51 = vsel %vm142_vm0, %v7664_v60, 0  ;;  %vm5571_vm4 = vcmask 646144  }
  0x2f   :  { %1351 = vrot.lane.b32.xlu0 %v7600_v35, %s7499_s13  ;;  %1353 = vrot.lane.b32.xlu1 %v7602_v36, %s7499_s13 }
  0x30   :  { %6915 = vmatprep.subr.msk.bf16.mxu1 %vm142_vm0, %v6893_v37  ;;  %6918 = vmatprep.subr.msk.bf16.mxu0 %vm142_vm0, %v6895_v38  ;;  %v2010_v37 = vld [vmem:[#allocation2 + $0xc0] sm:$0xff] }
  0x31   :  { %v7822_v38 = vcombine.low %v2010_v37, %v2010_v37  ;;  %v7830_v40 = vcombine.high %v2010_v37, %v2010_v37 }
  0x33   :  { %1355 = vrot.lane.b32.xlu0 %v7614_v41, %s7499_s13  ;;  %1357 = vrot.lane.b32.xlu1 %v7616_v42, %s7499_s13 }
  0x34   :  { %6905 = vmatmul.mubr.msk.bf16.gmra.mxu1 %vm135_vm1, %v7562_v9  ;;  %6908 = vmatmul.mubr.msk.bf16.gmra.mxu0 %vm135_vm1, %v7562_v9 }
  0x35   :  { %388 = vmatprep.mubr.bf16.mxu1 %v10901_v0  ;;  %441 = vmatprep.mubr.bf16.mxu0 %v10901_v0 }
  0x37   :  { %1359 = vrot.lane.b32.xlu0 %v7624_v43, %s7499_s13  ;;  %1361 = vrot.lane.b32.xlu1 %v7626_v44, %s7499_s13 }
  0x3b   :  { %1363 = vrot.lane.b32.xlu0 %v7638_v48, %s7499_s13  ;;  %1365 = vrot.lane.b32.xlu1 %v7640_v49, %s7499_s13 }
  0x3c   :  { %6910 = vmatmul.mubr.msk.bf16.vlgmr.msra.gmra.mxu1 %vm135_vm1, %v7554_v6  ;;  %6913 = vmatmul.mubr.msk.bf16.vlgmr.msra.gmra.mxu0 %vm135_vm1, %v7554_v6 }
  0x3d   :  { %477 = vmatpush1.bf16.msra.mxu1 %v174_v53  ;;  %530 = vmatpush1.bf16.msra.mxu0 %v180_v54 }
  0x3e   :  { %398 = vmatprep.mubr.bf16.mxu1 %v10901_v0  ;;  %451 = vmatprep.mubr.bf16.mxu0 %v10901_v0 }
  0x3f   :  { %6921 = vmatprep.subr.msk.bf16.mxu1 %vm142_vm0, %v6897_v55  ;;  %6924 = vmatprep.subr.msk.bf16.mxu0 %vm142_vm0, %v6899_v56  ;;  %v2011_v55 = vld [vmem:[#allocation2 + $0xc8] sm:$0xff] }
  0x40   :  { %1367 = vrot.lane.b32.xlu0 %v7652_v57, %s7499_s13  ;;  %1369 = vrot.lane.b32.xlu1 %v7654_v58, %s7499_s13  ;;  %v7847_v59 = vcombine.low %v2011_v55, %v2011_v55  ;;  %v7851_v62 = vcombine.high %v2011_v55, %v2011_v55 }
  0x44   :  { %6911 = vmatmul.mubr.msk.bf16.gmra.mxu1 %vm135_vm1, %v7562_v9  ;;  %6914 = vmatmul.mubr.msk.bf16.gmra.mxu0 %vm135_vm1, %v7562_v9 }
  0x45   :  { %494 = vmatprep.mubr.bf16.mxu1 %v10901_v0  ;;  %547 = vmatprep.mubr.bf16.mxu0 %v10901_v0 }
  0x46   :  { %1371 = vrot.lane.b32.xlu0 %v7664_v60, %s7499_s13  ;;  %1373 = vrot.lane.b32.xlu1 %v7666_v61, %s7499_s13 }
  0x4a   :  { %1375 = vrot.lane.b32.xlu0 %v7678_v1, %s7499_s13 }
  0x4c   :  { %6916 = vmatmul.mubr.msk.bf16.vlgmr.msra.gmra.mxu1 %vm135_vm1, %v7554_v6  ;;  %6919 = vmatmul.mubr.msk.bf16.vlgmr.msra.gmra.mxu0 %vm135_vm1, %v7554_v6 }
  0x4d   :  { %583 = vmatpush1.bf16.msra.mxu1 %v186_v2  ;;  %636 = vmatpush1.bf16.msra.mxu0 %v192_v3  ;;  %v2012_v2 = vld [vmem:[#allocation2 + $0xd0] sm:$0xff] }
  0x4e   :  { %504 = vmatprep.mubr.bf16.mxu1 %v10901_v0  ;;  %557 = vmatprep.mubr.bf16.mxu0 %v10901_v0 }
  0x4f   :  { %6947 = vmatprep.subr.msk.bf16.mxu1 %vm142_vm0, %v7570_v20  ;;  %6950 = vmatprep.subr.msk.bf16.mxu0 %vm142_vm0, %v7576_v22 }
  0x54   :  { %6917 = vmatmul.mubr.msk.bf16.gmra.mxu1 %vm135_vm1, %v7562_v9  ;;  %6920 = vmatmul.mubr.msk.bf16.gmra.mxu0 %vm135_vm1, %v7562_v9 }
  0x55   :  { %600 = vmatprep.mubr.bf16.mxu1 %v10901_v0  ;;  %653 = vmatprep.mubr.bf16.mxu0 %v10901_v0 }
  0x5c   :  { %6922 = vmatmul.mubr.msk.bf16.vlgmr.msra.gmra.mxu1 %vm135_vm1, %v7554_v6  ;;  %6925 = vmatmul.mubr.msk.bf16.vlgmr.msra.gmra.mxu0 %vm135_vm1, %v7554_v6  ;;  %v7723_v6 = vld [vmem:[%s10895_s1] sm:$0xff]  }
  0x5d   :  { %804 = vmatpush1.bf16.msra.mxu1 %v736_v4  ;;  %857 = vmatpush1.bf16.msra.mxu0 %v742_v7  ;;  %v7858_v4 = vcombine.low %v2012_v2, %v2012_v2 }
  0x5e   :  { %610 = vmatprep.mubr.bf16.mxu1 %v10901_v0  ;;  %663 = vmatprep.mubr.bf16.mxu0 %v10901_v0 }
  0x5f   :  { %6953 = vmatprep.subr.msk.bf16.mxu1 %vm142_vm0, %v7590_v30  ;;  %6956 = vmatprep.subr.msk.bf16.mxu0 %vm142_vm0, %v7602_v36 }
  0x64   :  { %6923 = vmatmul.mubr.msk.bf16.gmra.mxu1 %vm135_vm1, %v7562_v9  ;;  %6926 = vmatmul.mubr.msk.bf16.gmra.mxu0 %vm135_vm1, %v7562_v9  ;;  %v2005_v9 = vld [vmem:[#allocation2 + $0x98] sm:$0xff] }
  0x65   :  { %821 = vmatprep.mubr.bf16.mxu1 %v10901_v0  ;;  %874 = vmatprep.mubr.bf16.mxu0 %v10901_v0  ;;  %v7735_v11 = vcombine.high %v2005_v9, %v2005_v9  ;;  %v7737_v12 = vcombine.low %v2005_v9, %v2005_v9 }
  0x67   :  { %3434 = vrot.lane.b32.xlu1 %v7737_v12, %s7499_s13  ;;  %3436 = vrot.lane.b32.xlu0 %v7735_v11, %s7499_s13 }
  0x6b   :  { %3438 = vrot.lane.b32.xlu1 %v7758_v17, %s7499_s13  ;;  %3440 = vrot.lane.b32.xlu0 %v7756_v16, %s7499_s13 }
  0x6c   :  { %6948 = vmatmul.mubr.msk.bf16.vlgmr.msra.gmra.mxu1 %vm135_vm1, %v7723_v6  ;;  %6951 = vmatmul.mubr.msk.bf16.vlgmr.msra.gmra.mxu0 %vm135_vm1, %v7723_v6 }
  0x6d   :  { %910 = vmatpush1.bf16.msra.mxu1 %v748_v8  ;;  %963 = vmatpush1.bf16.msra.mxu0 %v754_v10  ;;  %v7868_v8 = vcombine.high %v2012_v2, %v2012_v2  ;;  %v7384_v2 = vld [vmem:[#allocation2 + $0xe0] ss:$0 sps:$4 sm:$0xff]  }
  0x6e   :  { %831 = vmatprep.mubr.bf16.mxu1 %v10901_v0  ;;  %884 = vmatprep.mubr.bf16.mxu0 %v10901_v0 }
  0x6f   :  { %6959 = vmatprep.subr.msk.bf16.mxu1 %vm142_vm0, %v7616_v42  ;;  %6962 = vmatprep.subr.msk.bf16.mxu0 %vm142_vm0, %v7626_v44 }
  0x70   :  { %3442 = vrot.lane.b32.xlu1 %v7778_v24, %s7499_s13  ;;  %3444 = vrot.lane.b32.xlu0 %v7776_v23, %s7499_s13 }
  0x74   :  { %6949 = vmatmul.mubr.msk.bf16.gmra.mxu1 %vm135_vm1, %v7746_v13  ;;  %6952 = vmatmul.mubr.msk.bf16.gmra.mxu0 %vm135_vm1, %v7746_v13 }
  0x75   :  { %927 = vmatprep.mubr.bf16.mxu1 %v10901_v0  ;;  %980 = vmatprep.mubr.bf16.mxu0 %v10901_v0 }
  0x76   :  { %3446 = vrot.lane.b32.xlu1 %v7794_v27, %s7499_s13  ;;  %3448 = vrot.lane.b32.xlu0 %v7792_v26, %s7499_s13 }
  0x7a   :  { %3450 = vrot.lane.b32.xlu1 %v7810_v33, %s7499_s13  ;;  %3452 = vrot.lane.b32.xlu0 %v7814_v34, %s7499_s13 }
  0x7c   :  { %6954 = vmatmul.mubr.msk.bf16.vlgmr.msra.gmra.mxu1 %vm135_vm1, %v7723_v6  ;;  %6957 = vmatmul.mubr.msk.bf16.vlgmr.msra.gmra.mxu0 %vm135_vm1, %v7723_v6 }
  0x7d   :  { %1016 = vmatpush1.bf16.msra.mxu1 %v760_v18  ;;  %1069 = vmatpush1.bf16.msra.mxu0 %v766_v19  ;;  %v7879_v19 = vld [vmem:[%s10895_s1 + $0x20] sm:$0xff]  }
  0x7e   :  { %937 = vmatprep.mubr.bf16.mxu1 %v10901_v0  ;;  %990 = vmatprep.mubr.bf16.mxu0 %v10901_v0 }
  0x7f   :  { %6965 = vmatprep.subr.msk.bf16.mxu1 %vm142_vm0, %v7640_v49  ;;  %6968 = vmatprep.subr.msk.bf16.mxu0 %vm142_vm0, %v7654_v58 }
  0x80   :  { %3454 = vrot.lane.b32.xlu1 %v7822_v38, %s7499_s13  ;;  %3456 = vrot.lane.b32.xlu0 %v7830_v40, %s7499_s13 }
  0x84   :  { %6955 = vmatmul.mubr.msk.bf16.gmra.mxu1 %vm135_vm1, %v7746_v13  ;;  %6958 = vmatmul.mubr.msk.bf16.gmra.mxu0 %vm135_vm1, %v7746_v13 }
  0x85   :  { %1033 = vmatprep.mubr.bf16.mxu1 %v10901_v0  ;;  %1086 = vmatprep.mubr.bf16.mxu0 %v10901_v0 }
  0x86   :  { %3458 = vrot.lane.b32.xlu1 %v7847_v59, %s7499_s13  ;;  %3460 = vrot.lane.b32.xlu0 %v7851_v62, %s7499_s13 }
  0x8a   :  { %3462 = vrot.lane.b32.xlu1 %v7858_v4, %s7499_s13  ;;  %3464 = vrot.lane.b32.xlu0 %v7868_v8, %s7499_s13 }
  0x8c   :  { %6960 = vmatmul.mubr.msk.bf16.vlgmr.msra.gmra.mxu1 %vm135_vm1, %v7723_v6  ;;  %6963 = vmatmul.mubr.msk.bf16.vlgmr.msra.gmra.mxu0 %vm135_vm1, %v7723_v6 }
  0x8d   :  { %1122 = vmatpush1.bf16.msra.mxu1 %v772_v29  ;;  %1175 = vmatpush1.bf16.msra.mxu0 %v778_v31 }
  0x8e   :  { %1043 = vmatprep.mubr.bf16.mxu1 %v10901_v0  ;;  %1096 = vmatprep.mubr.bf16.mxu0 %v10901_v0 }
  0x8f   :  { %6971 = vmatprep.subr.msk.bf16.mxu1 %vm142_vm0, %v7666_v61 }
  0x94   :  { %6961 = vmatmul.mubr.msk.bf16.gmra.mxu1 %vm135_vm1, %v7746_v13  ;;  %6964 = vmatmul.mubr.msk.bf16.gmra.mxu0 %vm135_vm1, %v7746_v13  ;;  %v1340_v39 = vpop.permute.xlu0 %1339 }
  0x95   :  { %v1344_v45 = vpop.permute.xlu1 %1343  ;;  %1139 = vmatprep.mubr.bf16.mxu1 %v10901_v0  ;;  %1192 = vmatprep.mubr.bf16.mxu0 %v10901_v0 }
  0x98   :  { %v1342_v46 = vpop.permute.xlu0 %1341 }
  0x99   :  { %v1378_v47 = vsel %vm1377_vm2, %v1340_v39, %v1342_v46  ;;  %v1379_v50 = vsel %vm1377_vm2, %v1342_v46, %v1344_v45  ;;  %v1346_v53 = vpop.permute.xlu1 %1345  ;;  %v2013_v39 = vld [vmem:[#allocation2 + $0xd8] sm:$0xff]  ;;  %v7900_v46 = vld [vmem:[%s10895_s1 + $0x28] sm:$0xff]  }
  0x9a   :  { %6999 = vmatprep.subr.msk.bf16.mxu0 %vm142_vm0, %v1379_v50  ;;  %v1403_v52 = vsel %vm142_vm0, %v1378_v47, 0  ;;  %v1380_v15 = vsel %vm1377_vm2, %v1344_v45, %v1346_v53  ;;  %v7891_v45 = vcombine.high %v2013_v39, %v2013_v39 }
  0x9b   :  { %v1409_v31 = vsel %vm142_vm0, %v1380_v15, 0 }
  0x9c   :  { %6966 = vmatmul.mubr.msk.bf16.vlgmr.msra.gmra.mxu1 %vm135_vm1, %v7723_v6  ;;  %6969 = vmatmul.mubr.msk.bf16.vlgmr.msra.gmra.mxu0 %vm135_vm1, %v7723_v6  ;;  %v1348_v54 = vpop.permute.xlu0 %1347 }
  0x9d   :  { %1228 = vmatpush1.bf16.msra.mxu1 %v784_v51  ;;  %1471 = vmatpush1.bf16.msra.mxu0 %v1403_v52  ;;  %v1381_v56 = vsel %vm1377_vm2, %v1346_v53, %v1348_v54  ;;  %v1350_v63 = vpop.permute.xlu1 %1349 }
  0x9e   :  { %1149 = vmatprep.mubr.bf16.mxu1 %v10901_v0  ;;  %1202 = vmatprep.mubr.bf16.mxu0 %v10901_v0  ;;  %v1382_v18 = vsel %vm1377_vm2, %v1348_v54, %v1350_v63 }
  0x9f   :  { %7002 = vmatprep.subr.msk.bf16.mxu1 %vm142_vm0, %v1381_v56  ;;  %v1415_v29 = vsel %vm142_vm0, %v1382_v18, 0  ;;  %3468 = vrot.lane.b32.xlu0 %v7891_v45, %s7499_s13 }
  0xa1   :  { %v1352_v3 = vpop.permute.xlu0 %1351  ;;  %v1354_v10 = vpop.permute.xlu1 %1353 }
  0xa2   :  { %v1383_v7 = vsel %vm1377_vm2, %v1350_v63, %v1352_v3  ;;  %v1384_v51 = vsel %vm1377_vm2, %v1352_v3, %v1354_v10 }
  0xa3   :  { %7005 = vmatprep.subr.msk.bf16.mxu0 %vm142_vm0, %v1383_v7  ;;  %v1421_v55 = vsel %vm142_vm0, %v1384_v51, 0  ;;  %4114 = vrot.lane.b32.xlu0 %v7549_v5, %s7500_s22 }
  0xa4   :  { %6967 = vmatmul.mubr.msk.bf16.gmra.mxu1 %vm135_vm1, %v7746_v13  ;;  %6970 = vmatmul.mubr.msk.bf16.gmra.mxu0 %vm135_vm1, %v7746_v13 }
  0xa5   :  { %1245 = vmatprep.mubr.bf16.mxu1 %v10901_v0  ;;  %1488 = vmatprep.mubr.bf16.mxu0 %v10901_v0  ;;  %v1356_v9 = vpop.permute.xlu0 %1355  ;;  %v1358_v21 = vpop.permute.xlu1 %1357 }
  0xa6   :  { %v1385_v32 = vsel %vm1377_vm2, %v1354_v10, %v1356_v9  ;;  %v1386_v52 = vsel %vm1377_vm2, %v1356_v9, %v1358_v21 }
  0xa7   :  { %v1427_v56 = vsel %vm142_vm0, %v1386_v52, 0  ;;  %4118 = vrot.lane.b32.xlu0 %v7564_v14, %s7500_s22 }
  0xa9   :  { %v1360_v25 = vpop.permute.xlu0 %1359  ;;  %v1362_v47 = vpop.permute.xlu1 %1361 }
  0xaa   :  { %v1387_v37 = vsel %vm1377_vm2, %v1358_v21, %v1360_v25  ;;  %v1388_v10 = vsel %vm1377_vm2, %v1360_v25, %v1362_v47 }
  0xab   :  { %v1433_v21 = vsel %vm142_vm0, %v1388_v10, 0  ;;  %4122 = vrot.lane.b32.xlu0 %v7585_v28, %s7500_s22 }
  0xac   :  { %6972 = vmatmul.mubr.msk.bf16.vlgmr.msra.gmra.mxu1 %vm135_vm1, %v7723_v6  ;;  %7000 = vmatmul.mubr.msk.bf16.vlgmr.msra.gmra.mxu0 %vm135_vm1, %v7879_v19  ;;  %v7895_v6 = vcombine.low %v2013_v39, %v2013_v39 }
  0xad   :  { %1524 = vmatpush1.bf16.msra.mxu1 %v1409_v31  ;;  %1577 = vmatpush1.bf16.msra.mxu0 %v1415_v29  ;;  %v1364_v50 = vpop.permute.xlu0 %1363  ;;  %v1366_v53 = vpop.permute.xlu1 %1365 }
  0xae   :  { %1255 = vmatprep.mubr.bf16.mxu1 %v10901_v0  ;;  %1498 = vmatprep.mubr.bf16.mxu0 %v10901_v0  ;;  %v1390_v9 = vsel %vm1377_vm2, %v1364_v50, %v1366_v53 }
  0xaf   :  { %7008 = vmatprep.subr.msk.bf16.mxu1 %vm142_vm0, %v1385_v32  ;;  %7011 = vmatprep.subr.msk.bf16.mxu0 %vm142_vm0, %v1387_v37  ;;  %v1439_v29 = vsel %vm142_vm0, %v1390_v9, 0 }
  0xb0   :  { %3466 = vrot.lane.b32.xlu1 %v7895_v6, %s7499_s13  ;;  %4126 = vrot.lane.b32.xlu0 %v7600_v35, %s7500_s22 }
  0xb2   :  { %v1368_v54 = vpop.permute.xlu0 %1367  ;;  %v1370_v3 = vpop.permute.xlu1 %1369 }
  0xb3   :  { %v1391_v63 = vsel %vm1377_vm2, %v1366_v53, %v1368_v54  ;;  %v1392_v32 = vsel %vm1377_vm2, %v1368_v54, %v1370_v3 }
  0xb4   :  { %6973 = vmatmul.mubr.msk.bf16.gmra.mxu1 %vm135_vm1, %v7746_v13  ;;  %7001 = vmatmul.mubr.msk.bf16.gmra.mxu0 %vm135_vm1, %v7900_v46  ;;  %v1389_v13 = vsel %vm1377_vm2, %v1362_v47, %v1364_v50  ;;  %v1445_v39 = vsel %vm142_vm0, %v1392_v32, 0  ;;  %v2099_v32 = vsel %vm142_vm0, %v7794_v27, 0 }
  0xb5   :  { %1541 = vmatprep.mubr.bf16.mxu1 %v10901_v0  ;;  %1594 = vmatprep.mubr.bf16.mxu0 %v10901_v0 }
  0xb6   :  { %3470 = vrot.lane.b32.xlu1 %v7384_v2, %s7499_s13  ;;  %4130 = vrot.lane.b32.xlu0 %v7614_v41, %s7500_s22 }
  0xb8   :  { %v1372_v7 = vpop.permute.xlu0 %1371  ;;  %v1374_v15 = vpop.permute.xlu1 %1373 }
  0xb9   :  { %v1393_v25 = vsel %vm1377_vm2, %v1370_v3, %v1372_v7  ;;  %v1394_v37 = vsel %vm1377_vm2, %v1372_v7, %v1374_v15 }
  0xba   :  { %4116 = vrot.lane.b32.xlu1 %v7570_v20, %s7500_s22  ;;  %v1451_v47 = vsel %vm142_vm0, %v1394_v37, 0  ;;  %4134 = vrot.lane.b32.xlu0 %v7624_v43, %s7500_s22 }
  0xbc   :  { %7003 = vmatmul.mubr.msk.bf16.vlgmr.msra.gmra.mxu1 %vm135_vm1, %v7879_v19  ;;  %7006 = vmatmul.mubr.msk.bf16.vlgmr.msra.gmra.mxu0 %vm135_vm1, %v7879_v19  ;;  %v1376_v18 = vpop.permute.xlu0 %1375 }
  0xbd   :  { %1630 = vmatpush1.bf16.msra.mxu1 %v1421_v55  ;;  %1683 = vmatpush1.bf16.msra.mxu0 %v1427_v56  ;;  %v1395_v31 = vsel %vm1377_vm2, %v1374_v15, %v1376_v18  ;;  %v2081_v56 = vsel %vm142_vm0, %v7737_v12, 0 }
  0xbe   :  { %1551 = vmatprep.mubr.bf16.mxu1 %v10901_v0  ;;  %1604 = vmatprep.mubr.bf16.mxu0 %v10901_v0 }
  0xbf   :  { %7014 = vmatprep.subr.msk.bf16.mxu1 %vm142_vm0, %v1389_v13  ;;  %7017 = vmatprep.subr.msk.bf16.mxu0 %vm142_vm0, %v1391_v63  ;;  %v2087_v13 = vsel %vm142_vm0, %v7758_v17, 0 }
  0xc0   :  { %4120 = vrot.lane.b32.xlu1 %v7576_v22, %s7500_s22  ;;  %4138 = vrot.lane.b32.xlu0 %v7638_v48, %s7500_s22 }
  0xc4   :  { %7004 = vmatmul.mubr.msk.bf16.gmra.mxu1 %vm135_vm1, %v7900_v46  ;;  %7007 = vmatmul.mubr.msk.bf16.gmra.mxu0 %vm135_vm1, %v7900_v46 }
  0xc5   :  { %1647 = vmatprep.mubr.bf16.mxu1 %v10901_v0  ;;  %1700 = vmatprep.mubr.bf16.mxu0 %v10901_v0 }
  0xc6   :  { %4124 = vrot.lane.b32.xlu1 %v7590_v30, %s7500_s22  ;;  %4142 = vrot.lane.b32.xlu0 %v7652_v57, %s7500_s22  ;;  %v2117_v57 = vsel %vm142_vm0, %v7847_v59, 0 }
  0xca   :  { %4128 = vrot.lane.b32.xlu1 %v7602_v36, %s7500_s22  ;;  %4146 = vrot.lane.b32.xlu0 %v7664_v60, %s7500_s22 }
  0xcc   :  { %7009 = vmatmul.mubr.msk.bf16.vlgmr.msra.gmra.mxu1 %vm135_vm1, %v7879_v19  ;;  %7012 = vmatmul.mubr.msk.bf16.vlgmr.msra.gmra.mxu0 %vm135_vm1, %v7879_v19 }
  0xcd   :  { %1736 = vmatpush1.bf16.msra.mxu1 %v1433_v21  ;;  %1789 = vmatpush1.bf16.msra.mxu0 %v1439_v29 }
  0xce   :  { %1657 = vmatprep.mubr.bf16.mxu1 %v10901_v0  ;;  %1710 = vmatprep.mubr.bf16.mxu0 %v10901_v0 }
  0xcf   :  { %7020 = vmatprep.subr.msk.bf16.mxu1 %vm142_vm0, %v1393_v25  ;;  %7023 = vmatprep.subr.msk.bf16.mxu0 %vm142_vm0, %v1395_v31  ;;  %v2093_v31 = vsel %vm142_vm0, %v7778_v24, 0 }
  0xd0   :  { %4132 = vrot.lane.b32.xlu1 %v7616_v42, %s7500_s22  ;;  %4150 = vrot.lane.b32.xlu0 %v7678_v1, %s7500_s22 }
  0xd4   :  { %7010 = vmatmul.mubr.msk.bf16.gmra.mxu1 %vm135_vm1, %v7900_v46  ;;  %7013 = vmatmul.mubr.msk.bf16.gmra.mxu0 %vm135_vm1, %v7900_v46 }
  0xd5   :  { %1753 = vmatprep.mubr.bf16.mxu1 %v10901_v0  ;;  %1806 = vmatprep.mubr.bf16.mxu0 %v10901_v0 }
  0xd6   :  { %4136 = vrot.lane.b32.xlu1 %v7626_v44, %s7500_s22 }
  0xda   :  { %4140 = vrot.lane.b32.xlu1 %v7640_v49, %s7500_s22 }
  0xdc   :  { %7015 = vmatmul.mubr.msk.bf16.vlgmr.msra.gmra.mxu1 %vm135_vm1, %v7879_v19  ;;  %7018 = vmatmul.mubr.msk.bf16.vlgmr.msra.gmra.mxu0 %vm135_vm1, %v7879_v19 }
  0xdd   :  { %1842 = vmatpush1.bf16.msra.mxu1 %v1445_v39  ;;  %1895 = vmatpush1.bf16.msra.mxu0 %v1451_v47 }
  0xde   :  { %1763 = vmatprep.mubr.bf16.mxu1 %v10901_v0  ;;  %1816 = vmatprep.mubr.bf16.mxu0 %v10901_v0 }
  0xdf   :  { %7050 = vmatprep.subr.msk.bf16.mxu1 %vm142_vm0, %v7735_v11  ;;  %7053 = vmatprep.subr.msk.bf16.mxu0 %vm142_vm0, %v7756_v16 }
  0xe0   :  { %4144 = vrot.lane.b32.xlu1 %v7654_v58, %s7500_s22  ;;  %v2683_v58 = vld [vmem:[#allocation2 + $0xe4] sm:$0xff] }
  0xe4   :  { %v7989_v50 = vpop.f32.mrf.mxu0  ;;  %v7991_v51 = vpop.f32.mrf.mxu1  ;;  %7016 = vmatmul.mubr.msk.bf16.gmra.mxu1 %vm135_vm1, %v7900_v46  ;;  %7019 = vmatmul.mubr.msk.bf16.gmra.mxu0 %vm135_vm1, %v7900_v46 }
  0xe5   :  { %10936 = vst [vmem:[#allocation18_spill] sm:$0xff] %v7991_v51  ;;  %1859 = vmatprep.mubr.bf16.mxu1 %v10901_v0  ;;  %1912 = vmatprep.mubr.bf16.mxu0 %v10901_v0 }
  0xe6   :  { %v7999_v11 = vpop.f32.mrf.mxu0  ;;  %v8001_v16 = vpop.f32.mrf.mxu1  ;;  %4148 = vrot.lane.b32.xlu1 %v7666_v61, %s7500_s22 }
  0xe7   :  { %10937 = vst [vmem:[#allocation19_spill] sm:$0xff] %v8001_v16 }
  0xe8   :  { %v8007_v52 = vpop.f32.mrf.mxu0  ;;  %v8009_v53 = vpop.f32.mrf.mxu1 }
  0xe9   :  { %10938 = vst [vmem:[#allocation20_spill] sm:$0xff] %v8009_v53  ;;  %v2685_v53 = vld [vmem:[#allocation2 + $0xf4] sm:$0xff] }
  0xea   :  { %v8011_v54 = vpop.f32.mrf.mxu0  ;;  %v8013_v55 = vpop.f32.mrf.mxu1 }
  0xeb   :  { %10939 = vst [vmem:[#allocation21_spill] sm:$0xff] %v8013_v55  ;;  %v2684_v55 = vld [vmem:[#allocation2 + $0xec] sm:$0xff] }
  0xec   :  { %v8023_v63 = vpop.f32.mrf.mxu1  ;;  %v8025_v2 = vpop.f32.mrf.mxu0  ;;  %7021 = vmatmul.mubr.msk.bf16.vlgmr.msra.gmra.mxu1 %vm135_vm1, %v7879_v19  ;;  %7024 = vmatmul.mubr.msk.bf16.vlgmr.msra.gmra.mxu0 %vm135_vm1, %v7879_v19 }
  0xed   :  { %10940 = vst [vmem:[#allocation22_spill] sm:$0xff] %v8025_v2  ;;  %2149 = vmatpush1.bf16.msra.mxu1 %v2081_v56  ;;  %2202 = vmatpush1.bf16.msra.mxu0 %v2087_v13  ;;  %v8113_v56 = vld [vmem:[%s10895_s1 + $0x38] sm:$0xff]  }
  0xee   :  { %v8031_v12 = vpop.f32.mrf.mxu1  ;;  %v8033_v17 = vpop.f32.mrf.mxu0  ;;  %1869 = vmatprep.mubr.bf16.mxu1 %v10901_v0  ;;  %1922 = vmatprep.mubr.bf16.mxu0 %v10901_v0 }
  0xef   :  { %10941 = vst [vmem:[#allocation23_spill] sm:$0xff] %v8033_v17  ;;  %7056 = vmatprep.subr.msk.bf16.mxu1 %vm142_vm0, %v7776_v23  ;;  %7059 = vmatprep.subr.msk.bf16.mxu0 %vm142_vm0, %v7792_v26 }
  0xf0   :  { %v8041_v3 = vpop.f32.mrf.mxu1  ;;  %v8043_v7 = vpop.f32.mrf.mxu0 }
  0xf1   :  { %10942 = vst [vmem:[#allocation24_spill] sm:$0xff] %v8043_v7 }
  0xf2   :  { %v8049_v19 = vpop.f32.mrf.mxu1  ;;  %v8051_v10 = vpop.f32.mrf.mxu0 }
  0xf3   :  { %10943 = vst [vmem:[#allocation25_spill] sm:$0xff] %v8051_v10 }
  0xf4   :  { %v8053_v9 = vpop.f32.mrf.mxu1  ;;  %v8055_v23 = vpop.f32.mrf.mxu0  ;;  %7022 = vmatmul.mubr.msk.bf16.gmra.mxu1 %vm135_vm1, %v7900_v46  ;;  %7025 = vmatmul.mubr.msk.bf16.gmra.mxu0 %vm135_vm1, %v7900_v46  ;;  %v8078_v46 = vld [vmem:[%s10895_s1 + $0x30] sm:$0xff]  }
  0xf5   :  { %10944 = vst [vmem:[#allocation26_spill] sm:$0xff] %v8055_v23  ;;  %2166 = vmatprep.mubr.bf16.mxu1 %v10901_v0  ;;  %2219 = vmatprep.mubr.bf16.mxu0 %v10901_v0 }
  0xf6   :  { %v8063_v26 = vpop.f32.mrf.mxu1  ;;  %v8065_v15 = vpop.f32.mrf.mxu0 }
  0xf7   :  { %10945 = vst [vmem:[#allocation27_spill] sm:$0xff] %v8065_v15 }
  0xf8   :  { %v8071_v18 = vpop.f32.mrf.mxu1  ;;  %v8073_v21 = vpop.f32.mrf.mxu0 }
  0xf9   :  { %10946 = vst [vmem:[#allocation28_spill] sm:$0xff] %v8073_v21  ;;  %v2111_v21 = vsel %vm142_vm0, %v7822_v38, 0 }
  0xfa   :  { %v8080_v29 = vpop.f32.mrf.mxu1  ;;  %v8082_v25 = vpop.f32.mrf.mxu0 }
  0xfb   :  { %10947 = vst [vmem:[#allocation29_spill] sm:$0xff] %v8082_v25  ;;  %v2105_v25 = vsel %vm142_vm0, %v7810_v33, 0  ;;  %v4780_v33 = vld [vmem:[#allocation2 + $0x4c] sm:$0xff] }
  0xfc   :  { %v8088_v1 = vpop.f32.mrf.mxu1  ;;  %v8090_v37 = vpop.f32.mrf.mxu0  ;;  %7051 = vmatmul.mubr.msk.bf16.vlgmr.msra.gmra.mxu1 %vm135_vm1, %v8078_v46  ;;  %7054 = vmatmul.mubr.msk.bf16.vlgmr.msra.gmra.mxu0 %vm135_vm1, %v8078_v46  ;;  %v7220_v23 = vcombine.high %v4780_v33, %v4780_v33 }
  0xfd   :  { %10948 = vst [vmem:[#allocation30_spill] sm:$0xff] %v8090_v37  ;;  %2255 = vmatpush1.bf16.msra.mxu1 %v2093_v31  ;;  %2308 = vmatpush1.bf16.msra.mxu0 %v2099_v32 }
  0xfe   :  { %v8096_v39 = vpop.f32.mrf.mxu1  ;;  %v8098_v47 = vpop.f32.mrf.mxu0  ;;  %2176 = vmatprep.mubr.bf16.mxu1 %v10901_v0  ;;  %2229 = vmatprep.mubr.bf16.mxu0 %v10901_v0 }
  0xff   :  { %10949 = vst [vmem:[#allocation31_spill] sm:$0xff] %v8098_v47  ;;  %7062 = vmatprep.subr.msk.bf16.mxu1 %vm142_vm0, %v7814_v34  ;;  %7065 = vmatprep.subr.msk.bf16.mxu0 %vm142_vm0, %v7830_v40  ;;  %v10953_v34 = vmov 0  }
 0x100   :  { %v8106_v24 = vpop.f32.mrf.mxu1  ;;  %v8108_v27 = vpop.f32.mrf.mxu0  ;;  %4855 = vrot.lane.b32.xlu0 %v7220_v23, %s7500_s22 }
 0x101   :  { %10950 = vst [vmem:[#allocation32_spill] sm:$0xff] %v8108_v27 }
 0x102   :  { %v8115_v13 = vpop.f32.mrf.mxu1  ;;  %v8117_v31 = vpop.f32.mrf.mxu0 }
 0x103   :  { %10951 = vst [vmem:[#allocation33_spill] sm:$0xff] %v8117_v31 }
 0x104   :  { %v8119_v32 = vpop.f32.mrf.mxu1  ;;  %v8121_v0 = vpop.f32.mrf.mxu0  ;;  %7052 = vmatmul.mubr.msk.bf16.gmra.mxu1 %vm135_vm1, %v8113_v56  ;;  %7055 = vmatmul.mubr.msk.bf16.gmra.mxu0 %vm135_vm1, %v8113_v56 }
 0x105   :  { %10952 = vst [vmem:[#allocation34_spill] sm:$0xff] %v8121_v0  ;;  %2272 = vmatprep.mubr.bf16.mxu1 %v10953_v34  ;;  %2325 = vmatprep.mubr.bf16.mxu0 %v10953_v34 }
 0x106   :  { %v8129_v40 = vpop.f32.mrf.mxu1  ;;  %v8131_v27 = vpop.f32.mrf.mxu0 }
 0x107   :  { %10954 = vst [vmem:[#allocation35_spill] sm:$0xff] %v8131_v27 }
 0x108   :  { %v8133_v47 = vpop.f32.mrf.mxu1  ;;  %v8135_v31 = vpop.f32.mrf.mxu0 }
 0x109   :  { %10955 = vst [vmem:[#allocation36_spill] sm:$0xff] %v8135_v31 }
 0x10a   :  { %v8137_v37 = vpop.f32.mrf.mxu1  ;;  %v8139_v0 = vpop.f32.mrf.mxu0 }
 0x10b   :  { %10956 = vst [vmem:[#allocation37_spill] sm:$0xff] %v8139_v0 }
 0x10c   :  { %v8145_v61 = vpop.f32.mrf.mxu1  ;;  %v8147_v15 = vpop.f32.mrf.mxu0  ;;  %7057 = vmatmul.mubr.msk.bf16.vlgmr.msra.gmra.mxu1 %vm135_vm1, %v8078_v46  ;;  %7060 = vmatmul.mubr.msk.bf16.vlgmr.msra.gmra.mxu0 %vm135_vm1, %v8078_v46 }
 0x10d   :  { %10957 = vst [vmem:[#allocation38_spill] sm:$0xff] %v8147_v15  ;;  %2361 = vmatpush1.bf16.msra.mxu1 %v2105_v25  ;;  %2414 = vmatpush1.bf16.msra.mxu0 %v2111_v21  ;;  %v7219_v21 = vcombine.low %v4780_v33, %v4780_v33  ;;  %v4782_v33 = vld [vmem:[#allocation2 + $0x5c] sm:$0xff] }
 0x10e   :  { %v8153_v31 = vpop.f32.mrf.mxu1  ;;  %v8155_v0 = vpop.f32.mrf.mxu0  ;;  %2282 = vmatprep.mubr.bf16.mxu1 %v10953_v34  ;;  %2335 = vmatprep.mubr.bf16.mxu0 %v10953_v34  ;;  %v7223_v7 = vcombine.low %v4782_v33, %v4782_v33 }
 0x10f   :  { %10958 = vst [vmem:[#allocation39_spill] sm:$0xff] %v8155_v0  ;;  %7068 = vmatprep.subr.msk.bf16.mxu1 %vm142_vm0, %v7851_v62  ;;  %7071 = vmatprep.subr.msk.bf16.mxu0 %vm142_vm0, %v7868_v8  ;;  %v4781_v0 = vld [vmem:[#allocation2 + $0x54] sm:$0xff] }
 0x110   :  { %v8163_v38 = vpop.f32.mrf.mxu1  ;;  %v8165_v15 = vpop.f32.mrf.mxu0  ;;  %4853 = vrot.lane.b32.xlu1 %v7219_v21, %s7500_s22  ;;  %v7221_v8 = vcombine.low %v4781_v0, %v4781_v0 }
 0x111   :  { %10959 = vst [vmem:[#allocation40_spill] sm:$0xff] %v8165_v15 }
 0x112   :  { %v8167_v25 = vpop.f32.mrf.mxu1  ;;  %v8169_v27 = vpop.f32.mrf.mxu0 }
 0x113   :  { %10960 = vst [vmem:[#allocation41_spill] sm:$0xff] %v8169_v27 }
 0x114   :  { %v8172_v10 = vpop.f32.mrf.mxu1  ;;  %v8174_v62 = vpop.f32.mrf.mxu0  ;;  %7058 = vmatmul.mubr.msk.bf16.gmra.mxu1 %vm135_vm1, %v8113_v56  ;;  %7061 = vmatmul.mubr.msk.bf16.gmra.mxu0 %vm135_vm1, %v8113_v56 }
 0x115   :  { %10961 = vst [vmem:[#allocation42_spill] sm:$0xff] %v8174_v62  ;;  %2378 = vmatprep.mubr.bf16.mxu1 %v10953_v34  ;;  %2431 = vmatprep.mubr.bf16.mxu0 %v10953_v34  ;;  %v7222_v62 = vcombine.high %v4781_v0, %v4781_v0  ;;  %v7084_v0 = vcombine.high %v2683_v58, %v2683_v58 }
 0x116   :  { %v8182_v27 = vpop.f32.mrf.mxu1  ;;  %v8184_v21 = vpop.f32.mrf.mxu0  ;;  %4857 = vrot.lane.b32.xlu1 %v7221_v8, %s7500_s22  ;;  %v2123_v8 = vsel %vm142_vm0, %v7858_v4, 0 }
 0x117   :  { %10962 = vst [vmem:[#allocation43_spill] sm:$0xff] %v8184_v21  ;;  %4859 = vrot.lane.b32.xlu0 %v7222_v62, %s7500_s22 }
 0x118   :  { %v8188_v15 = vpop.f32.mrf.mxu1  ;;  %v8190_v60 = vpop.f32.mrf.mxu0 }
 0x119   :  { %10963 = vst [vmem:[#allocation44_spill] sm:$0xff] %v8190_v60 }
 0x11a   :  { %v8192_v17 = vpop.f32.mrf.mxu1  ;;  %v8194_v2 = vpop.f32.mrf.mxu0  ;;  %4861 = vrot.lane.b32.xlu1 %v7223_v7, %s7500_s22 }
 0x11b   :  { %10964 = vst [vmem:[#allocation45_spill] sm:$0xff] %v8194_v2  ;;  %v7224_v2 = vcombine.high %v4782_v33, %v4782_v33 }
 0x11c   :  { %v8202_v23 = vpop.f32.mrf.mxu1  ;;  %v8204_v60 = vpop.f32.mrf.mxu0  ;;  %7063 = vmatmul.mubr.msk.bf16.vlgmr.msra.gmra.mxu1 %vm135_vm1, %v8078_v46  ;;  %7066 = vmatmul.mubr.msk.bf16.vlgmr.msra.gmra.mxu0 %vm135_vm1, %v8078_v46 }
 0x11d   :  { %10965 = vst [vmem:[#allocation46_spill] sm:$0xff] %v8204_v60  ;;  %2467 = vmatpush1.bf16.msra.mxu1 %v2117_v57  ;;  %2520 = vmatpush1.bf16.msra.mxu0 %v2123_v8  ;;  %v4783_v8 = vld [vmem:[#allocation2 + $0x64] sm:$0xff] }
 0x11e   :  { %v8210_v59 = vpop.f32.mrf.mxu1  ;;  %v8212_v4 = vpop.f32.mrf.mxu0  ;;  %2388 = vmatprep.mubr.bf16.mxu1 %v10953_v34  ;;  %2441 = vmatprep.mubr.bf16.mxu0 %v10953_v34 }
 0x11f   :  { %10966 = vst [vmem:[#allocation47_spill] sm:$0xff] %v8212_v4  ;;  %7074 = vmatprep.subr.msk.bf16.mxu1 %vm142_vm0, %v7891_v45  ;;  %7101 = vmatprep.subr.msk.bf16.mxu0 %vm142_vm0, %v7084_v0  ;;  %v7225_v45 = vcombine.low %v4783_v8, %v4783_v8 }
 0x120   :  { %v8219_v7 = vpop.f32.mrf.mxu1  ;;  %v8221_v62 = vpop.f32.mrf.mxu0  ;;  %4863 = vrot.lane.b32.xlu0 %v7224_v2, %s7500_s22 }
 0x121   :  { %10967 = vst [vmem:[#allocation48_spill] sm:$0xff] %v8221_v62  ;;  %4865 = vrot.lane.b32.xlu1 %v7225_v45, %s7500_s22  ;;  %v4784_v62 = vld [vmem:[#allocation2 + $0x6c] sm:$0xff] }
 0x122   :  { %v8224_v57 = vpop.f32.mrf.mxu1  ;;  %v8226_v33 = vpop.f32.mrf.mxu0  ;;  %v7227_v48 = vcombine.low %v4784_v62, %v4784_v62 }
 0x123   :  { %10968 = vst [vmem:[#allocation49_spill] sm:$0xff] %v8226_v33  ;;  %v7083_v33 = vcombine.low %v2683_v58, %v2683_v58  ;;  %v2129_v58 = vsel %vm142_vm0, %v7895_v6, 0 }
 0x124   :  { %v8228_v4 = vpop.f32.mrf.mxu1  ;;  %v8230_v60 = vpop.f32.mrf.mxu0  ;;  %7064 = vmatmul.mubr.msk.bf16.gmra.mxu1 %vm135_vm1, %v8113_v56  ;;  %7067 = vmatmul.mubr.msk.bf16.gmra.mxu0 %vm135_vm1, %v8113_v56 }
 0x125   :  { %10969 = vst [vmem:[#allocation50_spill] sm:$0xff] %v8230_v60  ;;  %2484 = vmatprep.mubr.bf16.mxu1 %v10953_v34  ;;  %2537 = vmatprep.mubr.bf16.mxu0 %v10953_v34  ;;  %v7226_v60 = vcombine.high %v4783_v8, %v4783_v8  ;;  %v2759_v45 = vsel %vm142_vm0, %v7083_v33, 0  ;;  %v7086_v8 = vcombine.high %v2684_v55, %v2684_v55 }
 0x126   :  { %v8238_v2 = vpop.f32.mrf.mxu1  ;;  %v8240_v0 = vpop.f32.mrf.mxu0  ;;  %4869 = vrot.lane.b32.xlu1 %v7227_v48, %s7500_s22 }
 0x127   :  { %10970 = vst [vmem:[#allocation51_spill] sm:$0xff] %v8240_v0  ;;  %4867 = vrot.lane.b32.xlu0 %v7226_v60, %s7500_s22  ;;  %v7088_v0 = vcombine.high %v2685_v53, %v2685_v53  ;;  %v7228_v60 = vcombine.high %v4784_v62, %v4784_v62 }
 0x128   :  { %v8243_v21 = vpop.f32.mrf.mxu1  ;;  %v8245_v49 = vpop.f32.mrf.mxu0 }
 0x129   :  { %10971 = vst [vmem:[#allocation52_spill] sm:$0xff] %v8245_v49 }
 0x12a   :  { %v8248_v44 = vpop.f32.mrf.mxu1  ;;  %v8250_v16 = vpop.f32.mrf.mxu0 }
 0x12b   :  { %10972 = vst [vmem:[#allocation53_spill] sm:$0xff] %v8250_v16  ;;  %4871 = vrot.lane.b32.xlu0 %v7228_v60, %s7500_s22 }
 0x12c   :  { %v8256_v51 = vpop.f32.mrf.mxu1  ;;  %v876_v49 = vpop.f32.mrf.mxu0  ;;  %7069 = vmatmul.mubr.msk.bf16.vlgmr.msra.gmra.mxu1 %vm135_vm1, %v8078_v46  ;;  %7072 = vmatmul.mubr.msk.bf16.vlgmr.msra.gmra.mxu0 %vm135_vm1, %v8078_v46 }
 0x12d   :  { %v8263_v16 = vadd.f32 %v876_v49, %v8023_v63  ;;  %2573 = vmatpush1.bf16.msra.mxu1 %v2129_v58  ;;  %2827 = vmatpush1.bf16.msra.mxu0 %v2759_v45 }
 0x12e   :  { %v8265_v6 = vpop.f32.mrf.mxu1  ;;  %v878_v48 = vpop.f32.mrf.mxu0  ;;  %2494 = vmatprep.mubr.bf16.mxu1 %v10953_v34  ;;  %2547 = vmatprep.mubr.bf16.mxu0 %v10953_v34 }
 0x12f   :  { %10973 = vst [vmem:[#allocation54_spill] sm:$0xff] %v8263_v16  ;;  %v8270_v33 = vadd.f32 %v878_v48, %v8031_v12  ;;  %7104 = vmatprep.subr.msk.bf16.mxu1 %vm142_vm0, %v7086_v8  ;;  %7107 = vmatprep.subr.msk.bf16.mxu0 %vm142_vm0, %v7088_v0  ;;  %v4785_v12 = vld [vmem:[#allocation2 + $0x74] sm:$0xff] }
 0x130   :  { %v8274_v62 = vpop.f32.mrf.mxu1  ;;  %v880_v49 = vpop.f32.mrf.mxu0  ;;  %v7229_v0 = vcombine.low %v4785_v12, %v4785_v12 }
 0x131   :  { %10974 = vst [vmem:[#allocation55_spill] sm:$0xff] %v8270_v33  ;;  %v8278_v63 = vadd.f32 %v880_v49, %v8041_v3  ;;  %v7085_v49 = vcombine.low %v2684_v55, %v2684_v55  ;;  %v7230_v33 = vcombine.high %v4785_v12, %v4785_v12 }
 0x132   :  { %v8280_v58 = vpop.f32.mrf.mxu1  ;;  %v882_v45 = vpop.f32.mrf.mxu0  ;;  %4873 = vrot.lane.b32.xlu1 %v7229_v0, %s7500_s22 }
 0x133   :  { %10975 = vst [vmem:[#allocation56_spill] sm:$0xff] %v8278_v63  ;;  %v8283_v16 = vadd.f32 %v882_v45, %v8049_v19  ;;  %v7087_v45 = vcombine.low %v2685_v53, %v2685_v53  ;;  %v4786_v63 = vld [vmem:[#allocation2 + $0x7c] sm:$0xff]  ;;  %4875 = vrot.lane.b32.xlu0 %v7230_v33, %s7500_s22  ;;  %v2765_v0 = vsel %vm142_vm0, %v7085_v49, 0 }
 0x134   :  { %v8285_v48 = vpop.f32.mrf.mxu1  ;;  %v886_v8 = vpop.f32.mrf.mxu0  ;;  %7070 = vmatmul.mubr.msk.bf16.gmra.mxu1 %vm135_vm1, %v8113_v56  ;;  %7073 = vmatmul.mubr.msk.bf16.gmra.mxu0 %vm135_vm1, %v8113_v56  ;;  %v7231_v53 = vcombine.low %v4786_v63, %v4786_v63  ;;  %v7232_v49 = vcombine.high %v4786_v63, %v4786_v63  ;;  %v8352_v63 = vld [vmem:[%s10895_s1 + $0x48] sm:$0xff]  }
 0x135   :  { %10976 = vst [vmem:[#allocation57_spill] sm:$0xff] %v8283_v16  ;;  %10977 = vst [vmem:[#allocation58_spill] sm:$0xff] %v8285_v48  ;;  %v8292_v3 = vadd.f32 %v886_v8, %v8053_v9  ;;  %2590 = vmatprep.mubr.bf16.mxu1 %v10953_v34  ;;  %2844 = vmatprep.mubr.bf16.mxu0 %v10953_v34  ;;  %v8307_v8 = vld [vmem:[%s10895_s1 + $0x40] sm:$0xff]  }
 0x136   :  { %v8296_v19 = vpop.f32.mrf.mxu1  ;;  %v888_v60 = vpop.f32.mrf.mxu0  ;;  %4877 = vrot.lane.b32.xlu1 %v7231_v53, %s7500_s22 }
 0x137   :  { %10978 = vst [vmem:[#allocation59_spill] sm:$0xff] %v8292_v3  ;;  %10979 = vst [vmem:[#allocation60_spill] sm:$0xff] %v8296_v19  ;;  %v8300_v16 = vadd.f32 %v888_v60, %v8063_v26  ;;  %v8309_v3 = vld [vmem:[#allocation2 + $0xfc] sm:$0xff]  ;;  %v8311_v19 = vld [vmem:[#allocation2 + $0x104] sm:$0xff]  ;;  %v2771_v60 = vsel %vm142_vm0, %v7087_v45, 0  ;;  %4879 = vrot.lane.b32.xlu0 %v7232_v49, %s7500_s22 }
 0x138   :  { %v8302_v48 = vpop.f32.mrf.mxu1  ;;  %v890_v9 = vpop.f32.mrf.mxu0 }
 0x139   :  { %10980 = vst [vmem:[#allocation61_spill] sm:$0xff] %v8300_v16  ;;  %10981 = vst [vmem:[#allocation62_spill] sm:$0xff] %v8302_v48  ;;  %v8314_v55 = vadd.f32 %v890_v9, %v8071_v18  ;;  %v7090_v48 = vcombine.high %v8309_v3, %v8309_v3  ;;  %v7092_v18 = vcombine.high %v8311_v19, %v8311_v19 }
 0x13a   :  { %v8317_v26 = vpop.f32.mrf.mxu1  ;;  %v892_v12 = vpop.f32.mrf.mxu0 }
 0x13b   :  { %10982 = vst [vmem:[#allocation63_spill] sm:$0xff] %v8314_v55  ;;  %v8323_v16 = vadd.f32 %v892_v12, %v8080_v29 }
 0x13c   :  { %v8329_v9 = vpop.f32.mrf.mxu1  ;;  %v982_v33 = vpop.f32.mrf.mxu0  ;;  %7075 = vmatmul.mubr.msk.bf16.vlgmr.msra.gmra.mxu1 %vm135_vm1, %v8078_v46  ;;  %7102 = vmatmul.mubr.msk.bf16.vlgmr.msra.gmra.mxu0 %vm135_vm1, %v8307_v8 }
 0x13d   :  { %10983 = vst [vmem:[#allocation64_spill] sm:$0xff] %v8323_v16  ;;  %v8336_v45 = vadd.f32 %v982_v33, %v8088_v1  ;;  %2880 = vmatpush1.bf16.msra.mxu1 %v2765_v0  ;;  %2933 = vmatpush1.bf16.msra.mxu0 %v2771_v60 }
 0x13e   :  { %v8338_v29 = vpop.f32.mrf.mxu1  ;;  %v984_v53 = vpop.f32.mrf.mxu0  ;;  %2600 = vmatprep.mubr.bf16.mxu1 %v10953_v34  ;;  %2854 = vmatprep.mubr.bf16.mxu0 %v10953_v34 }
 0x13f   :  { %10984 = vst [vmem:[#allocation65_spill] sm:$0xff] %v8336_v45  ;;  %v8343_v12 = vadd.f32 %v984_v53, %v8096_v39  ;;  %7110 = vmatprep.subr.msk.bf16.mxu1 %vm142_vm0, %v7090_v48  ;;  %7113 = vmatprep.subr.msk.bf16.mxu0 %vm142_vm0, %v7092_v18  ;;  %v4787_v18 = vld [vmem:[#allocation2 + $0x84] sm:$0xff]  ;;  %v2689_v45 = vld [vmem:[#allocation2 + $0x114] sm:$0xff] }
 0x140   :  { %v8347_v46 = vpop.f32.mrf.mxu1  ;;  %v986_v1 = vpop.f32.mrf.mxu0  ;;  %v7233_v49 = vcombine.low %v4787_v18, %v4787_v18 }
 0x141   :  { %10985 = vst [vmem:[#allocation66_spill] sm:$0xff] %v8343_v12  ;;  %v8356_v0 = vadd.f32 %v986_v1, %v8106_v24  ;;  %v2688_v12 = vld [vmem:[#allocation2 + $0x10c] sm:$0xff] }
 0x142   :  { %v8358_v60 = vpop.f32.mrf.mxu1  ;;  %v988_v39 = vpop.f32.mrf.mxu0  ;;  %4881 = vrot.lane.b32.xlu1 %v7233_v49, %s7500_s22 }
 0x143   :  { %10986 = vst [vmem:[#allocation67_spill] sm:$0xff] %v8356_v0  ;;  %v8361_v48 = vadd.f32 %v988_v39, %v8115_v13  ;;  %v7089_v39 = vcombine.low %v8309_v3, %v8309_v3 }
 0x144   :  { %v8363_v33 = vpop.f32.mrf.mxu1  ;;  %v992_v53 = vpop.f32.mrf.mxu0  ;;  %7076 = vmatmul.mubr.msk.bf16.gmra.mxu1 %vm135_vm1, %v8113_v56  ;;  %7103 = vmatmul.mubr.msk.bf16.gmra.mxu0 %vm135_vm1, %v8352_v63  ;;  %v7091_v56 = vcombine.low %v8311_v19, %v8311_v19 }
 0x145   :  { %10987 = vst [vmem:[#allocation68_spill] sm:$0xff] %v8361_v48  ;;  %v8370_v24 = vadd.f32 %v992_v53, %v8119_v32  ;;  %2897 = vmatprep.mubr.bf16.mxu1 %v10953_v34  ;;  %2950 = vmatprep.mubr.bf16.mxu0 %v10953_v34  ;;  %v4788_v32 = vld [vmem:[#allocation2 + $0x8c] sm:$0xff]  ;;  %v7234_v53 = vcombine.high %v4787_v18, %v4787_v18  ;;  %v2777_v49 = vsel %vm142_vm0, %v7089_v39, 0 }
 0x146   :  { %v8374_v13 = vpop.f32.mrf.mxu1  ;;  %v994_v1 = vpop.f32.mrf.mxu0  ;;  %v7235_v16 = vcombine.low %v4788_v32, %v4788_v32 }
 0x147   :  { %10988 = vst [vmem:[#allocation69_spill] sm:$0xff] %v8370_v24  ;;  %v8382_v48 = vadd.f32 %v994_v1, %v8129_v40  ;;  %4883 = vrot.lane.b32.xlu0 %v7234_v53, %s7500_s22  ;;  %v2783_v40 = vsel %vm142_vm0, %v7091_v56, 0  ;;  %v7094_v1 = vcombine.high %v2688_v12, %v2688_v12 }
 0x148   :  { %v8384_v24 = vpop.f32.mrf.mxu1  ;;  %v996_v0 = vpop.f32.mrf.mxu0  ;;  %4885 = vrot.lane.b32.xlu1 %v7235_v16, %s7500_s22 }
 0x149   :  { %10989 = vst [vmem:[#allocation70_spill] sm:$0xff] %v8382_v48  ;;  %10990 = vst [vmem:[#allocation71_spill] sm:$0xff] %v8384_v24  ;;  %v8387_v55 = vadd.f32 %v996_v0, %v8133_v47  ;;  %v7096_v48 = vcombine.high %v2689_v45, %v2689_v45  ;;  %v7236_v0 = vcombine.high %v4788_v32, %v4788_v32 }
 0x14a   :  { %v8390_v3 = vpop.f32.mrf.mxu1  ;;  %v998_v19 = vpop.f32.mrf.mxu0 }
 0x14b   :  { %v8396_v18 = vadd.f32 %v998_v19, %v8137_v37  ;;  %4887 = vrot.lane.b32.xlu0 %v7236_v0, %s7500_s22  ;;  %v7093_v0 = vcombine.low %v2688_v12, %v2688_v12 }
 0x14c   :  { %v8398_v24 = vpop.f32.mrf.mxu1  ;;  %v1088_v47 = vpop.f32.mrf.mxu0  ;;  %7105 = vmatmul.mubr.msk.bf16.vlgmr.msra.gmra.mxu1 %vm135_vm1, %v8307_v8  ;;  %7108 = vmatmul.mubr.msk.bf16.vlgmr.msra.gmra.mxu0 %vm135_vm1, %v8307_v8 }
 0x14d   :  { %v8405_v39 = vadd.f32 %v1088_v47, %v8145_v61  ;;  %2986 = vmatpush1.bf16.msra.mxu1 %v2777_v49  ;;  %3039 = vmatpush1.bf16.msra.mxu0 %v2783_v40  ;;  %v2789_v12 = vsel %vm142_vm0, %v7093_v0, 0 }
 0x14e   :  { %v8407_v16 = vpop.f32.mrf.mxu1  ;;  %v1090_v37 = vpop.f32.mrf.mxu0  ;;  %2907 = vmatprep.mubr.bf16.mxu1 %v10953_v34  ;;  %2960 = vmatprep.mubr.bf16.mxu0 %v10953_v34 }
 0x14f   :  { %v8412_v56 = vadd.f32 %v1090_v37, %v8153_v31  ;;  %7116 = vmatprep.subr.msk.bf16.mxu1 %vm142_vm0, %v7094_v1  ;;  %7119 = vmatprep.subr.msk.bf16.mxu0 %vm142_vm0, %v7096_v48  ;;  %v7419_v31 = vld [vmem:[#allocation2 + $0x94] ss:$0 sps:$4 sm:$0xff]   ;;  %v7095_v37 = vcombine.low %v2689_v45, %v2689_v45 }
 0x150   :  { %v8416_v32 = vpop.f32.mrf.mxu1  ;;  %v1092_v61 = vpop.f32.mrf.mxu0  ;;  %4889 = vrot.lane.b32.xlu1 %v7419_v31, %s7500_s22  ;;  %5533 = vrot.lane.b32.xlu0 %v7549_v5, %s7501_s7 }
 0x151   :  { %v8420_v53 = vadd.f32 %v1092_v61, %v8163_v38  ;;  %v2795_v31 = vsel %vm142_vm0, %v7095_v37, 0 }
 0x152   :  { %v8422_v19 = vpop.f32.mrf.mxu1  ;;  %v1094_v49 = vpop.f32.mrf.mxu0 }
 0x153   :  { %10991 = vst [vmem:[#allocation72_spill] sm:$0xff] %v8420_v53  ;;  %v8425_v40 = vadd.f32 %v1094_v49, %v8167_v25 }
 0x154   :  { %v8427_v47 = vpop.f32.mrf.mxu1  ;;  %v1098_v1 = vpop.f32.mrf.mxu0  ;;  %7106 = vmatmul.mubr.msk.bf16.gmra.mxu1 %vm135_vm1, %v8352_v63  ;;  %7109 = vmatmul.mubr.msk.bf16.gmra.mxu0 %vm135_vm1, %v8352_v63 }
 0x155   :  { %10992 = vst [vmem:[#allocation73_spill] sm:$0xff] %v8425_v40  ;;  %v8434_v48 = vadd.f32 %v1098_v1, %v8172_v10  ;;  %3003 = vmatprep.mubr.bf16.mxu1 %v10953_v34  ;;  %3056 = vmatprep.mubr.bf16.mxu0 %v10953_v34  ;;  %v2690_v1 = vld [vmem:[#allocation2 + $0x11c] sm:$0xff] }
 0x156   :  { %v8438_v38 = vpop.f32.mrf.mxu1  ;;  %v1100_v25 = vpop.f32.mrf.mxu0  ;;  %5535 = vrot.lane.b32.xlu1 %v7570_v20, %s7501_s7  ;;  %5537 = vrot.lane.b32.xlu0 %v7564_v14, %s7501_s7 }
 0x157   :  { %10993 = vst [vmem:[#allocation74_spill] sm:$0xff] %v8434_v48  ;;  %v8444_v61 = vadd.f32 %v1100_v25, %v8182_v27  ;;  %v2691_v48 = vld [vmem:[#allocation2 + $0x124] sm:$0xff]  ;;  %v7098_v27 = vcombine.high %v2690_v1, %v2690_v1  ;;  %v8471_v14 = vpop.permute.xlu1 %3434 }
 0x158   :  { %v8446_v10 = vpop.f32.mrf.mxu1  ;;  %v1102_v49 = vpop.f32.mrf.mxu0  ;;  %v7100_v25 = vcombine.high %v2691_v48, %v2691_v48 }
 0x159   :  { %v8449_v40 = vadd.f32 %v1102_v49, %v8188_v15 }
 0x15a   :  { %v8451_v53 = vpop.f32.mrf.mxu1  ;;  %v1104_v45 = vpop.f32.mrf.mxu0  ;;  %5539 = vrot.lane.b32.xlu1 %v7576_v22, %s7501_s7  ;;  %5541 = vrot.lane.b32.xlu0 %v7585_v28, %s7501_s7 }
 0x15b   :  { %v8460_v5 = vadd.f32 %v1104_v45, %v8192_v17 }
 0x15c   :  { %v8462_v15 = vpop.f32.mrf.mxu1  ;;  %v1194_v49 = vpop.f32.mrf.mxu0  ;;  %7111 = vmatmul.mubr.msk.bf16.vlgmr.msra.gmra.mxu1 %vm135_vm1, %v8307_v8  ;;  %7114 = vmatmul.mubr.msk.bf16.vlgmr.msra.gmra.mxu0 %vm135_vm1, %v8307_v8 }
 0x15d   :  { %v8469_v0 = vadd.f32 %v1194_v49, %v8202_v23  ;;  %3092 = vmatpush1.bf16.msra.mxu1 %v2789_v12  ;;  %3145 = vmatpush1.bf16.msra.mxu0 %v2795_v31 }
 0x15e   :  { %v8473_v20 = vpop.f32.mrf.mxu1  ;;  %v1196_v17 = vpop.f32.mrf.mxu0  ;;  %3013 = vmatprep.mubr.bf16.mxu1 %v10953_v34  ;;  %3066 = vmatprep.mubr.bf16.mxu0 %v10953_v34 }
 0x15f   :  { %10994 = vst [vmem:[#allocation75_spill] sm:$0xff] %v8469_v0  ;;  %v8478_v37 = vadd.f32 %v1196_v17, %v8210_v59  ;;  %7122 = vmatprep.subr.msk.bf16.mxu1 %vm142_vm0, %v7098_v27  ;;  %7125 = vmatprep.subr.msk.bf16.mxu0 %vm142_vm0, %v7100_v25  ;;  %v8496_v27 = vpop.permute.xlu1 %3438  ;;  %v8498_v25 = vpop.permute.xlu0 %3436 }
 0x160   :  { %v8482_v23 = vpop.f32.mrf.mxu1  ;;  %v1198_v45 = vpop.f32.mrf.mxu0  ;;  %5543 = vrot.lane.b32.xlu1 %v7590_v30, %s7501_s7  ;;  %5545 = vrot.lane.b32.xlu0 %v7600_v35, %s7501_s7  ;;  %v824_v35 = vadd.f32 %v8256_v51, %v7989_v50 }
 0x161   :  { %10995 = vst [vmem:[#allocation76_spill] sm:$0xff] %v8478_v37  ;;  %v8489_v12 = vadd.f32 %v1198_v45, %v8219_v7  ;;  %v7099_v45 = vcombine.low %v2691_v48, %v2691_v48 }
 0x162   :  { %v8491_v31 = vpop.f32.mrf.mxu1  ;;  %v1200_v59 = vpop.f32.mrf.mxu0 }
 0x163   :  { %10996 = vst [vmem:[#allocation77_spill] sm:$0xff] %v8489_v12  ;;  %v8494_v49 = vadd.f32 %v1200_v59, %v8224_v57  ;;  %v7097_v57 = vcombine.low %v2690_v1, %v2690_v1  ;;  %v3441_v12 = vpop.permute.xlu0 %3440  ;;  %v2807_v0 = vsel %vm142_vm0, %v7099_v45, 0  ;;  %v828_v45 = vadd.f32 %v8274_v62, %v8007_v52 }
 0x164   :  { %v8500_v17 = vpop.f32.mrf.mxu1  ;;  %v1204_v37 = vpop.f32.mrf.mxu0  ;;  %7112 = vmatmul.mubr.msk.bf16.gmra.mxu1 %vm135_vm1, %v8352_v63  ;;  %7115 = vmatmul.mubr.msk.bf16.gmra.mxu0 %vm135_vm1, %v8352_v63 }
 0x165   :  { %10997 = vst [vmem:[#allocation78_spill] sm:$0xff] %v8494_v49  ;;  %v8507_v22 = vadd.f32 %v1204_v37, %v8228_v4  ;;  %3109 = vmatprep.mubr.bf16.mxu1 %v10953_v34  ;;  %3162 = vmatprep.mubr.bf16.mxu0 %v10953_v34  ;;  %v8525_v49 = vpop.permute.xlu1 %3442  ;;  %v2801_v30 = vsel %vm142_vm0, %v7097_v57, 0 }
 0x166   :  { %v8511_v28 = vpop.f32.mrf.mxu1  ;;  %v1206_v7 = vpop.f32.mrf.mxu0  ;;  %5547 = vrot.lane.b32.xlu1 %v7602_v36, %s7501_s7  ;;  %5549 = vrot.lane.b32.xlu0 %v7614_v41, %s7501_s7  ;;  %v3473_v36 = vsel %vm1377_vm2, %v8498_v25, %v8496_v27  ;;  %v3475_v41 = vsel %vm1377_vm2, %v3441_v12, %v8525_v49 }
 0x167   :  { %10998 = vst [vmem:[#allocation79_spill] sm:$0xff] %v8507_v22  ;;  %v8518_v59 = vadd.f32 %v1206_v7, %v8238_v2 }
 0x168   :  { %v8520_v4 = vpop.f32.mrf.mxu1  ;;  %v1208_v37 = vpop.f32.mrf.mxu0 }
 0x169   :  { %v8523_v22 = vadd.f32 %v1208_v37, %v8243_v21 }
 0x16a   :  { %v8527_v1 = vpop.f32.mrf.mxu1  ;;  %v1210_v48 = vpop.f32.mrf.mxu0  ;;  %5551 = vrot.lane.b32.xlu1 %v7616_v42, %s7501_s7  ;;  %5553 = vrot.lane.b32.xlu0 %v7624_v43, %s7501_s7  ;;  %v11006_v42 = vld [vmem:[#allocation19_spill] sm:$0xff]  ;;  %v11007_v43 = vld [vmem:[#allocation60_spill] sm:$0xff] }
 0x16b   :  { %v8538_v21 = vadd.f32 %v1210_v48, %v8248_v44  ;;  %v826_v44 = vadd.f32 %v8265_v6, %v7999_v11 }
 0x16c   :  { %v8540_v2 = vpop.f32.mrf.mxu1  ;;  %v1490_v7 = vpop.f32.mrf.mxu0  ;;  %7117 = vmatmul.mubr.msk.bf16.vlgmr.msra.gmra.mxu1 %vm135_vm1, %v8307_v8  ;;  %7120 = vmatmul.mubr.msk.bf16.vlgmr.msra.gmra.mxu0 %vm135_vm1, %v8307_v8 }
 0x16d   :  { %10999 = vst [vmem:[#allocation80_spill] sm:$0xff] %v8538_v21  ;;  %v8553_v50 = vadd.f32 %v1490_v7, %v824_v35  ;;  %3198 = vmatpush1.bf16.msra.mxu1 %v2801_v30  ;;  %3251 = vmatpush1.bf16.msra.mxu0 %v2807_v0  ;;  %v830_v0 = vadd.f32 %v8280_v58, %v8011_v54  ;;  %v11003_v30 = vld [vmem:[#allocation18_spill] sm:$0xff] }
 0x16e   :  { %v8555_v51 = vpop.f32.mrf.mxu1  ;;  %v1492_v57 = vpop.f32.mrf.mxu0  ;;  %3119 = vmatprep.mubr.bf16.mxu1 %v10953_v34  ;;  %3172 = vmatprep.mubr.bf16.mxu0 %v10953_v34  ;;  %v11004_v35 = vld [vmem:[#allocation58_spill] sm:$0xff]  ;;  %v836_v54 = vadd.f32 %v11007_v43, %v11006_v42  ;;  %v3472_v42 = vsel %vm1377_vm2, %v8471_v14, %v8498_v25 }
 0x16f   :  { %11000 = vst [vmem:[#allocation81_spill] sm:$0xff] %v8553_v50  ;;  %v8561_v37 = vadd.f32 %v1492_v57, %v826_v44  ;;  %7153 = vmatprep.subr.msk.bf16.mxu1 %vm142_vm0, %v3473_v36  ;;  %7156 = vmatprep.subr.msk.bf16.mxu0 %vm142_vm0, %v3475_v41  ;;  %v834_v7 = vadd.f32 %v11004_v35, %v11003_v30  ;;  %v8593_v57 = vpop.permute.xlu0 %3444  ;;  %v11010_v30 = vld [vmem:[#allocation12_spill] sm:$0xff] }
 0x170   :  { %v8565_v11 = vpop.f32.mrf.mxu1  ;;  %v1494_v6 = vpop.f32.mrf.mxu0  ;;  %5557 = vrot.lane.b32.xlu0 %v11010_v30, %s7501_s7  ;;  %v11011_v35 = vld [vmem:[#allocation20_spill] sm:$0xff] }
 0x171   :  { %11001 = vst [vmem:[#allocation82_spill] sm:$0xff] %v8561_v37  ;;  %v8573_v48 = vadd.f32 %v1494_v6, %v828_v45  ;;  %v8595_v45 = vpop.permute.xlu1 %3446  ;;  %v11014_v37 = vld [vmem:[#allocation21_spill] sm:$0xff] }
 0x172   :  { %v8575_v52 = vpop.f32.mrf.mxu1  ;;  %v1496_v62 = vpop.f32.mrf.mxu0 }
 0x173   :  { %11002 = vst [vmem:[#allocation83_spill] sm:$0xff] %v8573_v48  ;;  %v8579_v36 = vadd.f32 %v1496_v62, %v830_v0  ;;  %v11009_v62 = vld [vmem:[#allocation11_spill] sm:$0xff] }
 0x174   :  { %v8581_v41 = vpop.f32.mrf.mxu1  ;;  %v1500_v44 = vpop.f32.mrf.mxu0  ;;  %7118 = vmatmul.mubr.msk.bf16.gmra.mxu1 %vm135_vm1, %v8352_v63  ;;  %7121 = vmatmul.mubr.msk.bf16.gmra.mxu0 %vm135_vm1, %v8352_v63 }
 0x175   :  { %11005 = vst [vmem:[#allocation18_spill] sm:$0xff] %v8579_v36  ;;  %v8589_v58 = vadd.f32 %v1500_v44, %v834_v7  ;;  %3215 = vmatprep.mubr.bf16.mxu1 %v10953_v34  ;;  %3268 = vmatprep.mubr.bf16.mxu0 %v10953_v34  ;;  %v11012_v7 = vld [vmem:[#allocation62_spill] sm:$0xff]  ;;  %v8618_v30 = vpop.permute.xlu1 %3450 }
 0x176   :  { %v8597_v6 = vpop.f32.mrf.mxu1  ;;  %v1502_v0 = vpop.f32.mrf.mxu0  ;;  %5555 = vrot.lane.b32.xlu1 %v11009_v62, %s7501_s7  ;;  %v838_v44 = vadd.f32 %v11012_v7, %v11011_v35  ;;  %v840_v62 = vadd.f32 %v8317_v26, %v11014_v37  ;;  %v3497_v7 = vsel %vm142_vm0, %v3472_v42, 0 }
 0x177   :  { %11008 = vst [vmem:[#allocation58_spill] sm:$0xff] %v8589_v58  ;;  %v8608_v43 = vadd.f32 %v1502_v0, %v836_v54  ;;  %v3474_v58 = vsel %vm1377_vm2, %v8496_v27, %v3441_v12  ;;  %v3449_v35 = vpop.permute.xlu0 %3448  ;;  %v11016_v12 = vld [vmem:[#allocation13_spill] sm:$0xff]  ;;  %v11017_v27 = vld [vmem:[#allocation14_spill] sm:$0xff] }
 0x178   :  { %v8612_v36 = vpop.f32.mrf.mxu1  ;;  %v1504_v48 = vpop.f32.mrf.mxu0  ;;  %v3503_v14 = vsel %vm142_vm0, %v3474_v58, 0  ;;  %5561 = vrot.lane.b32.xlu0 %v11017_v27, %s7501_s7  ;;  %v11018_v0 = vld [vmem:[#allocation22_spill] sm:$0xff]  ;;  %v3477_v58 = vsel %vm1377_vm2, %v8593_v57, %v8595_v45  ;;  %v3479_v42 = vsel %vm1377_vm2, %v3449_v35, %v8618_v30 }
 0x179   :  { %11013 = vst [vmem:[#allocation19_spill] sm:$0xff] %v8608_v43  ;;  %v8616_v50 = vadd.f32 %v1504_v48, %v838_v44  ;;  %v930_v26 = vadd.f32 %v8329_v9, %v11018_v0  ;;  %v11024_v43 = vld [vmem:[#allocation55_spill] sm:$0xff] }
 0x17a   :  { %v8622_v25 = vpop.f32.mrf.mxu1  ;;  %v1506_v54 = vpop.f32.mrf.mxu0  ;;  %5559 = vrot.lane.b32.xlu1 %v11016_v12, %s7501_s7  ;;  %v11020_v12 = vld [vmem:[#allocation23_spill] sm:$0xff] }
 0x17b   :  { %11015 = vst [vmem:[#allocation60_spill] sm:$0xff] %v8616_v50  ;;  %v8630_v37 = vadd.f32 %v1506_v54, %v840_v62  ;;  %v932_v9 = vadd.f32 %v8338_v29, %v11020_v12  ;;  %v11021_v62 = vld [vmem:[#allocation54_spill] sm:$0xff]  ;;  %v11029_v12 = vld [vmem:[#allocation56_spill] sm:$0xff] }
 0x17c   :  { %v1543_v48 = vpop.f32.mrf.mxu1  ;;  %v1596_v44 = vpop.f32.mrf.mxu0  ;;  %7123 = vmatmul.mubr.msk.bf16.vlgmr.msra.gmra.mxu1 %vm135_vm1, %v8307_v8  ;;  %7126 = vmatmul.mubr.msk.bf16.vlgmr.msra.gmra.mxu0 %vm135_vm1, %v8307_v8  ;;  %v11023_v8 = vld [vmem:[#allocation24_spill] sm:$0xff] }
 0x17d   :  { %11019 = vst [vmem:[#allocation11_spill] sm:$0xff] %v8630_v37  ;;  %v8644_v54 = vadd.f32 %v1543_v48, %v11021_v62  ;;  %v8646_v27 = vadd.f32 %v1596_v44, %v930_v26  ;;  %3565 = vmatpush1.bf16.msra.mxu1 %v3497_v7  ;;  %3618 = vmatpush1.bf16.msra.mxu0 %v3503_v14  ;;  %v11026_v26 = vld [vmem:[#allocation15_spill] sm:$0xff]  ;;  %v11027_v48 = vld [vmem:[#allocation16_spill] sm:$0xff]  ;;  %v11028_v44 = vld [vmem:[#allocation25_spill] sm:$0xff] }
 0x17e   :  { %v1545_v0 = vpop.f32.mrf.mxu1  ;;  %v1598_v37 = vpop.f32.mrf.mxu0  ;;  %3225 = vmatprep.mubr.bf16.mxu1 %v10953_v34  ;;  %3278 = vmatprep.mubr.bf16.mxu0 %v10953_v34  ;;  %v934_v50 = vadd.f32 %v8347_v46, %v11023_v8  ;;  %v936_v46 = vadd.f32 %v8358_v60, %v11028_v44  ;;  %v11031_v62 = vld [vmem:[#allocation26_spill] sm:$0xff]  ;;  %v11034_v60 = vld [vmem:[#allocation27_spill] sm:$0xff] }
 0x17f   :  { %11022 = vst [vmem:[#allocation12_spill] sm:$0xff] %v8646_v27  ;;  %v8653_v21 = vadd.f32 %v1545_v0, %v11024_v43  ;;  %v8655_v29 = vadd.f32 %v1598_v37, %v932_v9  ;;  %7159 = vmatprep.subr.msk.bf16.mxu1 %vm142_vm0, %v3477_v58  ;;  %7162 = vmatprep.subr.msk.bf16.mxu0 %vm142_vm0, %v3479_v42  ;;  %v11032_v0 = vld [vmem:[#allocation57_spill] sm:$0xff]  ;;  %v8690_v44 = vpop.permute.xlu0 %3452  ;;  %v11047_v27 = vld [vmem:[#allocation64_spill] sm:$0xff] }
 0x180   :  { %v1547_v7 = vpop.f32.mrf.mxu1  ;;  %v1600_v14 = vpop.f32.mrf.mxu0  ;;  %5563 = vrot.lane.b32.xlu1 %v11026_v26, %s7501_s7  ;;  %5565 = vrot.lane.b32.xlu0 %v11027_v48, %s7501_s7  ;;  %v940_v42 = vadd.f32 %v8363_v33, %v11031_v62  ;;  %v11039_v62 = vld [vmem:[#allocation71_spill] sm:$0xff] }
 0x181   :  { %11025 = vst [vmem:[#allocation20_spill] sm:$0xff] %v8655_v29  ;;  %v8666_v43 = vadd.f32 %v1547_v7, %v11029_v12  ;;  %v8668_v37 = vadd.f32 %v1600_v14, %v934_v50  ;;  %v942_v50 = vadd.f32 %v8374_v13, %v11034_v60  ;;  %v11035_v7 = vld [vmem:[#allocation59_spill] sm:$0xff]  ;;  %v11037_v13 = vld [vmem:[#allocation17_spill] sm:$0xff] }
 0x182   :  { %v1549_v9 = vpop.f32.mrf.mxu1  ;;  %v1602_v58 = vpop.f32.mrf.mxu0 }
 0x183   :  { %11030 = vst [vmem:[#allocation62_spill] sm:$0xff] %v8668_v37  ;;  %v8673_v8 = vadd.f32 %v1549_v9, %v11032_v0  ;;  %v8675_v26 = vadd.f32 %v1602_v58, %v936_v46  ;;  %v8692_v46 = vpop.permute.xlu1 %3454  ;;  %v11038_v58 = vld [vmem:[#allocation28_spill] sm:$0xff]  ;;  %v11040_v0 = vld [vmem:[#allocation61_spill] sm:$0xff] }
 0x184   :  { %v1553_v29 = vpop.f32.mrf.mxu1  ;;  %v1606_v48 = vpop.f32.mrf.mxu0  ;;  %7124 = vmatmul.mubr.msk.bf16.gmra.mxu1 %vm135_vm1, %v8352_v63  ;;  %7127 = vmatmul.mubr.msk.bf16.gmra.mxu0 %vm135_vm1, %v8352_v63  ;;  %v3476_v63 = vsel %vm1377_vm2, %v8525_v49, %v8593_v57 }
 0x185   :  { %11033 = vst [vmem:[#allocation21_spill] sm:$0xff] %v8675_v26  ;;  %v8684_v14 = vadd.f32 %v1553_v29, %v11035_v7  ;;  %v8686_v33 = vadd.f32 %v1606_v48, %v940_v42  ;;  %3582 = vmatprep.mubr.bf16.mxu1 %v10953_v34  ;;  %3635 = vmatprep.mubr.bf16.mxu0 %v10953_v34  ;;  %v7425_v29 = vld [vmem:[#allocation2 + $0x48] ss:$0 sps:$4 sm:$0xff]   ;;  %v11044_v26 = vld [vmem:[#allocation63_spill] sm:$0xff] }
 0x186   :  { %v1555_v12 = vpop.f32.mrf.mxu1  ;;  %v1608_v9 = vpop.f32.mrf.mxu0  ;;  %5567 = vrot.lane.b32.xlu1 %v11037_v13, %s7501_s7  ;;  %5569 = vrot.lane.b32.xlu0 %v7425_v29, %s7501_s7  ;;  %v944_v42 = vadd.f32 %v11039_v62, %v11038_v58  ;;  %v3478_v7 = vsel %vm1377_vm2, %v8595_v45, %v3449_v35  ;;  %v8712_v13 = vld [vmem:[%s10895_s1 + $0x50] sm:$0xff]   ;;  %v3509_v45 = vsel %vm142_vm0, %v3476_v63, 0  ;;  %v3481_v63 = vsel %vm1377_vm2, %v8690_v44, %v8692_v46 }
 0x187   :  { %11036 = vst [vmem:[#allocation13_spill] sm:$0xff] %v8686_v33  ;;  %v8703_v48 = vadd.f32 %v1555_v12, %v11040_v0  ;;  %v8705_v60 = vadd.f32 %v1608_v9, %v942_v50  ;;  %v11043_v33 = vld [vmem:[#allocation29_spill] sm:$0xff]  ;;  %v8721_v50 = vpop.permute.xlu1 %3458  ;;  %v3457_v9 = vpop.permute.xlu0 %3456  ;;  %v3515_v35 = vsel %vm142_vm0, %v3478_v7, 0 }
 0x188   :  { %v1557_v49 = vpop.f32.mrf.mxu1  ;;  %v1610_v57 = vpop.f32.mrf.mxu0  ;;  %v946_v29 = vadd.f32 %v8390_v3, %v11043_v33 }
 0x189   :  { %11041 = vst [vmem:[#allocation14_spill] sm:$0xff] %v8703_v48  ;;  %11042 = vst [vmem:[#allocation22_spill] sm:$0xff] %v8705_v60  ;;  %v8717_v58 = vadd.f32 %v1557_v49, %v11044_v26  ;;  %v8719_v12 = vadd.f32 %v1610_v57, %v944_v42  ;;  %v11046_v60 = vld [vmem:[#allocation30_spill] sm:$0xff]  ;;  %v11049_v42 = vld [vmem:[#allocation31_spill] sm:$0xff] }
 0x18a   :  { %v1559_v62 = vpop.f32.mrf.mxu1  ;;  %v1612_v0 = vpop.f32.mrf.mxu0  ;;  %v1036_v37 = vadd.f32 %v8398_v24, %v11046_v60  ;;  %v3483_v24 = vsel %vm1377_vm2, %v3457_v9, %v8721_v50  ;;  %v11050_v60 = vld [vmem:[#allocation65_spill] sm:$0xff] }
 0x18b   :  { %11045 = vst [vmem:[#allocation23_spill] sm:$0xff] %v8719_v12  ;;  %v8728_v48 = vadd.f32 %v1559_v62, %v11047_v27  ;;  %v8730_v3 = vadd.f32 %v1612_v0, %v946_v29  ;;  %v1038_v27 = vadd.f32 %v8407_v16, %v11049_v42  ;;  %v11052_v62 = vld [vmem:[#allocation32_spill] sm:$0xff] }
 0x18c   :  { %v1649_v26 = vpop.f32.mrf.mxu1  ;;  %v1702_v33 = vpop.f32.mrf.mxu0  ;;  %7154 = vmatmul.mubr.msk.bf16.vlgmr.msra.gmra.mxu1 %vm135_vm1, %v8712_v13  ;;  %7157 = vmatmul.mubr.msk.bf16.vlgmr.msra.gmra.mxu0 %vm135_vm1, %v8712_v13  ;;  %v1040_v0 = vadd.f32 %v8416_v32, %v11052_v62  ;;  %v11056_v32 = vld [vmem:[#allocation67_spill] sm:$0xff] }
 0x18d   :  { %11048 = vst [vmem:[#allocation54_spill] sm:$0xff] %v8730_v3  ;;  %v8744_v7 = vadd.f32 %v1649_v26, %v11050_v60  ;;  %v8746_v49 = vadd.f32 %v1702_v33, %v1036_v37  ;;  %3671 = vmatpush1.bf16.msra.mxu1 %v3509_v45  ;;  %3724 = vmatpush1.bf16.msra.mxu0 %v3515_v35  ;;  %v11053_v3 = vld [vmem:[#allocation66_spill] sm:$0xff]  ;;  %v8762_v35 = vld [vmem:[%s10895_s1 + $0x58] sm:$0xff]   ;;  %v11055_v26 = vld [vmem:[#allocation33_spill] sm:$0xff] }
 0x18e   :  { %v1651_v57 = vpop.f32.mrf.mxu1  ;;  %v1704_v29 = vpop.f32.mrf.mxu0  ;;  %3592 = vmatprep.mubr.bf16.mxu1 %v10953_v34  ;;  %3645 = vmatprep.mubr.bf16.mxu0 %v10953_v34  ;;  %v1042_v33 = vadd.f32 %v8422_v19, %v11055_v26  ;;  %v11061_v19 = vld [vmem:[#allocation35_spill] sm:$0xff] }
 0x18f   :  { %11051 = vst [vmem:[#allocation24_spill] sm:$0xff] %v8746_v49  ;;  %v8753_v12 = vadd.f32 %v1651_v57, %v11053_v3  ;;  %v8755_v16 = vadd.f32 %v1704_v29, %v1038_v27  ;;  %7165 = vmatprep.subr.msk.bf16.mxu1 %vm142_vm0, %v3481_v63  ;;  %7168 = vmatprep.subr.msk.bf16.mxu0 %vm142_vm0, %v3483_v24  ;;  %v11058_v63 = vld [vmem:[#allocation34_spill] sm:$0xff]  ;;  %v11059_v57 = vld [vmem:[#allocation68_spill] sm:$0xff]  ;;  %v8791_v26 = vpop.permute.xlu0 %3460 }
 0x190   :  { %v1653_v37 = vpop.f32.mrf.mxu1  ;;  %v1706_v45 = vpop.f32.mrf.mxu0  ;;  %v1046_v24 = vadd.f32 %v8427_v47, %v11058_v63  ;;  %v11065_v63 = vld [vmem:[#allocation70_spill] sm:$0xff] }
 0x191   :  { %11054 = vst [vmem:[#allocation55_spill] sm:$0xff] %v8755_v16  ;;  %v8767_v42 = vadd.f32 %v1653_v37, %v11056_v32  ;;  %v8769_v3 = vadd.f32 %v1706_v45, %v1040_v0  ;;  %v1048_v0 = vadd.f32 %v8438_v38, %v11061_v19  ;;  %v11062_v37 = vld [vmem:[#allocation69_spill] sm:$0xff]  ;;  %v3480_v32 = vsel %vm1377_vm2, %v8618_v30, %v8690_v44  ;;  %v11064_v38 = vld [vmem:[#allocation36_spill] sm:$0xff] }
 0x192   :  { %v1655_v27 = vpop.f32.mrf.mxu1  ;;  %v1708_v60 = vpop.f32.mrf.mxu0 }
 0x193   :  { %11057 = vst [vmem:[#allocation15_spill] sm:$0xff] %v8769_v3  ;;  %v8774_v29 = vadd.f32 %v1655_v27, %v11059_v57  ;;  %v8776_v62 = vadd.f32 %v1708_v60, %v1042_v33  ;;  %v8793_v33 = vpop.permute.xlu1 %3462  ;;  %v3482_v57 = vsel %vm1377_vm2, %v8692_v46, %v3457_v9  ;;  %v11067_v46 = vld [vmem:[#allocation38_spill] sm:$0xff] }
 0x194   :  { %v1659_v16 = vpop.f32.mrf.mxu1  ;;  %v1712_v49 = vpop.f32.mrf.mxu0  ;;  %7155 = vmatmul.mubr.msk.bf16.gmra.mxu1 %vm135_vm1, %v8762_v35  ;;  %7158 = vmatmul.mubr.msk.bf16.gmra.mxu0 %vm135_vm1, %v8762_v35  ;;  %v1142_v9 = vadd.f32 %v8462_v15, %v11067_v46 }
 0x195   :  { %11060 = vst [vmem:[#allocation16_spill] sm:$0xff] %v8776_v62  ;;  %v8785_v45 = vadd.f32 %v1659_v16, %v11062_v37  ;;  %v8787_v47 = vadd.f32 %v1712_v49, %v1046_v24  ;;  %3688 = vmatprep.mubr.bf16.mxu1 %v10953_v34  ;;  %3741 = vmatprep.mubr.bf16.mxu0 %v10953_v34 }
 0x196   :  { %v1661_v27 = vpop.f32.mrf.mxu1  ;;  %v1714_v60 = vpop.f32.mrf.mxu0  ;;  %v1050_v16 = vadd.f32 %v8446_v10, %v11064_v38 }
 0x197   :  { %11063 = vst [vmem:[#allocation25_spill] sm:$0xff] %v8787_v47  ;;  %v8801_v49 = vadd.f32 %v1661_v27, %v11065_v63  ;;  %v8803_v24 = vadd.f32 %v1714_v60, %v1048_v0  ;;  %v11066_v47 = vld [vmem:[#allocation37_spill] sm:$0xff]  ;;  %v8814_v3 = vpop.permute.xlu1 %3466  ;;  %v3465_v10 = vpop.permute.xlu0 %3464  ;;  %v3521_v27 = vsel %vm142_vm0, %v3480_v32, 0  ;;  %v3527_v0 = vsel %vm142_vm0, %v3482_v57, 0 }
 0x198   :  { %v1663_v19 = vpop.f32.mrf.mxu1  ;;  %v1716_v37 = vpop.f32.mrf.mxu0  ;;  %v1052_v62 = vadd.f32 %v8451_v53, %v11066_v47  ;;  %v3485_v32 = vsel %vm1377_vm2, %v8791_v26, %v8793_v33  ;;  %v3487_v15 = vsel %vm1377_vm2, %v3465_v10, %v8814_v3 }
 0x199   :  { %v8810_v30 = vadd.f32 %v1663_v19, %v8387_v55  ;;  %v8812_v44 = vadd.f32 %v1716_v37, %v1050_v16  ;;  %v11069_v16 = vld [vmem:[#allocation39_spill] sm:$0xff] }
 0x19a   :  { %v1665_v60 = vpop.f32.mrf.mxu1  ;;  %v1718_v38 = vpop.f32.mrf.mxu0 }
 0x19b   :  { %v8821_v63 = vadd.f32 %v1665_v60, %v8396_v18  ;;  %v8823_v53 = vadd.f32 %v1718_v38, %v1052_v62  ;;  %v1144_v18 = vadd.f32 %v8473_v20, %v11069_v16  ;;  %v11071_v60 = vld [vmem:[#allocation40_spill] sm:$0xff] }
 0x19c   :  { %v1755_v55 = vpop.f32.mrf.mxu1  ;;  %v1808_v47 = vpop.f32.mrf.mxu0  ;;  %7160 = vmatmul.mubr.msk.bf16.vlgmr.msra.gmra.mxu1 %vm135_vm1, %v8712_v13  ;;  %7163 = vmatmul.mubr.msk.bf16.vlgmr.msra.gmra.mxu0 %vm135_vm1, %v8712_v13  ;;  %v1146_v38 = vadd.f32 %v8482_v23, %v11071_v60 }
 0x19d   :  { %11068 = vst [vmem:[#allocation56_spill] sm:$0xff] %v8823_v53  ;;  %v8837_v62 = vadd.f32 %v1755_v55, %v8405_v39  ;;  %v8839_v57 = vadd.f32 %v1808_v47, %v1142_v9  ;;  %3777 = vmatpush1.bf16.msra.mxu1 %v3521_v27  ;;  %3830 = vmatpush1.bf16.msra.mxu0 %v3527_v0  ;;  %v8852_v39 = vpop.permute.xlu0 %3468  ;;  %v11073_v9 = vld [vmem:[#allocation41_spill] sm:$0xff]  ;;  %v11074_v47 = vld [vmem:[#allocation72_spill] sm:$0xff] }
 0x19e   :  { %v1757_v19 = vpop.f32.mrf.mxu1  ;;  %v1810_v37 = vpop.f32.mrf.mxu0  ;;  %3698 = vmatprep.mubr.bf16.mxu1 %v10953_v34  ;;  %3751 = vmatprep.mubr.bf16.mxu0 %v10953_v34  ;;  %v1148_v55 = vadd.f32 %v8491_v31, %v11073_v9  ;;  %v11077_v31 = vld [vmem:[#allocation43_spill] sm:$0xff] }
 0x19f   :  { %11070 = vst [vmem:[#allocation26_spill] sm:$0xff] %v8839_v57  ;;  %v8846_v46 = vadd.f32 %v1757_v19, %v8412_v56  ;;  %v8848_v20 = vadd.f32 %v1810_v37, %v1144_v18  ;;  %7171 = vmatprep.subr.msk.bf16.mxu1 %vm142_vm0, %v3485_v32  ;;  %7174 = vmatprep.subr.msk.bf16.mxu0 %vm142_vm0, %v3487_v15  ;;  %v11075_v18 = vld [vmem:[#allocation42_spill] sm:$0xff]  ;;  %v11076_v32 = vld [vmem:[#allocation73_spill] sm:$0xff]  ;;  %v3471_v9 = vpop.permute.xlu1 %3470 }
 0x1a0   :  { %v1759_v27 = vpop.f32.mrf.mxu1  ;;  %v1812_v0 = vpop.f32.mrf.mxu0  ;;  %v1152_v37 = vadd.f32 %v8500_v17, %v11075_v18 }
 0x1a1   :  { %11072 = vst [vmem:[#allocation57_spill] sm:$0xff] %v8848_v20  ;;  %v8857_v16 = vadd.f32 %v1759_v27, %v11074_v47  ;;  %v8859_v23 = vadd.f32 %v1812_v0, %v1146_v38  ;;  %v8868_v20 = vpop.permute.xlu0 %4114  ;;  %v1154_v38 = vadd.f32 %v8511_v28, %v11077_v31  ;;  %v11078_v27 = vld [vmem:[#allocation74_spill] sm:$0xff]  ;;  %v11080_v31 = vld [vmem:[#allocation45_spill] sm:$0xff] }
 0x1a2   :  { %v1761_v56 = vpop.f32.mrf.mxu1  ;;  %v1814_v19 = vpop.f32.mrf.mxu0 }
 0x1a3   :  { %v8864_v60 = vadd.f32 %v1761_v56, %v11076_v32  ;;  %v8866_v15 = vadd.f32 %v1814_v19, %v1148_v55  ;;  %v3484_v55 = vsel %vm1377_vm2, %v8721_v50, %v8791_v26  ;;  %v11079_v19 = vld [vmem:[#allocation44_spill] sm:$0xff] }
 0x1a4   :  { %v1765_v57 = vpop.f32.mrf.mxu1  ;;  %v1818_v53 = vpop.f32.mrf.mxu0  ;;  %7161 = vmatmul.mubr.msk.bf16.gmra.mxu1 %vm135_vm1, %v8762_v35  ;;  %7164 = vmatmul.mubr.msk.bf16.gmra.mxu0 %vm135_vm1, %v8762_v35  ;;  %v1156_v18 = vadd.f32 %v8520_v4, %v11079_v19 }
 0x1a5   :  { %v8877_v17 = vadd.f32 %v1765_v57, %v11078_v27  ;;  %v8879_v0 = vadd.f32 %v1818_v53, %v1152_v37  ;;  %3794 = vmatprep.mubr.bf16.mxu1 %v10953_v34  ;;  %3847 = vmatprep.mubr.bf16.mxu0 %v10953_v34  ;;  %v3486_v53 = vsel %vm1377_vm2, %v8793_v33, %v3465_v10  ;;  %v4117_v4 = vpop.permute.xlu1 %4116  ;;  %v8902_v19 = vpop.permute.xlu0 %4118  ;;  %v11082_v10 = vld [vmem:[#allocation46_spill] sm:$0xff] }
 0x1a6   :  { %v1767_v47 = vpop.f32.mrf.mxu1  ;;  %v1820_v56 = vpop.f32.mrf.mxu0  ;;  %v1158_v27 = vadd.f32 %v8527_v1, %v11080_v31 }
 0x1a7   :  { %v8889_v28 = vadd.f32 %v1767_v47, %v8444_v61  ;;  %v8891_v57 = vadd.f32 %v1820_v56, %v1154_v38  ;;  %v3533_v61 = vsel %vm142_vm0, %v3484_v55, 0  ;;  %v3539_v38 = vsel %vm142_vm0, %v3486_v53, 0 }
 0x1a8   :  { %v1769_v37 = vpop.f32.mrf.mxu1  ;;  %v1822_v32 = vpop.f32.mrf.mxu0  ;;  %v1248_v56 = vadd.f32 %v8540_v2, %v11082_v10  ;;  %v3489_v55 = vsel %vm1377_vm2, %v8852_v39, %v3471_v9  ;;  %v4154_v53 = vsel %vm4152_vm3, %v4117_v4, %v8902_v19  ;;  %v11084_v2 = vld [vmem:[#allocation47_spill] sm:$0xff]  ;;  %v11086_v9 = vld [vmem:[#allocation48_spill] sm:$0xff] }
 0x1a9   :  { %v8898_v50 = vadd.f32 %v1769_v37, %v8449_v40  ;;  %v8900_v26 = vadd.f32 %v1822_v32, %v1156_v18  ;;  %v11085_v32 = vld [vmem:[#allocation75_spill] sm:$0xff]  ;;  %v1252_v10 = vadd.f32 %v8565_v11, %v11086_v9 }
 0x1aa   :  { %v1771_v47 = vpop.f32.mrf.mxu1  ;;  %v1824_v33 = vpop.f32.mrf.mxu0 }
 0x1ab   :  { %11081 = vst [vmem:[#allocation27_spill] sm:$0xff] %v8900_v26  ;;  %v8909_v1 = vadd.f32 %v1771_v47, %v8460_v5  ;;  %v8911_v40 = vadd.f32 %v1824_v33, %v1158_v27  ;;  %v1250_v5 = vadd.f32 %v8555_v51, %v11084_v2 }
 0x1ac   :  { %v1861_v18 = vpop.f32.mrf.mxu1  ;;  %v1914_v37 = vpop.f32.mrf.mxu0  ;;  %7166 = vmatmul.mubr.msk.bf16.vlgmr.msra.gmra.mxu1 %vm135_vm1, %v8712_v13  ;;  %7169 = vmatmul.mubr.msk.bf16.vlgmr.msra.gmra.mxu0 %vm135_vm1, %v8712_v13 }
 0x1ad   :  { %11083 = vst [vmem:[#allocation59_spill] sm:$0xff] %v8911_v40  ;;  %v8924_v31 = vadd.f32 %v1861_v18, %v11085_v32  ;;  %v8926_v27 = vadd.f32 %v1914_v37, %v1248_v56  ;;  %3883 = vmatpush1.bf16.msra.mxu1 %v3533_v61  ;;  %3936 = vmatpush1.bf16.msra.mxu0 %v3539_v38  ;;  %v11087_v40 = vld [vmem:[#allocation76_spill] sm:$0xff]  ;;  %v11089_v56 = vld [vmem:[#allocation49_spill] sm:$0xff] }
 0x1ae   :  { %v1863_v47 = vpop.f32.mrf.mxu1  ;;  %v1916_v33 = vpop.f32.mrf.mxu0  ;;  %3804 = vmatprep.mubr.bf16.mxu1 %v10953_v34  ;;  %3857 = vmatprep.mubr.bf16.mxu0 %v10953_v34  ;;  %v1254_v18 = vadd.f32 %v8575_v52, %v11089_v56  ;;  %v11090_v37 = vld [vmem:[#allocation77_spill] sm:$0xff]  ;;  %v11094_v52 = vld [vmem:[#allocation51_spill] sm:$0xff] }
 0x1af   :  { %v8933_v26 = vadd.f32 %v1863_v47, %v11087_v40  ;;  %v8935_v51 = vadd.f32 %v1916_v33, %v1250_v5  ;;  %7177 = vmatprep.subr.msk.bf16.mxu1 %vm142_vm0, %v3489_v55  ;;  %7186 = vmatprep.subr.msk.bf16.mxu0 %vm142_vm0, %v4154_v53  ;;  %v11091_v40 = vld [vmem:[#allocation50_spill] sm:$0xff]  ;;  %v4121_v56 = vpop.permute.xlu1 %4120 }
 0x1b0   :  { %v1865_v61 = vpop.f32.mrf.mxu1  ;;  %v1918_v38 = vpop.f32.mrf.mxu0  ;;  %v1258_v5 = vadd.f32 %v8581_v41, %v11091_v40  ;;  %v11092_v47 = vld [vmem:[#allocation78_spill] sm:$0xff]  ;;  %v11097_v40 = vld [vmem:[#allocation52_spill] sm:$0xff] }
 0x1b1   :  { %11088 = vst [vmem:[#allocation17_spill] sm:$0xff] %v8935_v51  ;;  %v8942_v2 = vadd.f32 %v1865_v61, %v11090_v37  ;;  %v8944_v32 = vadd.f32 %v1918_v38, %v1252_v10  ;;  %v1260_v10 = vadd.f32 %v8597_v6, %v11094_v52  ;;  %v11095_v61 = vld [vmem:[#allocation79_spill] sm:$0xff]  ;;  %v3488_v37 = vsel %vm1377_vm2, %v8814_v3, %v8852_v39 }
 0x1b2   :  { %v1867_v11 = vpop.f32.mrf.mxu1  ;;  %v1920_v9 = vpop.f32.mrf.mxu0  ;;  %v1262_v6 = vadd.f32 %v8612_v36, %v11097_v40 }
 0x1b3   :  { %v8949_v33 = vadd.f32 %v1867_v11, %v11092_v47  ;;  %v8951_v55 = vadd.f32 %v1920_v9, %v1254_v18  ;;  %v8966_v18 = vpop.permute.xlu0 %4122 }
 0x1b4   :  { %v1871_v53 = vpop.f32.mrf.mxu1  ;;  %v1924_v51 = vpop.f32.mrf.mxu0  ;;  %7167 = vmatmul.mubr.msk.bf16.gmra.mxu1 %vm135_vm1, %v8762_v35  ;;  %7170 = vmatmul.mubr.msk.bf16.gmra.mxu0 %vm135_vm1, %v8762_v35 }
 0x1b5   :  { %11093 = vst [vmem:[#allocation28_spill] sm:$0xff] %v8951_v55  ;;  %v8960_v38 = vadd.f32 %v1871_v53, %v11095_v61  ;;  %v8962_v41 = vadd.f32 %v1924_v51, %v1258_v5  ;;  %3900 = vmatprep.mubr.bf16.mxu1 %v10953_v34  ;;  %3953 = vmatprep.mubr.bf16.mxu0 %v10953_v34  ;;  %v11098_v61 = vld [vmem:[#allocation53_spill] sm:$0xff]  ;;  %v4125_v55 = vpop.permute.xlu1 %4124 }
 0x1b6   :  { %v1873_v11 = vpop.f32.mrf.mxu1  ;;  %v1926_v9 = vpop.f32.mrf.mxu0  ;;  %v4153_v5 = vsel %vm4152_vm3, %v8868_v20, %v4117_v4  ;;  %v11100_v20 = vld [vmem:[#allocation80_spill] sm:$0xff] }
 0x1b7   :  { %11096 = vst [vmem:[#allocation71_spill] sm:$0xff] %v8962_v41  ;;  %v8974_v47 = vadd.f32 %v1873_v11, %v8518_v59  ;;  %v8976_v51 = vadd.f32 %v1926_v9, %v1260_v10  ;;  %v1264_v41 = vadd.f32 %v8622_v25, %v11098_v61  ;;  %v8987_v36 = vpop.permute.xlu0 %4126  ;;  %v3545_v59 = vsel %vm142_vm0, %v3488_v37, 0 }
 0x1b8   :  { %v1875_v53 = vpop.f32.mrf.mxu1  ;;  %v1928_v52 = vpop.f32.mrf.mxu0  ;;  %v4178_v10 = vsel %vm142_vm0, %v4153_v5, 0  ;;  %v4158_v37 = vsel %vm4152_vm3, %v4125_v55, %v8987_v36 }
 0x1b9   :  { %v8983_v3 = vadd.f32 %v1875_v53, %v8523_v22  ;;  %v8985_v39 = vadd.f32 %v1928_v52, %v1262_v6  ;;  %v4156_v22 = vsel %vm4152_vm3, %v4121_v56, %v8966_v18  ;;  %v11102_v6 = vld [vmem:[#allocation81_spill] sm:$0xff] }
 0x1ba   :  { %v1877_v11 = vpop.f32.mrf.mxu1  ;;  %v1930_v9 = vpop.f32.mrf.mxu0 }
 0x1bb   :  { %11099 = vst [vmem:[#allocation61_spill] sm:$0xff] %v8985_v39  ;;  %v8992_v4 = vadd.f32 %v1877_v11, %v11100_v20  ;;  %v8994_v40 = vadd.f32 %v1930_v9, %v1264_v41  ;;  %v11104_v11 = vld [vmem:[#allocation82_spill] sm:$0xff] }
 0x1bc   :  { %v2168_v25 = vpop.f32.mrf.mxu1  ;;  %v2221_v61 = vpop.f32.mrf.mxu0  ;;  %7172 = vmatmul.mubr.msk.bf16.vlgmr.msra.gmra.mxu1 %vm135_vm1, %v8712_v13  ;;  %7175 = vmatmul.mubr.msk.bf16.vlgmr.msra.gmra.mxu0 %vm135_vm1, %v8712_v13 }
 0x1bd   :  { %11101 = vst [vmem:[#allocation29_spill] sm:$0xff] %v8994_v40  ;;  %v9005_v5 = vadd.f32 %v2168_v25, %v11102_v6  ;;  %v9008_v41 = vadd.f32 %v2221_v61, %v8644_v54  ;;  %3989 = vmatpush1.bf16.msra.mxu1 %v3545_v59  ;;  %4246 = vmatpush1.bf16.msra.mxu0 %v4178_v10  ;;  %v11106_v59 = vld [vmem:[#allocation83_spill] sm:$0xff]  ;;  %v11108_v40 = vld [vmem:[#allocation18_spill] sm:$0xff] }
 0x1be   :  { %v2170_v53 = vpop.f32.mrf.mxu1  ;;  %v2223_v52 = vpop.f32.mrf.mxu0  ;;  %3910 = vmatprep.mubr.bf16.mxu1 %v10953_v34  ;;  %3963 = vmatprep.mubr.bf16.mxu0 %v10953_v34 }
 0x1bf   :  { %11103 = vst [vmem:[#allocation63_spill] sm:$0xff] %v9008_v41  ;;  %v9013_v9 = vadd.f32 %v2170_v53, %v11104_v11  ;;  %v9016_v20 = vadd.f32 %v2223_v52, %v8653_v21  ;;  %7189 = vmatprep.subr.msk.bf16.mxu1 %vm142_vm0, %v4156_v22  ;;  %7192 = vmatprep.subr.msk.bf16.mxu0 %vm142_vm0, %v4158_v37  ;;  %v11110_v37 = vld [vmem:[#allocation58_spill] sm:$0xff] }
 0x1c0   :  { %v2172_v54 = vpop.f32.mrf.mxu1  ;;  %v2225_v25 = vpop.f32.mrf.mxu0 }
 0x1c1   :  { %11105 = vst [vmem:[#allocation30_spill] sm:$0xff] %v9016_v20  ;;  %v9021_v10 = vadd.f32 %v2172_v54, %v11106_v59  ;;  %v9024_v61 = vadd.f32 %v2225_v25, %v8666_v43  ;;  %v4155_v25 = vsel %vm4152_vm3, %v8902_v19, %v4121_v56  ;;  %v11112_v59 = vld [vmem:[#allocation19_spill] sm:$0xff] }
 0x1c2   :  { %v2174_v6 = vpop.f32.mrf.mxu1  ;;  %v2227_v41 = vpop.f32.mrf.mxu0 }
 0x1c3   :  { %11107 = vst [vmem:[#allocation64_spill] sm:$0xff] %v9024_v61  ;;  %v9027_v53 = vadd.f32 %v2174_v6, %v11108_v40  ;;  %v9030_v21 = vadd.f32 %v2227_v41, %v8673_v8  ;;  %v4129_v8 = vpop.permute.xlu1 %4128  ;;  %v9044_v40 = vpop.permute.xlu0 %4130  ;;  %v11115_v61 = vld [vmem:[#allocation60_spill] sm:$0xff] }
 0x1c4   :  { %v2178_v52 = vpop.f32.mrf.mxu1  ;;  %v2231_v22 = vpop.f32.mrf.mxu0  ;;  %7173 = vmatmul.mubr.msk.bf16.gmra.mxu1 %vm135_vm1, %v8762_v35  ;;  %7176 = vmatmul.mubr.msk.bf16.gmra.mxu0 %vm135_vm1, %v8762_v35 }
 0x1c5   :  { %11109 = vst [vmem:[#allocation31_spill] sm:$0xff] %v9030_v21  ;;  %v9037_v11 = vadd.f32 %v2178_v52, %v11110_v37  ;;  %v9040_v43 = vadd.f32 %v2231_v22, %v8684_v14  ;;  %4006 = vmatprep.mubr.bf16.mxu1 %v10953_v34  ;;  %4263 = vmatprep.mubr.bf16.mxu0 %v10953_v34  ;;  %v11113_v52 = vld [vmem:[#allocation14_spill] sm:$0xff]  ;;  %v9059_v21 = vld [vmem:[%s10895_s1 + $0x60] sm:$0xff]  }
 0x1c6   :  { %v2180_v41 = vpop.f32.mrf.mxu1  ;;  %v2233_v54 = vpop.f32.mrf.mxu0  ;;  %v4157_v14 = vsel %vm4152_vm3, %v8966_v18, %v4125_v55 }
 0x1c7   :  { %11111 = vst [vmem:[#allocation65_spill] sm:$0xff] %v9040_v43  ;;  %v9049_v6 = vadd.f32 %v2180_v41, %v11112_v59  ;;  %v9052_v37 = vadd.f32 %v2233_v54, %v11113_v52  ;;  %v4133_v56 = vpop.permute.xlu1 %4132  ;;  %v9067_v41 = vpop.permute.xlu0 %4134  ;;  %v4184_v54 = vsel %vm142_vm0, %v4155_v25, 0  ;;  %v4190_v55 = vsel %vm142_vm0, %v4157_v14, 0  ;;  %v11117_v52 = vld [vmem:[#allocation11_spill] sm:$0xff]  ;;  %v11119_v25 = vld [vmem:[#allocation12_spill] sm:$0xff] }
 0x1c8   :  { %v2182_v22 = vpop.f32.mrf.mxu1  ;;  %v2235_v43 = vpop.f32.mrf.mxu0 }
 0x1c9   :  { %11114 = vst [vmem:[#allocation32_spill] sm:$0xff] %v9052_v37  ;;  %v9062_v20 = vadd.f32 %v2182_v22, %v11115_v61  ;;  %v9065_v19 = vadd.f32 %v2235_v43, %v8717_v58  ;;  %v4160_v58 = vsel %vm4152_vm3, %v4129_v8, %v9044_v40  ;;  %v4162_v43 = vsel %vm4152_vm3, %v4133_v56, %v9067_v41 }
 0x1ca   :  { %v2184_v18 = vpop.f32.mrf.mxu1  ;;  %v2237_v59 = vpop.f32.mrf.mxu0 }
 0x1cb   :  { %11116 = vst [vmem:[#allocation66_spill] sm:$0xff] %v9065_v19  ;;  %v9072_v37 = vadd.f32 %v2184_v18, %v11117_v52  ;;  %v9075_v39 = vadd.f32 %v2237_v59, %v8728_v48 }
 0x1cc   :  { %v2274_v61 = vpop.f32.mrf.mxu1  ;;  %v2327_v22 = vpop.f32.mrf.mxu0  ;;  %7178 = vmatmul.mubr.msk.bf16.vlgmr.msra.gmra.mxu1 %vm135_vm1, %v8712_v13  ;;  %7187 = vmatmul.mubr.msk.bf16.vlgmr.msra.gmra.mxu0 %vm135_vm1, %v9059_v21  ;;  %v11121_v13 = vld [vmem:[#allocation20_spill] sm:$0xff] }
 0x1cd   :  { %11118 = vst [vmem:[#allocation33_spill] sm:$0xff] %v9075_v39  ;;  %v9086_v14 = vadd.f32 %v2274_v61, %v11119_v25  ;;  %v9089_v48 = vadd.f32 %v2327_v22, %v8744_v7  ;;  %4299 = vmatpush1.bf16.msra.mxu1 %v4184_v54  ;;  %4352 = vmatpush1.bf16.msra.mxu0 %v4190_v55  ;;  %v9104_v54 = vld [vmem:[%s10895_s1 + $0x68] sm:$0xff]   ;;  %v11123_v55 = vld [vmem:[#allocation62_spill] sm:$0xff] }
 0x1ce   :  { %v2276_v18 = vpop.f32.mrf.mxu1  ;;  %v2329_v59 = vpop.f32.mrf.mxu0  ;;  %4016 = vmatprep.mubr.bf16.mxu1 %v10953_v34  ;;  %4273 = vmatprep.mubr.bf16.mxu0 %v10953_v34 }
 0x1cf   :  { %11120 = vst [vmem:[#allocation67_spill] sm:$0xff] %v9089_v48  ;;  %v9094_v52 = vadd.f32 %v2276_v18, %v11121_v13  ;;  %v9097_v39 = vadd.f32 %v2329_v59, %v8753_v12  ;;  %7195 = vmatprep.subr.msk.bf16.mxu1 %vm142_vm0, %v4160_v58  ;;  %7198 = vmatprep.subr.msk.bf16.mxu0 %vm142_vm0, %v4162_v43  ;;  %v11125_v59 = vld [vmem:[#allocation21_spill] sm:$0xff] }
 0x1d0   :  { %v2278_v7 = vpop.f32.mrf.mxu1  ;;  %v2331_v61 = vpop.f32.mrf.mxu0 }
 0x1d1   :  { %11122 = vst [vmem:[#allocation34_spill] sm:$0xff] %v9097_v39  ;;  %v9107_v22 = vadd.f32 %v2278_v7, %v11123_v55  ;;  %v9110_v25 = vadd.f32 %v2331_v61, %v8767_v42  ;;  %v11127_v7 = vld [vmem:[#allocation13_spill] sm:$0xff]  ;;  %v4139_v61 = vpop.permute.xlu0 %4138 }
 0x1d2   :  { %v2280_v18 = vpop.f32.mrf.mxu1  ;;  %v2333_v12 = vpop.f32.mrf.mxu0 }
 0x1d3   :  { %11124 = vst [vmem:[#allocation68_spill] sm:$0xff] %v9110_v25  ;;  %v9113_v13 = vadd.f32 %v2280_v18, %v11125_v59  ;;  %v9116_v58 = vadd.f32 %v2333_v12, %v8774_v29  ;;  %v4137_v29 = vpop.permute.xlu1 %4136  ;;  %v11130_v59 = vld [vmem:[#allocation22_spill] sm:$0xff] }
 0x1d4   :  { %v2284_v43 = vpop.f32.mrf.mxu1  ;;  %v2337_v39 = vpop.f32.mrf.mxu0  ;;  %7179 = vmatmul.mubr.msk.bf16.gmra.mxu1 %vm135_vm1, %v8762_v35  ;;  %7188 = vmatmul.mubr.msk.bf16.gmra.mxu0 %vm135_vm1, %v9104_v54  ;;  %v4159_v35 = vsel %vm4152_vm3, %v8987_v36, %v4129_v8 }
 0x1d5   :  { %11126 = vst [vmem:[#allocation35_spill] sm:$0xff] %v9116_v58  ;;  %v9123_v55 = vadd.f32 %v2284_v43, %v11127_v7  ;;  %v9126_v42 = vadd.f32 %v2337_v39, %v8785_v45  ;;  %4316 = vmatprep.mubr.bf16.mxu1 %v10953_v34  ;;  %4369 = vmatprep.mubr.bf16.mxu0 %v10953_v34  ;;  %v4196_v36 = vsel %vm142_vm0, %v4159_v35, 0 }
 0x1d6   :  { %v2286_v18 = vpop.f32.mrf.mxu1  ;;  %v2339_v12 = vpop.f32.mrf.mxu0  ;;  %v4161_v45 = vsel %vm4152_vm3, %v9044_v40, %v4133_v56 }
 0x1d7   :  { %11128 = vst [vmem:[#allocation69_spill] sm:$0xff] %v9123_v55  ;;  %11129 = vst [vmem:[#allocation36_spill] sm:$0xff] %v9126_v42  ;;  %v9133_v58 = vadd.f32 %v2286_v18, %v11130_v59  ;;  %v9136_v43 = vadd.f32 %v2339_v12, %v8801_v49  ;;  %v11131_v42 = vld [vmem:[#allocation23_spill] sm:$0xff]  ;;  %v4141_v19 = vpop.permute.xlu1 %4140  ;;  %v9146_v55 = vpop.permute.xlu0 %4142  ;;  %v4202_v8 = vsel %vm142_vm0, %v4161_v45, 0  ;;  %v11133_v12 = vld [vmem:[#allocation54_spill] sm:$0xff] }
 0x1d8   :  { %v2288_v39 = vpop.f32.mrf.mxu1  ;;  %v2341_v7 = vpop.f32.mrf.mxu0  ;;  %v4166_v35 = vsel %vm4152_vm3, %v4141_v19, %v9146_v55  ;;  %v11135_v45 = vld [vmem:[#allocation24_spill] sm:$0xff] }
 0x1d9   :  { %v9141_v25 = vadd.f32 %v2288_v39, %v11131_v42  ;;  %v9144_v48 = vadd.f32 %v2341_v7, %v8810_v30  ;;  %v4164_v30 = vsel %vm4152_vm3, %v4137_v29, %v4139_v61 }
 0x1da   :  { %v2290_v49 = vpop.f32.mrf.mxu1  ;;  %v2343_v18 = vpop.f32.mrf.mxu0 }
 0x1db   :  { %11132 = vst [vmem:[#allocation70_spill] sm:$0xff] %v9144_v48  ;;  %v9151_v59 = vadd.f32 %v2290_v49, %v11133_v12  ;;  %v9154_v40 = vadd.f32 %v2343_v18, %v8821_v63  ;;  %v11137_v18 = vld [vmem:[#allocation55_spill] sm:$0xff]  ;;  %v11140_v48 = vld [vmem:[#allocation16_spill] sm:$0xff] }
 0x1dc   :  { %v2380_v56 = vpop.f32.mrf.mxu1  ;;  %v2433_v42 = vpop.f32.mrf.mxu0  ;;  %7190 = vmatmul.mubr.msk.bf16.vlgmr.msra.gmra.mxu1 %vm135_vm1, %v9059_v21  ;;  %7193 = vmatmul.mubr.msk.bf16.vlgmr.msra.gmra.mxu0 %vm135_vm1, %v9059_v21 }
 0x1dd   :  { %11134 = vst [vmem:[#allocation37_spill] sm:$0xff] %v9154_v40  ;;  %v9164_v39 = vadd.f32 %v2380_v56, %v11135_v45  ;;  %v9167_v7 = vadd.f32 %v2433_v42, %v8837_v62  ;;  %4405 = vmatpush1.bf16.msra.mxu1 %v4196_v36  ;;  %4458 = vmatpush1.bf16.msra.mxu0 %v4202_v8  ;;  %v11138_v36 = vld [vmem:[#allocation15_spill] sm:$0xff] }
 0x1de   :  { %v2382_v63 = vpop.f32.mrf.mxu1  ;;  %v2435_v49 = vpop.f32.mrf.mxu0  ;;  %4326 = vmatprep.mubr.bf16.mxu1 %v10953_v34  ;;  %4379 = vmatprep.mubr.bf16.mxu0 %v10953_v34 }
 0x1df   :  { %11136 = vst [vmem:[#allocation38_spill] sm:$0xff] %v9167_v7  ;;  %v9172_v12 = vadd.f32 %v2382_v63, %v11137_v18  ;;  %v9175_v40 = vadd.f32 %v2435_v49, %v8846_v46  ;;  %7201 = vmatprep.subr.msk.bf16.mxu1 %vm142_vm0, %v4164_v30  ;;  %7204 = vmatprep.subr.msk.bf16.mxu0 %vm142_vm0, %v4166_v35  ;;  %v11142_v35 = vld [vmem:[#allocation25_spill] sm:$0xff] }
 0x1e0   :  { %v2384_v62 = vpop.f32.mrf.mxu1  ;;  %v2437_v56 = vpop.f32.mrf.mxu0 }
 0x1e1   :  { %v9180_v8 = vadd.f32 %v2384_v62, %v11138_v36  ;;  %v9183_v42 = vadd.f32 %v2437_v56, %v8857_v16  ;;  %v4163_v56 = vsel %vm4152_vm3, %v9067_v41, %v4137_v29 }
 0x1e2   :  { %v2386_v45 = vpop.f32.mrf.mxu1  ;;  %v2439_v7 = vpop.f32.mrf.mxu0  ;;  %v4208_v41 = vsel %vm142_vm0, %v4163_v56, 0 }
 0x1e3   :  { %11139 = vst [vmem:[#allocation39_spill] sm:$0xff] %v9183_v42  ;;  %v9186_v63 = vadd.f32 %v2386_v45, %v11140_v48  ;;  %v9189_v46 = vadd.f32 %v2439_v7, %v8864_v60  ;;  %v4145_v60 = vpop.permute.xlu1 %4144  ;;  %v4147_v48 = vpop.permute.xlu0 %4146 }
 0x1e4   :  { %v2390_v49 = vpop.f32.mrf.mxu1  ;;  %v2443_v30 = vpop.f32.mrf.mxu0  ;;  %7191 = vmatmul.mubr.msk.bf16.gmra.mxu1 %vm135_vm1, %v9104_v54  ;;  %7194 = vmatmul.mubr.msk.bf16.gmra.mxu0 %vm135_vm1, %v9104_v54 }
 0x1e5   :  { %11141 = vst [vmem:[#allocation40_spill] sm:$0xff] %v9189_v46  ;;  %v9196_v18 = vadd.f32 %v2390_v49, %v11142_v35  ;;  %v9199_v16 = vadd.f32 %v2443_v30, %v8877_v17  ;;  %4422 = vmatprep.mubr.bf16.mxu1 %v10953_v34  ;;  %4475 = vmatprep.mubr.bf16.mxu0 %v10953_v34 }
 0x1e6   :  { %v2392_v7 = vpop.f32.mrf.mxu1  ;;  %v2445_v62 = vpop.f32.mrf.mxu0  ;;  %v4165_v17 = vsel %vm4152_vm3, %v4139_v61, %v4141_v19 }
 0x1e7   :  { %11143 = vst [vmem:[#allocation41_spill] sm:$0xff] %v9199_v16  ;;  %v9206_v36 = vadd.f32 %v2392_v7, %v8803_v24  ;;  %v9209_v45 = vadd.f32 %v2445_v62, %v8889_v28  ;;  %v4149_v46 = vpop.permute.xlu1 %4148  ;;  %v4151_v42 = vpop.permute.xlu0 %4150  ;;  %v4214_v24 = vsel %vm142_vm0, %v4165_v17, 0  ;;  %v11144_v28 = vld [vmem:[#allocation56_spill] sm:$0xff]  ;;  %v11146_v17 = vld [vmem:[#allocation26_spill] sm:$0xff] }
 0x1e8   :  { %v2394_v49 = vpop.f32.mrf.mxu1  ;;  %v2447_v30 = vpop.f32.mrf.mxu0  ;;  %v4170_v56 = vsel %vm4152_vm3, %v4149_v46, %v4151_v42 }
 0x1e9   :  { %v9213_v35 = vadd.f32 %v2394_v49, %v8812_v44  ;;  %v9216_v16 = vadd.f32 %v2447_v30, %v8898_v50  ;;  %v4168_v50 = vsel %vm4152_vm3, %v4145_v60, %v4147_v48 }
 0x1ea   :  { %v2396_v29 = vpop.f32.mrf.mxu1  ;;  %v2449_v7 = vpop.f32.mrf.mxu0 }
 0x1eb   :  { %v9221_v62 = vadd.f32 %v2396_v29, %v11144_v28  ;;  %v9224_v19 = vadd.f32 %v2449_v7, %v8909_v1  ;;  %v9238_v1 = vpop.permute.xlu1 %4853  ;;  %v11147_v28 = vld [vmem:[#allocation57_spill] sm:$0xff] }
 0x1ec   :  { %v2486_v61 = vpop.f32.mrf.mxu1  ;;  %v2539_v44 = vpop.f32.mrf.mxu0  ;;  %7196 = vmatmul.mubr.msk.bf16.vlgmr.msra.gmra.mxu1 %vm135_vm1, %v9059_v21  ;;  %7199 = vmatmul.mubr.msk.bf16.vlgmr.msra.gmra.mxu0 %vm135_vm1, %v9059_v21 }
 0x1ed   :  { %11145 = vst [vmem:[#allocation72_spill] sm:$0xff] %v9224_v19  ;;  %v9233_v49 = vadd.f32 %v2486_v61, %v11146_v17  ;;  %v9236_v30 = vadd.f32 %v2539_v44, %v8924_v31  ;;  %4511 = vmatpush1.bf16.msra.mxu1 %v4208_v41  ;;  %4564 = vmatpush1.bf16.msra.mxu0 %v4214_v24 }
 0x1ee   :  { %v2488_v29 = vpop.f32.mrf.mxu1  ;;  %v2541_v7 = vpop.f32.mrf.mxu0  ;;  %4432 = vmatprep.mubr.bf16.mxu1 %v10953_v34  ;;  %4485 = vmatprep.mubr.bf16.mxu0 %v10953_v34 }
 0x1ef   :  { %v9243_v19 = vadd.f32 %v2488_v29, %v11147_v28  ;;  %v9246_v42 = vadd.f32 %v2541_v7, %v8933_v26  ;;  %7207 = vmatprep.subr.msk.bf16.mxu1 %vm142_vm0, %v4168_v50  ;;  %7210 = vmatprep.subr.msk.bf16.mxu0 %vm142_vm0, %v4170_v56  ;;  %v9262_v7 = vpop.permute.xlu1 %4857  ;;  %v9264_v50 = vpop.permute.xlu0 %4855 }
 0x1f0   :  { %v2490_v31 = vpop.f32.mrf.mxu1  ;;  %v2543_v41 = vpop.f32.mrf.mxu0 }
 0x1f1   :  { %v9251_v24 = vadd.f32 %v2490_v31, %v8859_v23  ;;  %v9254_v61 = vadd.f32 %v2543_v41, %v8942_v2  ;;  %v4167_v31 = vsel %vm4152_vm3, %v9146_v55, %v4145_v60 }
 0x1f2   :  { %v2492_v44 = vpop.f32.mrf.mxu1  ;;  %v2545_v17 = vpop.f32.mrf.mxu0  ;;  %v4220_v55 = vsel %vm142_vm0, %v4167_v31, 0 }
 0x1f3   :  { %11148 = vst [vmem:[#allocation42_spill] sm:$0xff] %v9254_v61  ;;  %v9257_v29 = vadd.f32 %v2492_v44, %v8866_v15  ;;  %v9260_v26 = vadd.f32 %v2545_v17, %v8949_v33  ;;  %v4860_v61 = vpop.permute.xlu0 %4859 }
 0x1f4   :  { %v2496_v56 = vpop.f32.mrf.mxu1  ;;  %v2549_v28 = vpop.f32.mrf.mxu0  ;;  %7197 = vmatmul.mubr.msk.bf16.gmra.mxu1 %vm135_vm1, %v9104_v54  ;;  %7200 = vmatmul.mubr.msk.bf16.gmra.mxu0 %vm135_vm1, %v9104_v54 }
 0x1f5   :  { %11149 = vst [vmem:[#allocation73_spill] sm:$0xff] %v9260_v26  ;;  %v9271_v23 = vadd.f32 %v2496_v56, %v8879_v0  ;;  %v9274_v15 = vadd.f32 %v2549_v28, %v8960_v38  ;;  %4528 = vmatprep.mubr.bf16.mxu1 %v10953_v34  ;;  %4581 = vmatprep.mubr.bf16.mxu0 %v10953_v34  ;;  %v11151_v56 = vld [vmem:[#allocation27_spill] sm:$0xff]  ;;  %v9293_v26 = vpop.permute.xlu1 %4861 }
 0x1f6   :  { %v2498_v2 = vpop.f32.mrf.mxu1  ;;  %v2551_v33 = vpop.f32.mrf.mxu0  ;;  %v4169_v0 = vsel %vm4152_vm3, %v4147_v48, %v4149_v46  ;;  %v4894_v31 = vsel %vm4152_vm3, %v4860_v61, %v9293_v26 }
 0x1f7   :  { %11150 = vst [vmem:[#allocation43_spill] sm:$0xff] %v9274_v15  ;;  %v9281_v41 = vadd.f32 %v2498_v2, %v8891_v57  ;;  %v9284_v44 = vadd.f32 %v2551_v33, %v8974_v47  ;;  %v4226_v57 = vsel %vm142_vm0, %v4169_v0, 0  ;;  %v11152_v2 = vld [vmem:[#allocation59_spill] sm:$0xff] }
 0x1f8   :  { %v2500_v17 = vpop.f32.mrf.mxu1  ;;  %v2553_v38 = vpop.f32.mrf.mxu0 }
 0x1f9   :  { %v9288_v28 = vadd.f32 %v2500_v17, %v11151_v56  ;;  %v9291_v15 = vadd.f32 %v2553_v38, %v8983_v3  ;;  %v4892_v3 = vsel %vm4152_vm3, %v9264_v50, %v9262_v7 }
 0x1fa   :  { %v2502_v60 = vpop.f32.mrf.mxu1  ;;  %v2555_v47 = vpop.f32.mrf.mxu0 }
 0x1fb   :  { %v9298_v33 = vadd.f32 %v2502_v60, %v11152_v2  ;;  %v9301_v46 = vadd.f32 %v2555_v47, %v8992_v4  ;;  %v11154_v60 = vld [vmem:[#allocation17_spill] sm:$0xff] }
 0x1fc   :  { %v2592_v48 = vpop.f32.mrf.mxu1  ;;  %v2846_v17 = vpop.f32.mrf.mxu0  ;;  %7202 = vmatmul.mubr.msk.bf16.vlgmr.msra.gmra.mxu1 %vm135_vm1, %v9059_v21  ;;  %7205 = vmatmul.mubr.msk.bf16.vlgmr.msra.gmra.mxu0 %vm135_vm1, %v9059_v21 }
 0x1fd   :  { %v9313_v0 = vadd.f32 %v2592_v48, %v8926_v27  ;;  %v9316_v4 = vadd.f32 %v2846_v17, %v9005_v5  ;;  %4617 = vmatpush1.bf16.msra.mxu1 %v4220_v55  ;;  %4670 = vmatpush1.bf16.msra.mxu0 %v4226_v57 }
 0x1fe   :  { %v2594_v38 = vpop.f32.mrf.mxu1  ;;  %v2848_v56 = vpop.f32.mrf.mxu0  ;;  %4538 = vmatprep.mubr.bf16.mxu1 %v10953_v34  ;;  %4591 = vmatprep.mubr.bf16.mxu0 %v10953_v34 }
 0x1ff   :  { %11153 = vst [vmem:[#allocation74_spill] sm:$0xff] %v9316_v4  ;;  %v9321_v47 = vadd.f32 %v2594_v38, %v11154_v60  ;;  %v9324_v2 = vadd.f32 %v2848_v56, %v9013_v9  ;;  %7238 = vmatprep.subr.msk.bf16.mxu1 %vm142_vm0, %v4892_v3  ;;  %7241 = vmatprep.subr.msk.bf16.mxu0 %vm142_vm0, %v4894_v31  ;;  %v11156_v4 = vld [vmem:[#allocation28_spill] sm:$0xff] }
 0x200   :  { %v2596_v27 = vpop.f32.mrf.mxu1  ;;  %v2850_v5 = vpop.f32.mrf.mxu0 }
 0x201   :  { %v9329_v55 = vadd.f32 %v2596_v27, %v8944_v32  ;;  %v9332_v57 = vadd.f32 %v2850_v5, %v9021_v10  ;;  %v11158_v32 = vld [vmem:[#allocation71_spill] sm:$0xff]  ;;  %v4891_v5 = vsel %vm4152_vm3, %v9238_v1, %v9264_v50 }
 0x202   :  { %v2598_v48 = vpop.f32.mrf.mxu1  ;;  %v2852_v17 = vpop.f32.mrf.mxu0 }
 0x203   :  { %11155 = vst [vmem:[#allocation44_spill] sm:$0xff] %v9332_v57  ;;  %v9335_v38 = vadd.f32 %v2598_v48, %v11156_v4  ;;  %v9338_v9 = vadd.f32 %v2852_v17, %v9027_v53  ;;  %v4864_v53 = vpop.permute.xlu0 %4863  ;;  %v4866_v4 = vpop.permute.xlu1 %4865 }
 0x204   :  { %v2602_v56 = vpop.f32.mrf.mxu1  ;;  %v2856_v3 = vpop.f32.mrf.mxu0  ;;  %7203 = vmatmul.mubr.msk.bf16.gmra.mxu1 %vm135_vm1, %v9104_v54  ;;  %7206 = vmatmul.mubr.msk.bf16.gmra.mxu0 %vm135_vm1, %v9104_v54 }
 0x205   :  { %11157 = vst [vmem:[#allocation45_spill] sm:$0xff] %v9338_v9  ;;  %v9345_v31 = vadd.f32 %v2602_v56, %v11158_v32  ;;  %v9348_v10 = vadd.f32 %v2856_v3, %v9037_v11  ;;  %4634 = vmatprep.mubr.bf16.mxu1 %v10953_v34  ;;  %4687 = vmatprep.mubr.bf16.mxu0 %v10953_v34  ;;  %v11161_v32 = vld [vmem:[#allocation61_spill] sm:$0xff] }
 0x206   :  { %v2604_v60 = vpop.f32.mrf.mxu1  ;;  %v2858_v27 = vpop.f32.mrf.mxu0  ;;  %v4893_v11 = vsel %vm4152_vm3, %v9262_v7, %v4860_v61 }
 0x207   :  { %11159 = vst [vmem:[#allocation46_spill] sm:$0xff] %v9348_v10  ;;  %v9356_v48 = vadd.f32 %v2604_v60, %v8976_v51  ;;  %v9359_v17 = vadd.f32 %v2858_v27, %v9049_v6  ;;  %v9369_v57 = vpop.permute.xlu1 %4869  ;;  %v4868_v1 = vpop.permute.xlu0 %4867  ;;  %v4916_v51 = vsel %vm142_vm0, %v4891_v5, 0  ;;  %v4922_v50 = vsel %vm142_vm0, %v4893_v11, 0  ;;  %v11162_v27 = vld [vmem:[#allocation29_spill] sm:$0xff]  ;;  %v11164_v11 = vld [vmem:[#allocation63_spill] sm:$0xff] }
 0x208   :  { %v2606_v56 = vpop.f32.mrf.mxu1  ;;  %v2860_v3 = vpop.f32.mrf.mxu0  ;;  %v4898_v5 = vsel %vm4152_vm3, %v4868_v1, %v9369_v57 }
 0x209   :  { %11160 = vst [vmem:[#allocation47_spill] sm:$0xff] %v9359_v17  ;;  %v9364_v10 = vadd.f32 %v2606_v56, %v11161_v32  ;;  %v9367_v9 = vadd.f32 %v2860_v3, %v9062_v20  ;;  %v4896_v20 = vsel %vm4152_vm3, %v4864_v53, %v4866_v4 }
 0x20a   :  { %v2608_v6 = vpop.f32.mrf.mxu1  ;;  %v2862_v60 = vpop.f32.mrf.mxu0 }
 0x20b   :  { %v9374_v17 = vadd.f32 %v2608_v6, %v11162_v27  ;;  %v9377_v61 = vadd.f32 %v2862_v60, %v9072_v37 }
 0x20c   :  { %v2899_v7 = vpop.f32.mrf.mxu1  ;;  %v2952_v56 = vpop.f32.mrf.mxu0  ;;  %7208 = vmatmul.mubr.msk.bf16.vlgmr.msra.gmra.mxu1 %vm135_vm1, %v9059_v21  ;;  %7211 = vmatmul.mubr.msk.bf16.vlgmr.msra.gmra.mxu0 %vm135_vm1, %v9059_v21  ;;  %v11166_v21 = vld [vmem:[#allocation30_spill] sm:$0xff] }
 0x20d   :  { %11163 = vst [vmem:[#allocation75_spill] sm:$0xff] %v9377_v61  ;;  %v9387_v3 = vadd.f32 %v2899_v7, %v11164_v11  ;;  %v9390_v32 = vadd.f32 %v2952_v56, %v9086_v14  ;;  %4984 = vmatpush1.bf16.msra.mxu1 %v4916_v51  ;;  %5037 = vmatpush1.bf16.msra.mxu0 %v4922_v50  ;;  %v11168_v51 = vld [vmem:[#allocation64_spill] sm:$0xff]  ;;  %v11170_v61 = vld [vmem:[#allocation31_spill] sm:$0xff] }
 0x20e   :  { %v2901_v37 = vpop.f32.mrf.mxu1  ;;  %v2954_v6 = vpop.f32.mrf.mxu0  ;;  %4644 = vmatprep.mubr.bf16.mxu1 %v10953_v34  ;;  %4697 = vmatprep.mubr.bf16.mxu0 %v10953_v34 }
 0x20f   :  { %11165 = vst [vmem:[#allocation48_spill] sm:$0xff] %v9390_v32  ;;  %v9395_v60 = vadd.f32 %v2901_v37, %v11166_v21  ;;  %v9398_v27 = vadd.f32 %v2954_v6, %v9094_v52  ;;  %7244 = vmatprep.subr.msk.bf16.mxu1 %vm142_vm0, %v4896_v20  ;;  %7247 = vmatprep.subr.msk.bf16.mxu0 %vm142_vm0, %v4898_v5  ;;  %v11172_v5 = vld [vmem:[#allocation65_spill] sm:$0xff] }
 0x210   :  { %v2903_v14 = vpop.f32.mrf.mxu1  ;;  %v2956_v7 = vpop.f32.mrf.mxu0 }
 0x211   :  { %11167 = vst [vmem:[#allocation76_spill] sm:$0xff] %v9398_v27  ;;  %v9403_v50 = vadd.f32 %v2903_v14, %v11168_v51  ;;  %v9406_v56 = vadd.f32 %v2956_v7, %v9107_v22  ;;  %v11173_v22 = vld [vmem:[#allocation69_spill] sm:$0xff]  ;;  %v4895_v51 = vsel %vm4152_vm3, %v9293_v26, %v4864_v53 }
 0x212   :  { %v2905_v11 = vpop.f32.mrf.mxu1  ;;  %v2958_v32 = vpop.f32.mrf.mxu0 }
 0x213   :  { %11169 = vst [vmem:[#allocation49_spill] sm:$0xff] %v9406_v56  ;;  %v9409_v37 = vadd.f32 %v2905_v11, %v11170_v61  ;;  %v9412_v52 = vadd.f32 %v2958_v32, %v9113_v13  ;;  %v9426_v13 = vpop.permute.xlu0 %4871  ;;  %v9428_v61 = vpop.permute.xlu1 %4873 }
 0x214   :  { %v2909_v6 = vpop.f32.mrf.mxu1  ;;  %v2962_v20 = vpop.f32.mrf.mxu0  ;;  %7209 = vmatmul.mubr.msk.bf16.gmra.mxu1 %vm135_vm1, %v9104_v54  ;;  %7212 = vmatmul.mubr.msk.bf16.gmra.mxu0 %vm135_vm1, %v9104_v54  ;;  %v11175_v54 = vld [vmem:[#allocation32_spill] sm:$0xff] }
 0x215   :  { %11171 = vst [vmem:[#allocation77_spill] sm:$0xff] %v9412_v52  ;;  %v9419_v21 = vadd.f32 %v2909_v6, %v11172_v5  ;;  %v9422_v14 = vadd.f32 %v2962_v20, %v11173_v22  ;;  %5001 = vmatprep.mubr.bf16.mxu1 %v10953_v34  ;;  %5054 = vmatprep.mubr.bf16.mxu0 %v10953_v34  ;;  %v11177_v52 = vld [vmem:[#allocation66_spill] sm:$0xff] }
 0x216   :  { %v2911_v32 = vpop.f32.mrf.mxu1  ;;  %v2964_v7 = vpop.f32.mrf.mxu0  ;;  %v4897_v20 = vsel %vm4152_vm3, %v4866_v4, %v4868_v1 }
 0x217   :  { %11174 = vst [vmem:[#allocation50_spill] sm:$0xff] %v9422_v14  ;;  %v9433_v11 = vadd.f32 %v2911_v32, %v11175_v54  ;;  %v9436_v6 = vadd.f32 %v2964_v7, %v9133_v58  ;;  %v9442_v14 = vld [vmem:[%s10895_s1 + $0x70] sm:$0xff]   ;;  %v9450_v53 = vpop.permute.xlu1 %4877  ;;  %v4876_v32 = vpop.permute.xlu0 %4875  ;;  %v4928_v58 = vsel %vm142_vm0, %v4895_v51, 0  ;;  %v4934_v4 = vsel %vm142_vm0, %v4897_v20, 0  ;;  %v11179_v54 = vld [vmem:[#allocation33_spill] sm:$0xff]  ;;  %v11181_v20 = vld [vmem:[#allocation67_spill] sm:$0xff] }
 0x218   :  { %v2913_v5 = vpop.f32.mrf.mxu1  ;;  %v2966_v22 = vpop.f32.mrf.mxu0  ;;  %v4902_v51 = vsel %vm4152_vm3, %v4876_v32, %v9450_v53 }
 0x219   :  { %11176 = vst [vmem:[#allocation78_spill] sm:$0xff] %v9436_v6  ;;  %v9445_v56 = vadd.f32 %v2913_v5, %v11177_v52  ;;  %v9448_v26 = vadd.f32 %v2966_v22, %v9141_v25  ;;  %v4900_v25 = vsel %vm4152_vm3, %v9426_v13, %v9428_v61 }
 0x21a   :  { %v2915_v1 = vpop.f32.mrf.mxu1  ;;  %v2968_v7 = vpop.f32.mrf.mxu0 }
 0x21b   :  { %11178 = vst [vmem:[#allocation51_spill] sm:$0xff] %v9448_v26  ;;  %v9455_v6 = vadd.f32 %v2915_v1, %v11179_v54  ;;  %v9458_v27 = vadd.f32 %v2968_v7, %v9151_v59  ;;  %v11183_v54 = vld [vmem:[#allocation34_spill] sm:$0xff] }
 0x21c   :  { %v3005_v52 = vpop.f32.mrf.mxu1  ;;  %v3058_v5 = vpop.f32.mrf.mxu0  ;;  %7239 = vmatmul.mubr.msk.bf16.vlgmr.msra.gmra.mxu1 %vm135_vm1, %v9442_v14  ;;  %7242 = vmatmul.mubr.msk.bf16.vlgmr.msra.gmra.mxu0 %vm135_vm1, %v9442_v14 }
 0x21d   :  { %11180 = vst [vmem:[#allocation79_spill] sm:$0xff] %v9458_v27  ;;  %v9470_v22 = vadd.f32 %v3005_v52, %v11181_v20  ;;  %v9473_v59 = vadd.f32 %v3058_v5, %v9164_v39  ;;  %5090 = vmatpush1.bf16.msra.mxu1 %v4928_v58  ;;  %5143 = vmatpush1.bf16.msra.mxu0 %v4934_v4  ;;  %v9488_v58 = vld [vmem:[%s10895_s1 + $0x78] sm:$0xff]   ;;  %v11185_v4 = vld [vmem:[#allocation68_spill] sm:$0xff] }
 0x21e   :  { %v3007_v1 = vpop.f32.mrf.mxu1  ;;  %v3060_v7 = vpop.f32.mrf.mxu0  ;;  %5011 = vmatprep.mubr.bf16.mxu1 %v10953_v34  ;;  %5064 = vmatprep.mubr.bf16.mxu0 %v10953_v34 }
 0x21f   :  { %11182 = vst [vmem:[#allocation52_spill] sm:$0xff] %v9473_v59  ;;  %v9478_v27 = vadd.f32 %v3007_v1, %v11183_v54  ;;  %v9481_v26 = vadd.f32 %v3060_v7, %v9172_v12  ;;  %7250 = vmatprep.subr.msk.bf16.mxu1 %vm142_vm0, %v4900_v25  ;;  %7253 = vmatprep.subr.msk.bf16.mxu0 %vm142_vm0, %v4902_v51  ;;  %v6199_v25 = vld [vmem:[%s10896_s2] sm:$0xff]  ;;  %v11187_v51 = vld [vmem:[#allocation35_spill] sm:$0xff] }
 0x220   :  { %v3009_v39 = vpop.f32.mrf.mxu1  ;;  %v3062_v52 = vpop.f32.mrf.mxu0  ;;  %6205 = vperm.xlu1 %7312, %v6199_v25   ;;  %v6200_v25 = vld [vmem:[%s10896_s2 + $0x8] sm:$0xff] }
 0x221   :  { %11184 = vst [vmem:[#allocation53_spill] sm:$0xff] %v9481_v26  ;;  %v9491_v5 = vadd.f32 %v3009_v39, %v11185_v4  ;;  %v9494_v20 = vadd.f32 %v3062_v52, %v9180_v8  ;;  %v11190_v8 = vld [vmem:[#allocation36_spill] sm:$0xff]  ;;  %v9519_v4 = vpop.permute.xlu1 %4881  ;;  %6210 = vperm.xlu0 %7313, %v6200_v25  }
 0x222   :  { %v3011_v1 = vpop.f32.mrf.mxu1  ;;  %v3064_v12 = vpop.f32.mrf.mxu0 }
 0x223   :  { %11186 = vst [vmem:[#allocation80_spill] sm:$0xff] %v9494_v20  ;;  %v9500_v7 = vadd.f32 %v3011_v1, %v11187_v51  ;;  %v9503_v54 = vadd.f32 %v3064_v12, %v9186_v63  ;;  %v9517_v63 = vpop.permute.xlu0 %4879  ;;  %v4901_v51 = vsel %vm4152_vm3, %v9428_v61, %v4876_v32  ;;  %v6201_v61 = vld [vmem:[%s10896_s2 + $0x10] sm:$0xff]  ;;  %v11194_v32 = vld [vmem:[#allocation37_spill] sm:$0xff] }
 0x224   :  { %v3015_v26 = vpop.f32.mrf.mxu1  ;;  %v3068_v59 = vpop.f32.mrf.mxu0  ;;  %7240 = vmatmul.mubr.msk.bf16.gmra.mxu1 %vm135_vm1, %v9488_v58  ;;  %7243 = vmatmul.mubr.msk.bf16.gmra.mxu0 %vm135_vm1, %v9488_v58  ;;  %v4904_v25 = vsel %vm4152_vm3, %v9517_v63, %v9519_v4 }
 0x225   :  { %11188 = vst [vmem:[#allocation81_spill] sm:$0xff] %v9500_v7  ;;  %11189 = vst [vmem:[#allocation82_spill] sm:$0xff] %v9503_v54  ;;  %v9510_v39 = vadd.f32 %v3015_v26, %v11190_v8  ;;  %v9513_v52 = vadd.f32 %v3068_v59, %v9196_v18  ;;  %5107 = vmatprep.mubr.bf16.mxu1 %v10953_v34  ;;  %5160 = vmatprep.mubr.bf16.mxu0 %v10953_v34  ;;  %v11193_v54 = vld [vmem:[#allocation70_spill] sm:$0xff]  ;;  %v9541_v7 = vpop.permute.xlu1 %4885 }
 0x226   :  { %v3017_v1 = vpop.f32.mrf.mxu1  ;;  %v3070_v12 = vpop.f32.mrf.mxu0  ;;  %v4899_v26 = vsel %vm4152_vm3, %v9369_v57, %v9426_v13  ;;  %6215 = vperm.xlu1 %7312, %v6201_v61   ;;  %v6202_v61 = vld [vmem:[%s10896_s2 + $0x18] sm:$0xff] }
 0x227   :  { %11191 = vst [vmem:[#allocation83_spill] sm:$0xff] %v9510_v39  ;;  %11192 = vst [vmem:[#allocation18_spill] sm:$0xff] %v9513_v52  ;;  %v9528_v18 = vadd.f32 %v3017_v1, %v9136_v43  ;;  %v9531_v59 = vadd.f32 %v3070_v12, %v9206_v36  ;;  %v4884_v57 = vpop.permute.xlu0 %4883  ;;  %v4940_v43 = vsel %vm142_vm0, %v4899_v26, 0  ;;  %v4946_v36 = vsel %vm142_vm0, %v4901_v51, 0  ;;  %v11196_v51 = vld [vmem:[#allocation38_spill] sm:$0xff] }
 0x228   :  { %v3019_v8 = vpop.f32.mrf.mxu1  ;;  %v3072_v52 = vpop.f32.mrf.mxu0  ;;  %v4906_v26 = vsel %vm4152_vm3, %v4884_v57, %v9541_v7 }
 0x229   :  { %v9536_v20 = vadd.f32 %v3019_v8, %v11193_v54  ;;  %v9539_v39 = vadd.f32 %v3072_v52, %v9213_v35 }
 0x22a   :  { %v3021_v13 = vpop.f32.mrf.mxu1  ;;  %v3074_v1 = vpop.f32.mrf.mxu0  ;;  %6220 = vperm.xlu1 %7312, %v6202_v61  }
 0x22b   :  { %v9549_v12 = vadd.f32 %v3021_v13, %v11194_v32  ;;  %v9552_v54 = vadd.f32 %v3074_v1, %v9221_v62 }
 0x22c   :  { %v3111_v35 = vpop.f32.mrf.mxu1  ;;  %v3164_v52 = vpop.f32.mrf.mxu0  ;;  %7245 = vmatmul.mubr.msk.bf16.vlgmr.msra.gmra.mxu1 %vm135_vm1, %v9442_v14  ;;  %7248 = vmatmul.mubr.msk.bf16.vlgmr.msra.gmra.mxu0 %vm135_vm1, %v9442_v14 }
 0x22d   :  { %11195 = vst [vmem:[#allocation58_spill] sm:$0xff] %v9552_v54  ;;  %v9564_v8 = vadd.f32 %v3111_v35, %v11196_v51  ;;  %v9567_v62 = vadd.f32 %v3164_v52, %v9233_v49  ;;  %5196 = vmatpush1.bf16.msra.mxu1 %v4940_v43  ;;  %5249 = vmatpush1.bf16.msra.mxu0 %v4946_v36  ;;  %v9582_v49 = vpop.permute.xlu0 %4887  ;;  %v11199_v52 = vld [vmem:[#allocation39_spill] sm:$0xff]  ;;  %v11200_v54 = vld [vmem:[#allocation40_spill] sm:$0xff] }
 0x22e   :  { %v3113_v13 = vpop.f32.mrf.mxu1  ;;  %v3166_v1 = vpop.f32.mrf.mxu0  ;;  %5117 = vmatprep.mubr.bf16.mxu1 %v10953_v34  ;;  %5170 = vmatprep.mubr.bf16.mxu0 %v10953_v34 }
 0x22f   :  { %11197 = vst [vmem:[#allocation19_spill] sm:$0xff] %v9567_v62  ;;  %v9575_v32 = vadd.f32 %v3113_v13, %v9175_v40  ;;  %v9578_v35 = vadd.f32 %v3166_v1, %v9243_v19  ;;  %7256 = vmatprep.subr.msk.bf16.mxu1 %vm142_vm0, %v4904_v25  ;;  %7259 = vmatprep.subr.msk.bf16.mxu0 %vm142_vm0, %v4906_v26 }
 0x230   :  { %v3115_v43 = vpop.f32.mrf.mxu1  ;;  %v3168_v36 = vpop.f32.mrf.mxu0 }
 0x231   :  { %11198 = vst [vmem:[#allocation14_spill] sm:$0xff] %v9578_v35  ;;  %v9585_v51 = vadd.f32 %v3115_v43, %v11199_v52  ;;  %v9588_v62 = vadd.f32 %v3168_v36, %v9251_v24  ;;  %v9596_v26 = vpop.permute.xlu0 %5533  ;;  %v11202_v24 = vld [vmem:[#allocation41_spill] sm:$0xff]  ;;  %v4903_v52 = vsel %vm4152_vm3, %v9450_v53, %v9517_v63 }
 0x232   :  { %v3117_v40 = vpop.f32.mrf.mxu1  ;;  %v3170_v13 = vpop.f32.mrf.mxu0 }
 0x233   :  { %v9591_v19 = vadd.f32 %v3117_v40, %v11200_v54  ;;  %v9594_v25 = vadd.f32 %v3170_v13, %v9257_v29  ;;  %v4890_v29 = vpop.permute.xlu1 %4889 }
 0x234   :  { %v3121_v1 = vpop.f32.mrf.mxu1  ;;  %v3174_v35 = vpop.f32.mrf.mxu0  ;;  %7246 = vmatmul.mubr.msk.bf16.gmra.mxu1 %vm135_vm1, %v9488_v58  ;;  %7249 = vmatmul.mubr.msk.bf16.gmra.mxu0 %vm135_vm1, %v9488_v58 }
 0x235   :  { %11201 = vst [vmem:[#allocation60_spill] sm:$0xff] %v9594_v25  ;;  %v9603_v61 = vadd.f32 %v3121_v1, %v11202_v24  ;;  %v9606_v43 = vadd.f32 %v3174_v35, %v9271_v23  ;;  %5213 = vmatprep.mubr.bf16.mxu1 %v10953_v34  ;;  %5266 = vmatprep.mubr.bf16.mxu0 %v10953_v34  ;;  %v9627_v53 = vpop.permute.xlu0 %5537 }
 0x236   :  { %v3123_v54 = vpop.f32.mrf.mxu1  ;;  %v3176_v36 = vpop.f32.mrf.mxu0  ;;  %v4905_v23 = vsel %vm4152_vm3, %v9519_v4, %v4884_v57 }
 0x237   :  { %11203 = vst [vmem:[#allocation11_spill] sm:$0xff] %v9606_v43  ;;  %v9614_v40 = vadd.f32 %v3123_v54, %v9209_v45  ;;  %v9617_v13 = vadd.f32 %v3176_v36, %v9281_v41  ;;  %v5536_v25 = vpop.permute.xlu1 %5535  ;;  %v4952_v45 = vsel %vm142_vm0, %v4903_v52, 0  ;;  %v4958_v41 = vsel %vm142_vm0, %v4905_v23, 0  ;;  %v11204_v36 = vld [vmem:[#allocation72_spill] sm:$0xff] }
 0x238   :  { %v3125_v35 = vpop.f32.mrf.mxu1  ;;  %v3178_v1 = vpop.f32.mrf.mxu0  ;;  %v5573_v52 = vsel %vm5571_vm4, %v5536_v25, %v9627_v53 }
 0x239   :  { %v9622_v24 = vadd.f32 %v3125_v35, %v9216_v16  ;;  %v9625_v43 = vadd.f32 %v3178_v1, %v9288_v28  ;;  %v4908_v28 = vsel %vm4152_vm3, %v9582_v49, %v4890_v29 }
 0x23a   :  { %v3127_v63 = vpop.f32.mrf.mxu1  ;;  %v3180_v54 = vpop.f32.mrf.mxu0 }
 0x23b   :  { %v9632_v4 = vadd.f32 %v3127_v63, %v11204_v36  ;;  %v9635_v57 = vadd.f32 %v3180_v54, %v9298_v33 }
 0x23c   :  { %v3217_v16 = vpop.f32.mrf.mxu1  ;;  %v3270_v35 = vpop.f32.mrf.mxu0  ;;  %7251 = vmatmul.mubr.msk.bf16.vlgmr.msra.gmra.mxu1 %vm135_vm1, %v9442_v14  ;;  %7254 = vmatmul.mubr.msk.bf16.vlgmr.msra.gmra.mxu0 %vm135_vm1, %v9442_v14 }
 0x23d   :  { %v9646_v23 = vadd.f32 %v3217_v16, %v9236_v30  ;;  %v9649_v33 = vadd.f32 %v3270_v35, %v9313_v0  ;;  %5302 = vmatpush1.bf16.msra.mxu1 %v4952_v45  ;;  %5355 = vmatpush1.bf16.msra.mxu0 %v4958_v41  ;;  %v11206_v45 = vld [vmem:[#allocation42_spill] sm:$0xff] }
 0x23e   :  { %v3219_v1 = vpop.f32.mrf.mxu1  ;;  %v3272_v63 = vpop.f32.mrf.mxu0  ;;  %5223 = vmatprep.mubr.bf16.mxu1 %v10953_v34  ;;  %5276 = vmatprep.mubr.bf16.mxu0 %v10953_v34 }
 0x23f   :  { %11205 = vst [vmem:[#allocation12_spill] sm:$0xff] %v9649_v33  ;;  %v9654_v54 = vadd.f32 %v3219_v1, %v9246_v42  ;;  %v9657_v29 = vadd.f32 %v3272_v63, %v9321_v47  ;;  %7262 = vmatprep.subr.msk.bf16.mxu1 %vm142_vm0, %v4908_v28  ;;  %7271 = vmatprep.subr.msk.bf16.mxu0 %vm142_vm0, %v5573_v52  ;;  %v11208_v33 = vld [vmem:[#allocation73_spill] sm:$0xff]  ;;  %v11210_v52 = vld [vmem:[#allocation43_spill] sm:$0xff] }
 0x240   :  { %v3221_v30 = vpop.f32.mrf.mxu1  ;;  %v3274_v0 = vpop.f32.mrf.mxu0 }
 0x241   :  { %v9662_v41 = vadd.f32 %v3221_v30, %v11206_v45  ;;  %v9665_v36 = vadd.f32 %v3274_v0, %v9329_v55  ;;  %v4907_v45 = vsel %vm4152_vm3, %v9541_v7, %v9582_v49 }
 0x242   :  { %v3223_v16 = vpop.f32.mrf.mxu1  ;;  %v3276_v35 = vpop.f32.mrf.mxu0 }
 0x243   :  { %11207 = vst [vmem:[#allocation20_spill] sm:$0xff] %v9665_v36  ;;  %v9668_v42 = vadd.f32 %v3223_v16, %v11208_v33  ;;  %v9671_v47 = vadd.f32 %v3276_v35, %v9335_v38  ;;  %v5540_v38 = vpop.permute.xlu1 %5539  ;;  %v5542_v33 = vpop.permute.xlu0 %5541 }
 0x244   :  { %v3227_v1 = vpop.f32.mrf.mxu1  ;;  %v3280_v28 = vpop.f32.mrf.mxu0  ;;  %7252 = vmatmul.mubr.msk.bf16.gmra.mxu1 %vm135_vm1, %v9488_v58  ;;  %7255 = vmatmul.mubr.msk.bf16.gmra.mxu0 %vm135_vm1, %v9488_v58 }
 0x245   :  { %11209 = vst [vmem:[#allocation62_spill] sm:$0xff] %v9671_v47  ;;  %v9678_v63 = vadd.f32 %v3227_v1, %v11210_v52  ;;  %v9681_v55 = vadd.f32 %v3280_v28, %v9345_v31  ;;  %5319 = vmatprep.mubr.bf16.mxu1 %v10953_v34  ;;  %5372 = vmatprep.mubr.bf16.mxu0 %v10953_v34 }
 0x246   :  { %v3229_v30 = vpop.f32.mrf.mxu1  ;;  %v3282_v0 = vpop.f32.mrf.mxu0  ;;  %v5572_v31 = vsel %vm5571_vm4, %v9596_v26, %v5536_v25 }
 0x247   :  { %11211 = vst [vmem:[#allocation21_spill] sm:$0xff] %v9681_v55  ;;  %v9689_v16 = vadd.f32 %v3229_v30, %v9284_v44  ;;  %v9692_v35 = vadd.f32 %v3282_v0, %v9356_v48  ;;  %v5544_v47 = vpop.permute.xlu1 %5543  ;;  %v9702_v36 = vpop.permute.xlu0 %5545  ;;  %v4964_v44 = vsel %vm142_vm0, %v4907_v45, 0  ;;  %v5597_v7 = vsel %vm142_vm0, %v5572_v31, 0  ;;  %v11212_v45 = vld [vmem:[#allocation74_spill] sm:$0xff] }
 0x248   :  { %v3231_v1 = vpop.f32.mrf.mxu1  ;;  %v3284_v28 = vpop.f32.mrf.mxu0  ;;  %v5577_v0 = vsel %vm5571_vm4, %v5544_v47, %v9702_v36 }
 0x249   :  { %v9697_v52 = vadd.f32 %v3231_v1, %v9291_v15  ;;  %v9700_v55 = vadd.f32 %v3284_v28, %v9364_v10  ;;  %v5575_v10 = vsel %vm5571_vm4, %v5540_v38, %v5542_v33 }
 0x24a   :  { %v3233_v48 = vpop.f32.mrf.mxu1  ;;  %v3286_v49 = vpop.f32.mrf.mxu0 }
 0x24b   :  { %v9707_v30 = vadd.f32 %v3233_v48, %v9301_v46  ;;  %v9710_v25 = vadd.f32 %v3286_v49, %v9374_v17 }
 0x24c   :  { %v3584_v15 = vpop.f32.mrf.mxu1  ;;  %v3637_v26 = vpop.f32.mrf.mxu0  ;;  %7257 = vmatmul.mubr.msk.bf16.vlgmr.msra.gmra.mxu1 %vm135_vm1, %v9442_v14  ;;  %7260 = vmatmul.mubr.msk.bf16.vlgmr.msra.gmra.mxu0 %vm135_vm1, %v9442_v14 }
 0x24d   :  { %v9720_v31 = vadd.f32 %v3584_v15, %v11212_v45  ;;  %v9723_v46 = vadd.f32 %v3637_v26, %v9387_v3  ;;  %5408 = vmatpush1.bf16.msra.mxu1 %v4964_v44  ;;  %5665 = vmatpush1.bf16.msra.mxu0 %v5597_v7  ;;  %v11214_v44 = vld [vmem:[#allocation44_spill] sm:$0xff] }
 0x24e   :  { %v3586_v17 = vpop.f32.mrf.mxu1  ;;  %v3639_v1 = vpop.f32.mrf.mxu0  ;;  %5329 = vmatprep.mubr.bf16.mxu1 %v10953_v34  ;;  %5382 = vmatprep.mubr.bf16.mxu0 %v10953_v34 }
 0x24f   :  { %11213 = vst [vmem:[#allocation13_spill] sm:$0xff] %v9723_v46  ;;  %v9728_v28 = vadd.f32 %v3586_v17, %v9324_v2  ;;  %v9731_v48 = vadd.f32 %v3639_v1, %v9395_v60  ;;  %7274 = vmatprep.subr.msk.bf16.mxu1 %vm142_vm0, %v5575_v10  ;;  %7277 = vmatprep.subr.msk.bf16.mxu0 %vm142_vm0, %v5577_v0  ;;  %v11216_v46 = vld [vmem:[#allocation45_spill] sm:$0xff]  ;;  %v11218_v0 = vld [vmem:[#allocation46_spill] sm:$0xff] }
 0x250   :  { %v3588_v3 = vpop.f32.mrf.mxu1  ;;  %v3641_v49 = vpop.f32.mrf.mxu0 }
 0x251   :  { %v9736_v7 = vadd.f32 %v3588_v3, %v11214_v44  ;;  %v9739_v15 = vadd.f32 %v3641_v49, %v9403_v50  ;;  %v5574_v44 = vsel %vm5571_vm4, %v9627_v53, %v5540_v38 }
 0x252   :  { %v3590_v26 = vpop.f32.mrf.mxu1  ;;  %v3643_v45 = vpop.f32.mrf.mxu0 }
 0x253   :  { %11215 = vst [vmem:[#allocation22_spill] sm:$0xff] %v9739_v15  ;;  %v9742_v2 = vadd.f32 %v3590_v26, %v11216_v46  ;;  %v9745_v60 = vadd.f32 %v3643_v45, %v9409_v37  ;;  %v5548_v37 = vpop.permute.xlu1 %5547  ;;  %v9759_v46 = vpop.permute.xlu0 %5549  ;;  %v11220_v26 = vld [vmem:[#allocation47_spill] sm:$0xff] }
 0x254   :  { %v3594_v17 = vpop.f32.mrf.mxu1  ;;  %v3647_v10 = vpop.f32.mrf.mxu0  ;;  %7258 = vmatmul.mubr.msk.bf16.gmra.mxu1 %vm135_vm1, %v9488_v58  ;;  %7261 = vmatmul.mubr.msk.bf16.gmra.mxu0 %vm135_vm1, %v9488_v58 }
 0x255   :  { %11217 = vst [vmem:[#allocation23_spill] sm:$0xff] %v9745_v60  ;;  %v9752_v1 = vadd.f32 %v3594_v17, %v11218_v0  ;;  %v9755_v50 = vadd.f32 %v3647_v10, %v9419_v21  ;;  %5425 = vmatprep.mubr.bf16.mxu1 %v10953_v34  ;;  %5682 = vmatprep.mubr.bf16.mxu0 %v10953_v34 }
 0x256   :  { %v3596_v3 = vpop.f32.mrf.mxu1  ;;  %v3649_v49 = vpop.f32.mrf.mxu0  ;;  %v5576_v21 = vsel %vm5571_vm4, %v5542_v33, %v5544_v47 }
 0x257   :  { %11219 = vst [vmem:[#allocation54_spill] sm:$0xff] %v9755_v50  ;;  %v9764_v45 = vadd.f32 %v3596_v3, %v11220_v26  ;;  %v9767_v17 = vadd.f32 %v3649_v49, %v9433_v11  ;;  %v9773_v50 = vld [vmem:[%s10895_s1 + $0x80] sm:$0xff]   ;;  %v5552_v38 = vpop.permute.xlu1 %5551  ;;  %v9781_v3 = vpop.permute.xlu0 %5553  ;;  %v5603_v11 = vsel %vm142_vm0, %v5574_v44, 0  ;;  %v5609_v47 = vsel %vm142_vm0, %v5576_v21, 0  ;;  %v11223_v26 = vld [vmem:[#allocation75_spill] sm:$0xff] }
 0x258   :  { %v3598_v10 = vpop.f32.mrf.mxu1  ;;  %v3651_v0 = vpop.f32.mrf.mxu0  ;;  %v5581_v44 = vsel %vm5571_vm4, %v5552_v38, %v9781_v3  ;;  %v11225_v21 = vld [vmem:[#allocation48_spill] sm:$0xff] }
 0x259   :  { %11221 = vst [vmem:[#allocation24_spill] sm:$0xff] %v9767_v17  ;;  %v9776_v60 = vadd.f32 %v3598_v10, %v9367_v9  ;;  %v9779_v53 = vadd.f32 %v3651_v0, %v9445_v56  ;;  %v5579_v56 = vsel %vm5571_vm4, %v5548_v37, %v9759_v46 }
 0x25a   :  { %v3600_v33 = vpop.f32.mrf.mxu1  ;;  %v3653_v49 = vpop.f32.mrf.mxu0 }
 0x25b   :  { %11222 = vst [vmem:[#allocation55_spill] sm:$0xff] %v9779_v53  ;;  %v9786_v17 = vadd.f32 %v3600_v33, %v11223_v26  ;;  %v9789_v15 = vadd.f32 %v3653_v49, %v9455_v6 }
 0x25c   :  { %v3690_v9 = vpop.f32.mrf.mxu1  ;;  %v3743_v10 = vpop.f32.mrf.mxu0  ;;  %7263 = vmatmul.mubr.msk.bf16.vlgmr.msra.gmra.mxu1 %vm135_vm1, %v9442_v14  ;;  %7272 = vmatmul.mubr.msk.bf16.vlgmr.msra.gmra.mxu0 %vm135_vm1, %v9773_v50  ;;  %v11227_v14 = vld [vmem:[#allocation76_spill] sm:$0xff] }
 0x25d   :  { %11224 = vst [vmem:[#allocation15_spill] sm:$0xff] %v9789_v15  ;;  %v9800_v0 = vadd.f32 %v3690_v9, %v11225_v21  ;;  %v9803_v6 = vadd.f32 %v3743_v10, %v9470_v22  ;;  %5718 = vmatpush1.bf16.msra.mxu1 %v5603_v11  ;;  %5771 = vmatpush1.bf16.msra.mxu0 %v5609_v47  ;;  %v9818_v11 = vld [vmem:[%s10895_s1 + $0x88] sm:$0xff]  }
 0x25e   :  { %v3692_v33 = vpop.f32.mrf.mxu1  ;;  %v3745_v49 = vpop.f32.mrf.mxu0  ;;  %5435 = vmatprep.mubr.bf16.mxu1 %v10953_v34  ;;  %5692 = vmatprep.mubr.bf16.mxu0 %v10953_v34  ;;  %v11229_v47 = vld [vmem:[#allocation49_spill] sm:$0xff] }
 0x25f   :  { %11226 = vst [vmem:[#allocation16_spill] sm:$0xff] %v9803_v6  ;;  %v9808_v26 = vadd.f32 %v3692_v33, %v11227_v14  ;;  %v9811_v15 = vadd.f32 %v3745_v49, %v9478_v27  ;;  %7280 = vmatprep.subr.msk.bf16.mxu1 %vm142_vm0, %v5579_v56  ;;  %7283 = vmatprep.subr.msk.bf16.mxu0 %vm142_vm0, %v5581_v44  ;;  %v11232_v49 = vld [vmem:[#allocation77_spill] sm:$0xff] }
 0x260   :  { %v3694_v22 = vpop.f32.mrf.mxu1  ;;  %v3747_v9 = vpop.f32.mrf.mxu0  ;;  %v11234_v56 = vld [vmem:[#allocation81_spill] sm:$0xff] }
 0x261   :  { %11228 = vst [vmem:[#allocation25_spill] sm:$0xff] %v9811_v15  ;;  %v9821_v10 = vadd.f32 %v3694_v22, %v11229_v47  ;;  %v9824_v21 = vadd.f32 %v3747_v9, %v9491_v5  ;;  %v11236_v22 = vld [vmem:[#allocation50_spill] sm:$0xff]  ;;  %v11238_v5 = vld [vmem:[#allocation83_spill] sm:$0xff] }
 0x262   :  { %v3696_v33 = vpop.f32.mrf.mxu1  ;;  %v3749_v27 = vpop.f32.mrf.mxu0 }
 0x263   :  { %11230 = vst [vmem:[#allocation56_spill] sm:$0xff] %v9821_v10  ;;  %11231 = vst [vmem:[#allocation26_spill] sm:$0xff] %v9824_v21  ;;  %v9827_v14 = vadd.f32 %v3696_v33, %v11232_v49  ;;  %v9830_v44 = vadd.f32 %v3749_v27, %v11234_v56  ;;  %v5556_v33 = vpop.permute.xlu1 %5555  ;;  %v5558_v27 = vpop.permute.xlu0 %5557 }
 0x264   :  { %v3700_v15 = vpop.f32.mrf.mxu1  ;;  %v3753_v6 = vpop.f32.mrf.mxu0  ;;  %7264 = vmatmul.mubr.msk.bf16.gmra.mxu1 %vm135_vm1, %v9488_v58  ;;  %7273 = vmatmul.mubr.msk.bf16.gmra.mxu0 %vm135_vm1, %v9818_v11  ;;  %v5578_v58 = vsel %vm5571_vm4, %v9702_v36, %v5548_v37 }
 0x265   :  { %11233 = vst [vmem:[#allocation57_spill] sm:$0xff] %v9827_v14  ;;  %11235 = vst [vmem:[#allocation27_spill] sm:$0xff] %v9830_v44  ;;  %v9837_v47 = vadd.f32 %v3700_v15, %v11236_v22  ;;  %v9840_v9 = vadd.f32 %v3753_v6, %v11238_v5  ;;  %5735 = vmatprep.mubr.bf16.mxu1 %v10953_v34  ;;  %5788 = vmatprep.mubr.bf16.mxu0 %v10953_v34  ;;  %v11240_v44 = vld [vmem:[#allocation78_spill] sm:$0xff]  ;;  %v5615_v36 = vsel %vm142_vm0, %v5578_v58, 0 }
 0x266   :  { %v3702_v49 = vpop.f32.mrf.mxu1  ;;  %v3755_v56 = vpop.f32.mrf.mxu0  ;;  %v5580_v6 = vsel %vm5571_vm4, %v9759_v46, %v5552_v38 }
 0x267   :  { %11237 = vst [vmem:[#allocation59_spill] sm:$0xff] %v9837_v47  ;;  %11239 = vst [vmem:[#allocation17_spill] sm:$0xff] %v9840_v9  ;;  %v9847_v21 = vadd.f32 %v3702_v49, %v11240_v44  ;;  %v9850_v15 = vadd.f32 %v3755_v56, %v9528_v18  ;;  %v11241_v9 = vld [vmem:[#allocation51_spill] sm:$0xff]  ;;  %v5560_v14 = vpop.permute.xlu1 %5559  ;;  %v9860_v10 = vpop.permute.xlu0 %5561  ;;  %v5621_v37 = vsel %vm142_vm0, %v5580_v6, 0  ;;  %v11245_v6 = vld [vmem:[#allocation52_spill] sm:$0xff] }
 0x268   :  { %v3704_v22 = vpop.f32.mrf.mxu1  ;;  %v3757_v5 = vpop.f32.mrf.mxu0  ;;  %v11243_v49 = vld [vmem:[#allocation79_spill] sm:$0xff]  ;;  %v5585_v58 = vsel %vm5571_vm4, %v5560_v14, %v9860_v10 }
 0x269   :  { %v9855_v53 = vadd.f32 %v3704_v22, %v11241_v9  ;;  %v9858_v47 = vadd.f32 %v3757_v5, %v9536_v20  ;;  %v5583_v20 = vsel %vm5571_vm4, %v5556_v33, %v5558_v27 }
 0x26a   :  { %v3706_v18 = vpop.f32.mrf.mxu1  ;;  %v3759_v44 = vpop.f32.mrf.mxu0 }
 0x26b   :  { %11242 = vst [vmem:[#allocation28_spill] sm:$0xff] %v9858_v47  ;;  %v9865_v56 = vadd.f32 %v3706_v18, %v11243_v49  ;;  %v9868_v46 = vadd.f32 %v3759_v44, %v9549_v12  ;;  %v11247_v44 = vld [vmem:[#allocation53_spill] sm:$0xff]  ;;  %v11250_v47 = vld [vmem:[#allocation82_spill] sm:$0xff] }
 0x26c   :  { %v3796_v38 = vpop.f32.mrf.mxu1  ;;  %v3849_v9 = vpop.f32.mrf.mxu0  ;;  %7275 = vmatmul.mubr.msk.bf16.vlgmr.msra.gmra.mxu1 %vm135_vm1, %v9773_v50  ;;  %7278 = vmatmul.mubr.msk.bf16.vlgmr.msra.gmra.mxu0 %vm135_vm1, %v9773_v50 }
 0x26d   :  { %11244 = vst [vmem:[#allocation71_spill] sm:$0xff] %v9868_v46  ;;  %v9878_v22 = vadd.f32 %v3796_v38, %v11245_v6  ;;  %v9881_v5 = vadd.f32 %v3849_v9, %v9564_v8  ;;  %5824 = vmatpush1.bf16.msra.mxu1 %v5615_v36  ;;  %5877 = vmatpush1.bf16.msra.mxu0 %v5621_v37  ;;  %v11248_v36 = vld [vmem:[#allocation80_spill] sm:$0xff] }
 0x26e   :  { %v3798_v12 = vpop.f32.mrf.mxu1  ;;  %v3851_v18 = vpop.f32.mrf.mxu0  ;;  %5745 = vmatprep.mubr.bf16.mxu1 %v10953_v34  ;;  %5798 = vmatprep.mubr.bf16.mxu0 %v10953_v34 }
 0x26f   :  { %11246 = vst [vmem:[#allocation61_spill] sm:$0xff] %v9881_v5  ;;  %v9886_v49 = vadd.f32 %v3798_v12, %v11247_v44  ;;  %v9889_v46 = vadd.f32 %v3851_v18, %v9575_v32  ;;  %7286 = vmatprep.subr.msk.bf16.mxu1 %vm142_vm0, %v5583_v20  ;;  %7289 = vmatprep.subr.msk.bf16.mxu0 %vm142_vm0, %v5585_v58  ;;  %v11252_v58 = vld [vmem:[#allocation18_spill] sm:$0xff] }
 0x270   :  { %v3800_v8 = vpop.f32.mrf.mxu1  ;;  %v3853_v38 = vpop.f32.mrf.mxu0 }
 0x271   :  { %v9894_v37 = vadd.f32 %v3800_v8, %v11248_v36  ;;  %v9897_v9 = vadd.f32 %v3853_v38, %v9585_v51  ;;  %v5582_v38 = vsel %vm5571_vm4, %v9781_v3, %v5556_v33 }
 0x272   :  { %v3802_v6 = vpop.f32.mrf.mxu1  ;;  %v3855_v5 = vpop.f32.mrf.mxu0  ;;  %v5627_v3 = vsel %vm142_vm0, %v5582_v38, 0 }
 0x273   :  { %11249 = vst [vmem:[#allocation29_spill] sm:$0xff] %v9897_v9  ;;  %v9900_v12 = vadd.f32 %v3802_v6, %v11250_v47  ;;  %v9903_v32 = vadd.f32 %v3855_v5, %v9591_v19  ;;  %v5564_v19 = vpop.permute.xlu1 %5563  ;;  %v5566_v47 = vpop.permute.xlu0 %5565 }
 0x274   :  { %v3806_v18 = vpop.f32.mrf.mxu1  ;;  %v3859_v20 = vpop.f32.mrf.mxu0  ;;  %7276 = vmatmul.mubr.msk.bf16.gmra.mxu1 %vm135_vm1, %v9818_v11  ;;  %7279 = vmatmul.mubr.msk.bf16.gmra.mxu0 %vm135_vm1, %v9818_v11 }
 0x275   :  { %11251 = vst [vmem:[#allocation63_spill] sm:$0xff] %v9903_v32  ;;  %v9910_v44 = vadd.f32 %v3806_v18, %v11252_v58  ;;  %v9913_v51 = vadd.f32 %v3859_v20, %v9603_v61  ;;  %5841 = vmatprep.mubr.bf16.mxu1 %v10953_v34  ;;  %5894 = vmatprep.mubr.bf16.mxu0 %v10953_v34 }
 0x276   :  { %v3808_v5 = vpop.f32.mrf.mxu1  ;;  %v3861_v8 = vpop.f32.mrf.mxu0  ;;  %v5584_v61 = vsel %vm5571_vm4, %v5558_v27, %v5560_v14 }
 0x277   :  { %11253 = vst [vmem:[#allocation30_spill] sm:$0xff] %v9913_v51  ;;  %v9920_v36 = vadd.f32 %v3808_v5, %v9531_v59  ;;  %v9923_v6 = vadd.f32 %v3861_v8, %v9614_v40  ;;  %v5568_v32 = vpop.permute.xlu1 %5567  ;;  %v5570_v9 = vpop.permute.xlu0 %5569  ;;  %v5633_v59 = vsel %vm142_vm0, %v5584_v61, 0  ;;  %v11254_v40 = vld [vmem:[#allocation58_spill] sm:$0xff]  ;;  %v11256_v61 = vld [vmem:[#allocation19_spill] sm:$0xff] }
 0x278   :  { %v3810_v18 = vpop.f32.mrf.mxu1  ;;  %v3863_v20 = vpop.f32.mrf.mxu0  ;;  %v5589_v38 = vsel %vm5571_vm4, %v5568_v32, %v5570_v9 }
 0x279   :  { %v9927_v58 = vadd.f32 %v3810_v18, %v9539_v39  ;;  %v9930_v51 = vadd.f32 %v3863_v20, %v9622_v24  ;;  %v5587_v24 = vsel %vm5571_vm4, %v5564_v19, %v5566_v47 }
 0x27a   :  { %v3812_v33 = vpop.f32.mrf.mxu1  ;;  %v3865_v5 = vpop.f32.mrf.mxu0 }
 0x27b   :  { %v9935_v8 = vadd.f32 %v3812_v33, %v11254_v40  ;;  %v9938_v14 = vadd.f32 %v3865_v5, %v9632_v4  ;;  %v11257_v5 = vld [vmem:[#allocation14_spill] sm:$0xff] }
 0x27c   :  { %v3902_v27 = vpop.f32.mrf.mxu1  ;;  %v3955_v39 = vpop.f32.mrf.mxu0  ;;  %7281 = vmatmul.mubr.msk.bf16.vlgmr.msra.gmra.mxu1 %vm135_vm1, %v9773_v50  ;;  %7284 = vmatmul.mubr.msk.bf16.vlgmr.msra.gmra.mxu0 %vm135_vm1, %v9773_v50 }
 0x27d   :  { %11255 = vst [vmem:[#allocation64_spill] sm:$0xff] %v9938_v14  ;;  %v9947_v18 = vadd.f32 %v3902_v27, %v11256_v61  ;;  %v9950_v20 = vadd.f32 %v3955_v39, %v9646_v23  ;;  %5930 = vmatpush1.bf16.msra.mxu1 %v5627_v3  ;;  %5983 = vmatpush1.bf16.msra.mxu0 %v5633_v59  ;;  %v11258_v61 = vld [vmem:[#allocation60_spill] sm:$0xff] }
 0x27e   :  { %v3904_v4 = vpop.f32.mrf.mxu1  ;;  %v3957_v33 = vpop.f32.mrf.mxu0  ;;  %5851 = vmatprep.mubr.bf16.mxu1 %v10953_v34  ;;  %5904 = vmatprep.mubr.bf16.mxu0 %v10953_v34 }
 0x27f   :  { %v9955_v40 = vadd.f32 %v3904_v4, %v11257_v5  ;;  %v9958_v14 = vadd.f32 %v3957_v33, %v9654_v54  ;;  %7292 = vmatprep.subr.msk.bf16.mxu1 %vm142_vm0, %v5587_v24  ;;  %7295 = vmatprep.subr.msk.bf16.mxu0 %vm142_vm0, %v5589_v38 }
 0x280   :  { %v3906_v23 = vpop.f32.mrf.mxu1  ;;  %v3959_v9 = vpop.f32.mrf.mxu0 }
 0x281   :  { %v9963_v3 = vadd.f32 %v3906_v23, %v9588_v62  ;;  %v9966_v59 = vadd.f32 %v3959_v9, %v9662_v41  ;;  %v11259_v62 = vld [vmem:[#allocation11_spill] sm:$0xff]  ;;  %v5586_v23 = vsel %vm5571_vm4, %v9860_v10, %v5564_v19 }
 0x282   :  { %v3908_v27 = vpop.f32.mrf.mxu1  ;;  %v3961_v39 = vpop.f32.mrf.mxu0 }
 0x283   :  { %v9969_v4 = vadd.f32 %v3908_v27, %v11258_v61  ;;  %v9972_v54 = vadd.f32 %v3961_v39, %v9668_v42  ;;  %v5588_v39 = vsel %vm5571_vm4, %v5566_v47, %v5568_v32 }
 0x284   :  { %v3912_v33 = vpop.f32.mrf.mxu1  ;;  %v3965_v24 = vpop.f32.mrf.mxu0  ;;  %7282 = vmatmul.mubr.msk.bf16.gmra.mxu1 %vm135_vm1, %v9818_v11  ;;  %7285 = vmatmul.mubr.msk.bf16.gmra.mxu0 %vm135_vm1, %v9818_v11  ;;  %v5645_v10 = vsel %vm142_vm0, %v5588_v39, 0 }
 0x285   :  { %v9979_v38 = vadd.f32 %v3912_v33, %v11259_v62  ;;  %v9982_v41 = vadd.f32 %v3965_v24, %v9678_v63  ;;  %5947 = vmatprep.mubr.bf16.mxu1 %v10953_v34  ;;  %6000 = vmatprep.mubr.bf16.mxu0 %v10953_v34  ;;  %v5639_v62 = vsel %vm142_vm0, %v5586_v23, 0 }
 0x286   :  { %v3914_v42 = vpop.f32.mrf.mxu1  ;;  %v3967_v5 = vpop.f32.mrf.mxu0 }
 0x287   :  { %v9989_v9 = vadd.f32 %v3914_v42, %v9617_v13  ;;  %v9992_v27 = vadd.f32 %v3967_v5, %v9689_v16 }
 0x288   :  { %v3916_v61 = vpop.f32.mrf.mxu1  ;;  %v3969_v63 = vpop.f32.mrf.mxu0 }
 0x289   :  { %v9996_v33 = vadd.f32 %v3916_v61, %v9625_v43  ;;  %v9999_v24 = vadd.f32 %v3969_v63, %v9697_v52  ;;  %v11260_v43 = vld [vmem:[#allocation12_spill] sm:$0xff] }
 0x28a   :  { %v3918_v19 = vpop.f32.mrf.mxu1  ;;  %v3971_v13 = vpop.f32.mrf.mxu0 }
 0x28b   :  { %v10004_v42 = vadd.f32 %v3918_v19, %v9635_v57  ;;  %v10007_v16 = vadd.f32 %v3971_v13, %v9707_v30  ;;  %v11261_v19 = vld [vmem:[#allocation20_spill] sm:$0xff] }
 0x28c   :  { %v4008_v32 = vpop.f32.mrf.mxu1  ;;  %v4265_v47 = vpop.f32.mrf.mxu0  ;;  %7287 = vmatmul.mubr.msk.bf16.vlgmr.msra.gmra.mxu1 %vm135_vm1, %v9773_v50  ;;  %7290 = vmatmul.mubr.msk.bf16.vlgmr.msra.gmra.mxu0 %vm135_vm1, %v9773_v50 }
 0x28d   :  { %v10014_v52 = vadd.f32 %v4008_v32, %v11260_v43  ;;  %v10017_v5 = vadd.f32 %v4265_v47, %v9720_v31  ;;  %6036 = vmatpush1.bf16.msra.mxu1 %v5639_v62  ;;  %6089 = vmatpush1.bf16.msra.mxu0 %v5645_v10  ;;  %v11262_v32 = vld [vmem:[#allocation62_spill] sm:$0xff] }
 0x28e   :  { %v4010_v57 = vpop.f32.mrf.mxu1  ;;  %v4267_v23 = vpop.f32.mrf.mxu0  ;;  %5957 = vmatprep.mubr.bf16.mxu1 %v10953_v34  ;;  %6010 = vmatprep.mubr.bf16.mxu0 %v10953_v34 }
 0x28f   :  { %v10022_v30 = vadd.f32 %v4010_v57, %v9657_v29  ;;  %v10025_v39 = vadd.f32 %v4267_v23, %v9728_v28  ;;  %v11263_v28 = vld [vmem:[#allocation21_spill] sm:$0xff] }
 0x290   :  { %v4012_v61 = vpop.f32.mrf.mxu1  ;;  %v4269_v63 = vpop.f32.mrf.mxu0 }
 0x291   :  { %v10028_v13 = vadd.f32 %v4012_v61, %v11261_v19  ;;  %v10031_v31 = vadd.f32 %v4269_v63, %v9736_v7 }
 0x292   :  { %v4014_v62 = vpop.f32.mrf.mxu1  ;;  %v4271_v10 = vpop.f32.mrf.mxu0 }
 0x293   :  { %v10034_v47 = vadd.f32 %v4014_v62, %v11262_v32  ;;  %v10037_v43 = vadd.f32 %v4271_v10, %v9742_v2 }
 0x294   :  { %v4018_v29 = vpop.f32.mrf.mxu1  ;;  %v4275_v57 = vpop.f32.mrf.mxu0  ;;  %7288 = vmatmul.mubr.msk.bf16.gmra.mxu1 %vm135_vm1, %v9818_v11  ;;  %7291 = vmatmul.mubr.msk.bf16.gmra.mxu0 %vm135_vm1, %v9818_v11 }
 0x295   :  { %v10044_v23 = vadd.f32 %v4018_v29, %v11263_v28  ;;  %v10047_v7 = vadd.f32 %v4275_v57, %v9752_v1  ;;  %6053 = vmatprep.mubr.bf16.mxu1 %v10953_v34  ;;  %6106 = vmatprep.mubr.bf16.mxu0 %v10953_v34 }
 0x296   :  { %v4020_v2 = vpop.f32.mrf.mxu1  ;;  %v4277_v61 = vpop.f32.mrf.mxu0 }
 0x297   :  { %11264 = vst [vmem:[#allocation31_spill] sm:$0xff] %v10047_v7  ;;  %v10052_v63 = vadd.f32 %v4020_v2, %v9692_v35  ;;  %v10055_v19 = vadd.f32 %v4277_v61, %v9764_v45 }
 0x298   :  { %v4022_v62 = vpop.f32.mrf.mxu1  ;;  %v4279_v10 = vpop.f32.mrf.mxu0 }
 0x299   :  { %v10058_v32 = vadd.f32 %v4022_v62, %v9700_v55  ;;  %v10061_v1 = vadd.f32 %v4279_v10, %v9776_v60  ;;  %v11267_v55 = vld [vmem:[#allocation13_spill] sm:$0xff] }
 0x29a   :  { %v4024_v29 = vpop.f32.mrf.mxu1  ;;  %v4281_v57 = vpop.f32.mrf.mxu0 }
 0x29b   :  { %11265 = vst [vmem:[#allocation65_spill] sm:$0xff] %v10061_v1  ;;  %v10064_v28 = vadd.f32 %v4024_v29, %v9710_v25  ;;  %v10067_v7 = vadd.f32 %v4281_v57, %v9786_v17  ;;  %v11270_v29 = vld [vmem:[#allocation22_spill] sm:$0xff] }
 0x29c   :  { %v4318_v35 = vpop.f32.mrf.mxu1  ;;  %v4371_v2 = vpop.f32.mrf.mxu0  ;;  %7293 = vmatmul.mubr.msk.bf16.vlgmr.msra.gmra.mxu1 %vm135_vm1, %v9773_v50  ;;  %7296 = vmatmul.mubr.msk.bf16.vlgmr.msra.gmra.mxu0 %vm135_vm1, %v9773_v50 }
 0x29d   :  { %11266 = vst [vmem:[#allocation69_spill] sm:$0xff] %v10067_v7  ;;  %v10074_v45 = vadd.f32 %v4318_v35, %v11267_v55  ;;  %v10077_v60 = vadd.f32 %v4371_v2, %v9800_v0  ;;  %6063 = vmatprep.mubr.bf16.mxu1 %v10953_v34  ;;  %6116 = vmatprep.mubr.bf16.mxu0 %v10953_v34  ;;  %v11271_v35 = vld [vmem:[#allocation56_spill] sm:$0xff]  ;;  %v11274_v7 = vld [vmem:[#allocation57_spill] sm:$0xff] }
 0x29e   :  { %v4320_v25 = vpop.f32.mrf.mxu1  ;;  %v4373_v17 = vpop.f32.mrf.mxu0 }
 0x29f   :  { %11268 = vst [vmem:[#allocation32_spill] sm:$0xff] %v10077_v60  ;;  %v10082_v61 = vadd.f32 %v4320_v25, %v9731_v48  ;;  %v10085_v62 = vadd.f32 %v4373_v17, %v9808_v26  ;;  %v11273_v60 = vld [vmem:[#allocation23_spill] sm:$0xff]  ;;  %v11276_v26 = vld [vmem:[#allocation54_spill] sm:$0xff] }
 0x2a0   :  { %v4322_v10 = vpop.f32.mrf.mxu1  ;;  %v4375_v50 = vpop.f32.mrf.mxu0 }
 0x2a1   :  { %11269 = vst [vmem:[#allocation66_spill] sm:$0xff] %v10085_v62  ;;  %v10088_v57 = vadd.f32 %v4322_v10, %v11270_v29  ;;  %v10091_v0 = vadd.f32 %v4375_v50, %v11271_v35  ;;  %v11277_v10 = vld [vmem:[#allocation59_spill] sm:$0xff]  ;;  %v11279_v35 = vld [vmem:[#allocation24_spill] sm:$0xff] }
 0x2a2   :  { %v4324_v2 = vpop.f32.mrf.mxu1  ;;  %v4377_v55 = vpop.f32.mrf.mxu0 }
 0x2a3   :  { %11272 = vst [vmem:[#allocation33_spill] sm:$0xff] %v10091_v0  ;;  %v10094_v34 = vadd.f32 %v4324_v2, %v11273_v60  ;;  %v10097_v1 = vadd.f32 %v4377_v55, %v11274_v7  ;;  %v11281_v0 = vld [vmem:[#allocation55_spill] sm:$0xff] }
 0x2a4   :  { %v4328_v48 = vpop.f32.mrf.mxu1  ;;  %v4381_v25 = vpop.f32.mrf.mxu0  ;;  %7294 = vmatmul.mubr.msk.bf16.gmra.mxu1 %vm135_vm1, %v9818_v11  ;;  %7297 = vmatmul.mubr.msk.bf16.gmra.mxu0 %vm135_vm1, %v9818_v11 }
 0x2a5   :  { %11275 = vst [vmem:[#allocation67_spill] sm:$0xff] %v10097_v1  ;;  %v10104_v17 = vadd.f32 %v4328_v48, %v11276_v26  ;;  %v10107_v50 = vadd.f32 %v4381_v25, %v11277_v10  ;;  %v11283_v25 = vld [vmem:[#allocation15_spill] sm:$0xff] }
 0x2a6   :  { %v4330_v29 = vpop.f32.mrf.mxu1  ;;  %v4383_v60 = vpop.f32.mrf.mxu0 }
 0x2a7   :  { %11278 = vst [vmem:[#allocation34_spill] sm:$0xff] %v10107_v50  ;;  %v10110_v2 = vadd.f32 %v4330_v29, %v11279_v35  ;;  %v10113_v7 = vadd.f32 %v4383_v60, %v9847_v21  ;;  %v11285_v21 = vld [vmem:[#allocation16_spill] sm:$0xff] }
 0x2a8   :  { %v4332_v55 = vpop.f32.mrf.mxu1  ;;  %v4385_v1 = vpop.f32.mrf.mxu0 }
 0x2a9   :  { %11280 = vst [vmem:[#allocation68_spill] sm:$0xff] %v10113_v7  ;;  %v10116_v62 = vadd.f32 %v4332_v55, %v11281_v0  ;;  %v10119_v11 = vadd.f32 %v4385_v1, %v9855_v53  ;;  %v11287_v53 = vld [vmem:[#allocation25_spill] sm:$0xff] }
 0x2aa   :  { %v4334_v48 = vpop.f32.mrf.mxu1  ;;  %v4387_v26 = vpop.f32.mrf.mxu0 }
 0x2ab   :  { %11282 = vst [vmem:[#allocation35_spill] sm:$0xff] %v10119_v11  ;;  %v10122_v10 = vadd.f32 %v4334_v48, %v11283_v25  ;;  %v10125_v50 = vadd.f32 %v4387_v26, %v9865_v56  ;;  %v11289_v56 = vld [vmem:[#allocation26_spill] sm:$0xff] }
 0x2ac   :  { %v4424_v29 = vpop.f32.mrf.mxu1  ;;  %v4477_v35 = vpop.f32.mrf.mxu0 }
 0x2ad   :  { %11284 = vst [vmem:[#allocation36_spill] sm:$0xff] %v10125_v50  ;;  %v10128_v60 = vadd.f32 %v4424_v29, %v11285_v21  ;;  %v10131_v7 = vadd.f32 %v4477_v35, %v9878_v22  ;;  %v11290_v22 = vld [vmem:[#allocation27_spill] sm:$0xff] }
 0x2ae   :  { %v4426_v0 = vpop.f32.mrf.mxu1  ;;  %v4479_v55 = vpop.f32.mrf.mxu0 }
 0x2af   :  { %11286 = vst [vmem:[#allocation70_spill] sm:$0xff] %v10131_v7  ;;  %v10134_v1 = vadd.f32 %v4426_v0, %v11287_v53  ;;  %v10137_v11 = vadd.f32 %v4479_v55, %v9886_v49  ;;  %v11292_v49 = vld [vmem:[#allocation17_spill] sm:$0xff] }
 0x2b0   :  { %v4428_v48 = vpop.f32.mrf.mxu1  ;;  %v4481_v25 = vpop.f32.mrf.mxu0 }
 0x2b1   :  { %11288 = vst [vmem:[#allocation37_spill] sm:$0xff] %v10137_v11  ;;  %v10140_v26 = vadd.f32 %v4428_v48, %v11289_v56  ;;  %v10143_v50 = vadd.f32 %v4481_v25, %v9894_v37 }
 0x2b2   :  { %v4430_v29 = vpop.f32.mrf.mxu1  ;;  %v4483_v21 = vpop.f32.mrf.mxu0 }
 0x2b3   :  { %v10146_v35 = vadd.f32 %v4430_v29, %v11290_v22  ;;  %v10149_v7 = vadd.f32 %v4483_v21, %v9900_v12  ;;  %v11295_v12 = vld [vmem:[#allocation28_spill] sm:$0xff] }
 0x2b4   :  { %v4434_v0 = vpop.f32.mrf.mxu1  ;;  %v4487_v53 = vpop.f32.mrf.mxu0 }
 0x2b5   :  { %11291 = vst [vmem:[#allocation38_spill] sm:$0xff] %v10149_v7  ;;  %v10152_v55 = vadd.f32 %v4434_v0, %v11292_v49  ;;  %v10155_v11 = vadd.f32 %v4487_v53, %v9910_v44  ;;  %v11296_v44 = vld [vmem:[#allocation71_spill] sm:$0xff] }
 0x2b6   :  { %v4436_v48 = vpop.f32.mrf.mxu1  ;;  %v4489_v56 = vpop.f32.mrf.mxu0 }
 0x2b7   :  { %11293 = vst [vmem:[#allocation39_spill] sm:$0xff] %v10155_v11  ;;  %v10158_v37 = vadd.f32 %v4436_v48, %v9850_v15  ;;  %v10161_v25 = vadd.f32 %v4489_v56, %v9920_v36  ;;  %v11298_v36 = vld [vmem:[#allocation61_spill] sm:$0xff] }
 0x2b8   :  { %v4438_v29 = vpop.f32.mrf.mxu1  ;;  %v4491_v22 = vpop.f32.mrf.mxu0 }
 0x2b9   :  { %11294 = vst [vmem:[#allocation40_spill] sm:$0xff] %v10161_v25  ;;  %v10164_v21 = vadd.f32 %v4438_v29, %v11295_v12  ;;  %v10167_v7 = vadd.f32 %v4491_v22, %v9927_v58 }
 0x2ba   :  { %v4440_v0 = vpop.f32.mrf.mxu1  ;;  %v4493_v49 = vpop.f32.mrf.mxu0 }
 0x2bb   :  { %v10170_v53 = vadd.f32 %v4440_v0, %v11296_v44  ;;  %v10173_v11 = vadd.f32 %v4493_v49, %v9935_v8  ;;  %v11301_v8 = vld [vmem:[#allocation29_spill] sm:$0xff] }
 0x2bc   :  { %v4530_v15 = vpop.f32.mrf.mxu1  ;;  %v4583_v48 = vpop.f32.mrf.mxu0 }
 0x2bd   :  { %11297 = vst [vmem:[#allocation41_spill] sm:$0xff] %v10173_v11  ;;  %v10176_v56 = vadd.f32 %v4530_v15, %v11298_v36  ;;  %v10179_v25 = vadd.f32 %v4583_v48, %v9947_v18  ;;  %v11302_v18 = vld [vmem:[#allocation63_spill] sm:$0xff] }
 0x2be   :  { %v4532_v29 = vpop.f32.mrf.mxu1  ;;  %v4585_v12 = vpop.f32.mrf.mxu0 }
 0x2bf   :  { %11299 = vst [vmem:[#allocation72_spill] sm:$0xff] %v10179_v25  ;;  %v10182_v58 = vadd.f32 %v4532_v29, %v9889_v46  ;;  %v10185_v22 = vadd.f32 %v4585_v12, %v9955_v40  ;;  %v11303_v40 = vld [vmem:[#allocation30_spill] sm:$0xff] }
 0x2c0   :  { %v4534_v0 = vpop.f32.mrf.mxu1  ;;  %v4587_v44 = vpop.f32.mrf.mxu0 }
 0x2c1   :  { %11300 = vst [vmem:[#allocation42_spill] sm:$0xff] %v10185_v22  ;;  %v10188_v49 = vadd.f32 %v4534_v0, %v11301_v8  ;;  %v10191_v11 = vadd.f32 %v4587_v44, %v9963_v3 }
 0x2c2   :  { %v4536_v15 = vpop.f32.mrf.mxu1  ;;  %v4589_v36 = vpop.f32.mrf.mxu0 }
 0x2c3   :  { %v10194_v48 = vadd.f32 %v4536_v15, %v11302_v18  ;;  %v10197_v25 = vadd.f32 %v4589_v36, %v9969_v4 }
 0x2c4   :  { %v4540_v46 = vpop.f32.mrf.mxu1  ;;  %v4593_v29 = vpop.f32.mrf.mxu0 }
 0x2c5   :  { %v10200_v12 = vadd.f32 %v4540_v46, %v11303_v40  ;;  %v10203_v22 = vadd.f32 %v4593_v29, %v9979_v38  ;;  %v11305_v38 = vld [vmem:[#allocation64_spill] sm:$0xff] }
 0x2c6   :  { %v4542_v0 = vpop.f32.mrf.mxu1  ;;  %v4595_v8 = vpop.f32.mrf.mxu0 }
 0x2c7   :  { %11304 = vst [vmem:[#allocation73_spill] sm:$0xff] %v10203_v22  ;;  %v10206_v3 = vadd.f32 %v4542_v0, %v9923_v6  ;;  %v10209_v44 = vadd.f32 %v4595_v8, %v9989_v9 }
 0x2c8   :  { %v4544_v15 = vpop.f32.mrf.mxu1  ;;  %v4597_v18 = vpop.f32.mrf.mxu0 }
 0x2c9   :  { %v10212_v4 = vadd.f32 %v4544_v15, %v9930_v51  ;;  %v10215_v36 = vadd.f32 %v4597_v18, %v9996_v33 }
 0x2ca   :  { %v4546_v46 = vpop.f32.mrf.mxu1  ;;  %v4599_v40 = vpop.f32.mrf.mxu0 }
 0x2cb   :  { %v10218_v29 = vadd.f32 %v4546_v46, %v11305_v38  ;;  %v10221_v22 = vadd.f32 %v4599_v40, %v10004_v42 }
 0x2cc   :  { %v4636_v6 = vpop.f32.mrf.mxu1  ;;  %v4689_v0 = vpop.f32.mrf.mxu0 }
 0x2cd   :  { %v10224_v9 = vadd.f32 %v4636_v6, %v9950_v20  ;;  %v10227_v8 = vadd.f32 %v4689_v0, %v10014_v52 }
 0x2ce   :  { %v4638_v51 = vpop.f32.mrf.mxu1  ;;  %v4691_v15 = vpop.f32.mrf.mxu0 }
 0x2cf   :  { %v10230_v33 = vadd.f32 %v4638_v51, %v9958_v14  ;;  %v10233_v18 = vadd.f32 %v4691_v15, %v10022_v30 }
 0x2d0   :  { %v4640_v46 = vpop.f32.mrf.mxu1  ;;  %v4693_v38 = vpop.f32.mrf.mxu0 }
 0x2d1   :  { %v10236_v42 = vadd.f32 %v4640_v46, %v9966_v59  ;;  %v10239_v40 = vadd.f32 %v4693_v38, %v10028_v13 }
 0x2d2   :  { %v4642_v20 = vpop.f32.mrf.mxu1  ;;  %v4695_v6 = vpop.f32.mrf.mxu0 }
 0x2d3   :  { %v10242_v52 = vadd.f32 %v4642_v20, %v9972_v54  ;;  %v10245_v0 = vadd.f32 %v4695_v6, %v10034_v47 }
 0x2d4   :  { %v4646_v14 = vpop.f32.mrf.mxu1  ;;  %v4699_v51 = vpop.f32.mrf.mxu0 }
 0x2d5   :  { %v10248_v30 = vadd.f32 %v4646_v14, %v9982_v41  ;;  %v10251_v15 = vadd.f32 %v4699_v51, %v10044_v23 }
 0x2d6   :  { %v4648_v59 = vpop.f32.mrf.mxu1  ;;  %v4701_v46 = vpop.f32.mrf.mxu0 }
 0x2d7   :  { %v10254_v13 = vadd.f32 %v4648_v59, %v9992_v27  ;;  %v10257_v38 = vadd.f32 %v4701_v46, %v10052_v63 }
 0x2d8   :  { %v4650_v54 = vpop.f32.mrf.mxu1  ;;  %v4703_v20 = vpop.f32.mrf.mxu0 }
 0x2d9   :  { %v10260_v47 = vadd.f32 %v4650_v54, %v9999_v24  ;;  %v10263_v6 = vadd.f32 %v4703_v20, %v10058_v32 }
 0x2da   :  { %v4652_v41 = vpop.f32.mrf.mxu1  ;;  %v4705_v14 = vpop.f32.mrf.mxu0 }
 0x2db   :  { %v10266_v23 = vadd.f32 %v4652_v41, %v10007_v16  ;;  %v10269_v51 = vadd.f32 %v4705_v14, %v10064_v28 }
 0x2dc   :  { %v5003_v27 = vpop.f32.mrf.mxu1  ;;  %v5056_v59 = vpop.f32.mrf.mxu0 }
 0x2dd   :  { %v10272_v63 = vadd.f32 %v5003_v27, %v10017_v5  ;;  %v10275_v46 = vadd.f32 %v5056_v59, %v10074_v45 }
 0x2de   :  { %v5005_v24 = vpop.f32.mrf.mxu1  ;;  %v5058_v54 = vpop.f32.mrf.mxu0 }
 0x2df   :  { %v10278_v32 = vadd.f32 %v5005_v24, %v10025_v39  ;;  %v10281_v20 = vadd.f32 %v5058_v54, %v10082_v61  ;;  %v11308_v61 = vld [vmem:[#allocation31_spill] sm:$0xff] }
 0x2e0   :  { %v5007_v16 = vpop.f32.mrf.mxu1  ;;  %v5060_v41 = vpop.f32.mrf.mxu0 }
 0x2e1   :  { %11306 = vst [vmem:[#allocation43_spill] sm:$0xff] %v10281_v20  ;;  %v10284_v28 = vadd.f32 %v5007_v16, %v10031_v31  ;;  %v10287_v14 = vadd.f32 %v5060_v41, %v10088_v57 }
 0x2e2   :  { %v5009_v5 = vpop.f32.mrf.mxu1  ;;  %v5062_v27 = vpop.f32.mrf.mxu0 }
 0x2e3   :  { %v10290_v45 = vadd.f32 %v5009_v5, %v10037_v43  ;;  %v10293_v59 = vadd.f32 %v5062_v27, %v10094_v34  ;;  %v11311_v34 = vld [vmem:[#allocation65_spill] sm:$0xff] }
 0x2e4   :  { %v5013_v39 = vpop.f32.mrf.mxu1  ;;  %v5066_v24 = vpop.f32.mrf.mxu0 }
 0x2e5   :  { %11307 = vst [vmem:[#allocation74_spill] sm:$0xff] %v10293_v59  ;;  %v10296_v54 = vadd.f32 %v5013_v39, %v11308_v61  ;;  %v10299_v20 = vadd.f32 %v5066_v24, %v10104_v17  ;;  %v11313_v17 = vld [vmem:[#allocation69_spill] sm:$0xff] }
 0x2e6   :  { %v5015_v31 = vpop.f32.mrf.mxu1  ;;  %v5068_v16 = vpop.f32.mrf.mxu0 }
 0x2e7   :  { %11309 = vst [vmem:[#allocation44_spill] sm:$0xff] %v10299_v20  ;;  %v10302_v57 = vadd.f32 %v5015_v31, %v10055_v19  ;;  %v10305_v41 = vadd.f32 %v5068_v16, %v10110_v2  ;;  %v11315_v2 = vld [vmem:[#allocation32_spill] sm:$0xff] }
 0x2e8   :  { %v5017_v43 = vpop.f32.mrf.mxu1  ;;  %v5070_v5 = vpop.f32.mrf.mxu0 }
 0x2e9   :  { %11310 = vst [vmem:[#allocation45_spill] sm:$0xff] %v10305_v41  ;;  %v10308_v27 = vadd.f32 %v5017_v43, %v11311_v34  ;;  %v10311_v59 = vadd.f32 %v5070_v5, %v10116_v62  ;;  %v11317_v62 = vld [vmem:[#allocation66_spill] sm:$0xff] }
 0x2ea   :  { %v5019_v39 = vpop.f32.mrf.mxu1  ;;  %v5072_v61 = vpop.f32.mrf.mxu0 }
 0x2eb   :  { %11312 = vst [vmem:[#allocation46_spill] sm:$0xff] %v10311_v59  ;;  %v10314_v24 = vadd.f32 %v5019_v39, %v11313_v17  ;;  %v10317_v20 = vadd.f32 %v5072_v61, %v10122_v10  ;;  %v11319_v10 = vld [vmem:[#allocation33_spill] sm:$0xff] }
 0x2ec   :  { %v5109_v19 = vpop.f32.mrf.mxu1  ;;  %v5162_v31 = vpop.f32.mrf.mxu0 }
 0x2ed   :  { %11314 = vst [vmem:[#allocation47_spill] sm:$0xff] %v10317_v20  ;;  %v10320_v16 = vadd.f32 %v5109_v19, %v11315_v2  ;;  %v10323_v41 = vadd.f32 %v5162_v31, %v10128_v60  ;;  %v11321_v60 = vld [vmem:[#allocation67_spill] sm:$0xff] }
 0x2ee   :  { %v5111_v43 = vpop.f32.mrf.mxu1  ;;  %v5164_v34 = vpop.f32.mrf.mxu0 }
 0x2ef   :  { %11316 = vst [vmem:[#allocation75_spill] sm:$0xff] %v10323_v41  ;;  %v10326_v5 = vadd.f32 %v5111_v43, %v11317_v62  ;;  %v10329_v59 = vadd.f32 %v5164_v34, %v10134_v1  ;;  %v11323_v1 = vld [vmem:[#allocation34_spill] sm:$0xff] }
 0x2f0   :  { %v5113_v39 = vpop.f32.mrf.mxu1  ;;  %v5166_v17 = vpop.f32.mrf.mxu0 }
 0x2f1   :  { %11318 = vst [vmem:[#allocation48_spill] sm:$0xff] %v10329_v59  ;;  %v10332_v61 = vadd.f32 %v5113_v39, %v11319_v10  ;;  %v10335_v20 = vadd.f32 %v5166_v17, %v10140_v26  ;;  %v11325_v26 = vld [vmem:[#allocation68_spill] sm:$0xff] }
 0x2f2   :  { %v5115_v19 = vpop.f32.mrf.mxu1  ;;  %v5168_v2 = vpop.f32.mrf.mxu0 }
 0x2f3   :  { %11320 = vst [vmem:[#allocation76_spill] sm:$0xff] %v10335_v20  ;;  %v10338_v31 = vadd.f32 %v5115_v19, %v11321_v60  ;;  %v10341_v41 = vadd.f32 %v5168_v2, %v10146_v35  ;;  %v11327_v35 = vld [vmem:[#allocation35_spill] sm:$0xff] }
 0x2f4   :  { %v5119_v43 = vpop.f32.mrf.mxu1  ;;  %v5172_v62 = vpop.f32.mrf.mxu0 }
 0x2f5   :  { %11322 = vst [vmem:[#allocation49_spill] sm:$0xff] %v10341_v41  ;;  %v10344_v34 = vadd.f32 %v5119_v43, %v11323_v1  ;;  %v10347_v59 = vadd.f32 %v5172_v62, %v10152_v55  ;;  %v11329_v55 = vld [vmem:[#allocation36_spill] sm:$0xff] }
 0x2f6   :  { %v5121_v39 = vpop.f32.mrf.mxu1  ;;  %v5174_v10 = vpop.f32.mrf.mxu0 }
 0x2f7   :  { %11324 = vst [vmem:[#allocation77_spill] sm:$0xff] %v10347_v59  ;;  %v10350_v17 = vadd.f32 %v5121_v39, %v11325_v26  ;;  %v10353_v20 = vadd.f32 %v5174_v10, %v10158_v37  ;;  %v11330_v37 = vld [vmem:[#allocation70_spill] sm:$0xff] }
 0x2f8   :  { %v5123_v19 = vpop.f32.mrf.mxu1  ;;  %v5176_v60 = vpop.f32.mrf.mxu0 }
 0x2f9   :  { %11326 = vst [vmem:[#allocation81_spill] sm:$0xff] %v10353_v20  ;;  %v10356_v2 = vadd.f32 %v5123_v19, %v11327_v35  ;;  %v10359_v41 = vadd.f32 %v5176_v60, %v10164_v21  ;;  %v11332_v21 = vld [vmem:[#allocation37_spill] sm:$0xff] }
 0x2fa   :  { %v5125_v43 = vpop.f32.mrf.mxu1  ;;  %v5178_v1 = vpop.f32.mrf.mxu0 }
 0x2fb   :  { %11328 = vst [vmem:[#allocation50_spill] sm:$0xff] %v10359_v41  ;;  %v10362_v62 = vadd.f32 %v5125_v43, %v11329_v55  ;;  %v10365_v59 = vadd.f32 %v5178_v1, %v10170_v53 }
 0x2fc   :  { %v5215_v39 = vpop.f32.mrf.mxu1  ;;  %v5268_v26 = vpop.f32.mrf.mxu0 }
 0x2fd   :  { %v10368_v10 = vadd.f32 %v5215_v39, %v11330_v37  ;;  %v10371_v20 = vadd.f32 %v5268_v26, %v10176_v56  ;;  %v11335_v56 = vld [vmem:[#allocation38_spill] sm:$0xff] }
 0x2fe   :  { %v5217_v19 = vpop.f32.mrf.mxu1  ;;  %v5270_v35 = vpop.f32.mrf.mxu0 }
 0x2ff   :  { %11331 = vst [vmem:[#allocation83_spill] sm:$0xff] %v10371_v20  ;;  %v10374_v60 = vadd.f32 %v5217_v19, %v11332_v21  ;;  %v10377_v41 = vadd.f32 %v5270_v35, %v10182_v58  ;;  %v11337_v58 = vld [vmem:[#allocation39_spill] sm:$0xff] }
 0x300   :  { %v5219_v43 = vpop.f32.mrf.mxu1  ;;  %v5272_v55 = vpop.f32.mrf.mxu0 }
 0x301   :  { %11333 = vst [vmem:[#allocation78_spill] sm:$0xff] %v10377_v41  ;;  %v10380_v53 = vadd.f32 %v5219_v43, %v10143_v50  ;;  %v10383_v1 = vadd.f32 %v5272_v55, %v10188_v49  ;;  %v11339_v49 = vld [vmem:[#allocation40_spill] sm:$0xff] }
 0x302   :  { %v5221_v39 = vpop.f32.mrf.mxu1  ;;  %v5274_v37 = vpop.f32.mrf.mxu0 }
 0x303   :  { %11334 = vst [vmem:[#allocation51_spill] sm:$0xff] %v10383_v1  ;;  %v10386_v26 = vadd.f32 %v5221_v39, %v11335_v56  ;;  %v10389_v20 = vadd.f32 %v5274_v37, %v10194_v48 }
 0x304   :  { %v5225_v19 = vpop.f32.mrf.mxu1  ;;  %v5278_v21 = vpop.f32.mrf.mxu0 }
 0x305   :  { %11336 = vst [vmem:[#allocation79_spill] sm:$0xff] %v10389_v20  ;;  %v10392_v35 = vadd.f32 %v5225_v19, %v11337_v58  ;;  %v10395_v41 = vadd.f32 %v5278_v21, %v10200_v12  ;;  %v11342_v12 = vld [vmem:[#allocation41_spill] sm:$0xff] }
 0x306   :  { %v5227_v50 = vpop.f32.mrf.mxu1  ;;  %v5280_v43 = vpop.f32.mrf.mxu0 }
 0x307   :  { %11338 = vst [vmem:[#allocation52_spill] sm:$0xff] %v10395_v41  ;;  %v10398_v55 = vadd.f32 %v5227_v50, %v11339_v49  ;;  %v10401_v1 = vadd.f32 %v5280_v43, %v10206_v3  ;;  %v11344_v3 = vld [vmem:[#allocation72_spill] sm:$0xff] }
 0x308   :  { %v5229_v39 = vpop.f32.mrf.mxu1  ;;  %v5282_v56 = vpop.f32.mrf.mxu0 }
 0x309   :  { %11340 = vst [vmem:[#allocation53_spill] sm:$0xff] %v10401_v1  ;;  %v10404_v48 = vadd.f32 %v5229_v39, %v10167_v7  ;;  %v10407_v37 = vadd.f32 %v5282_v56, %v10212_v4  ;;  %v11346_v4 = vld [vmem:[#allocation42_spill] sm:$0xff] }
 0x30a   :  { %v5231_v19 = vpop.f32.mrf.mxu1  ;;  %v5284_v58 = vpop.f32.mrf.mxu0 }
 0x30b   :  { %11341 = vst [vmem:[#allocation80_spill] sm:$0xff] %v10407_v37  ;;  %v10410_v21 = vadd.f32 %v5231_v19, %v11342_v12  ;;  %v10413_v41 = vadd.f32 %v5284_v58, %v10218_v29 }
 0x30c   :  { %v5321_v50 = vpop.f32.mrf.mxu1  ;;  %v5374_v49 = vpop.f32.mrf.mxu0 }
 0x30d   :  { %11343 = vst [vmem:[#allocation82_spill] sm:$0xff] %v10413_v41  ;;  %v10416_v43 = vadd.f32 %v5321_v50, %v11344_v3  ;;  %v10419_v1 = vadd.f32 %v5374_v49, %v10224_v9 }
 0x30e   :  { %v5323_v7 = vpop.f32.mrf.mxu1  ;;  %v5376_v39 = vpop.f32.mrf.mxu0 }
 0x30f   :  { %11345 = vst [vmem:[#allocation18_spill] sm:$0xff] %v10419_v1  ;;  %v10422_v56 = vadd.f32 %v5323_v7, %v11346_v4  ;;  %v10425_v37 = vadd.f32 %v5376_v39, %v10230_v33  ;;  %v6373_v33 = vlaneseq  ;;  %v11351_v39 = vld [vmem:[#allocation73_spill] sm:$0xff] }
 0x310   :  { %v5325_v19 = vpop.f32.mrf.mxu1  ;;  %v5378_v12 = vpop.f32.mrf.mxu0 }
 0x311   :  { %11347 = vst [vmem:[#allocation58_spill] sm:$0xff] %v10425_v37  ;;  %v10428_v29 = vadd.f32 %v5325_v19, %v10191_v11  ;;  %v10431_v58 = vadd.f32 %v5378_v12, %v10236_v42 }
 0x312   :  { %v5327_v50 = vpop.f32.mrf.mxu1  ;;  %v5380_v3 = vpop.f32.mrf.mxu0 }
 0x313   :  { %11348 = vst [vmem:[#allocation19_spill] sm:$0xff] %v10431_v58  ;;  %v10434_v9 = vadd.f32 %v5327_v50, %v10197_v25  ;;  %v10437_v49 = vadd.f32 %v5380_v3, %v10242_v52  ;;  %v10451_v3 = vshrl.u32 %v6373_v33, 7 }
 0x314   :  { %v5331_v7 = vpop.f32.mrf.mxu1  ;;  %v5384_v4 = vpop.f32.mrf.mxu0 }
 0x315   :  { %11349 = vst [vmem:[#allocation14_spill] sm:$0xff] %v10434_v9  ;;  %11350 = vst [vmem:[#allocation60_spill] sm:$0xff] %v10437_v49  ;;  %v10440_v37 = vadd.f32 %v5331_v7, %v11351_v39  ;;  %v10443_v11 = vadd.f32 %v5384_v4, %v10248_v30  ;;  %v10468_v33 = vsub.s32 0, %v10451_v3  ;;  %v10502_v58 = vsub.s32 4, %v10451_v3 }
 0x316   :  { %v5333_v19 = vpop.f32.mrf.mxu1  ;;  %v5386_v42 = vpop.f32.mrf.mxu0  ;;  %11356 = vst [vmem:[#allocation21_spill] sm:$0xff] %v10451_v3 }
 0x317   :  { %11352 = vst [vmem:[#allocation11_spill] sm:$0xff] %v10440_v37  ;;  %11353 = vst [vmem:[#allocation12_spill] sm:$0xff] %v10443_v11  ;;  %v10446_v12 = vadd.f32 %v5333_v19, %v10209_v44  ;;  %v10449_v25 = vadd.f32 %v5386_v42, %v10254_v13  ;;  %v10465_v13 = vpop.permute.xlu1 %6205 }
 0x318   :  { %v5335_v50 = vpop.f32.mrf.mxu1  ;;  %v5388_v52 = vpop.f32.mrf.mxu0  ;;  %11361 = vst [vmem:[#allocation57_spill] sm:$0xff] %v10468_v33  ;;  %11367 = vst [vmem:[#allocation16_spill] sm:$0xff] %v10502_v58 }
 0x319   :  { %11354 = vst [vmem:[#allocation20_spill] sm:$0xff] %v10446_v12  ;;  %11355 = vst [vmem:[#allocation62_spill] sm:$0xff] %v10449_v25  ;;  %v10454_v49 = vadd.f32 %v5335_v50, %v10215_v36  ;;  %v10457_v7 = vadd.f32 %v5388_v52, %v10260_v47  ;;  %v10471_v36 = vsub.s32 1, %v10451_v3  ;;  %v10537_v12 = vsub.s32 7, %v10451_v3 }
 0x31a   :  { %v5337_v30 = vpop.f32.mrf.mxu1  ;;  %v5390_v4 = vpop.f32.mrf.mxu0 }
 0x31b   :  { %11357 = vst [vmem:[#allocation13_spill] sm:$0xff] %v10454_v49  ;;  %11358 = vst [vmem:[#allocation22_spill] sm:$0xff] %v10457_v7  ;;  %v10460_v39 = vadd.f32 %v5337_v30, %v10221_v22  ;;  %v10463_v44 = vadd.f32 %v5390_v4, %v10266_v23  ;;  %v6367_v22 = vld [vmem:[%s10897_s3] sm:$0xff]  ;;  %v10486_v7 = vsub.s32 2, %v10451_v3 }
 0x31c   :  { %v5427_v19 = vpop.f32.mrf.mxu1  ;;  %v5684_v42 = vpop.f32.mrf.mxu0  ;;  %11362 = vst [vmem:[#allocation54_spill] sm:$0xff] %v10471_v36  ;;  %v10531_v41 = vrot.slane %v6367_v22, %v10502_v58  ;;  %11373 = vst [vmem:[#allocation71_spill] sm:$0xff] %v10537_v12  ;;  %v10568_v9 = vrot.slane %v6367_v22, %v10537_v12 }
 0x31d   :  { %11359 = vst [vmem:[#allocation56_spill] sm:$0xff] %v10460_v39  ;;  %11360 = vst [vmem:[#allocation23_spill] sm:$0xff] %v10463_v44  ;;  %v10474_v47 = vadd.f32 %v5427_v19, %v10227_v8  ;;  %v6127_v50 = vadd.f32 %v5684_v42, %v10272_v63  ;;  %v10489_v8 = vrot.slane %v6367_v22, %v10468_v33  ;;  %v10519_v39 = vsub.s32 5, %v10451_v3 }
 0x31e   :  { %v5429_v23 = vpop.f32.mrf.mxu1  ;;  %v5686_v52 = vpop.f32.mrf.mxu0  ;;  %11365 = vst [vmem:[#allocation55_spill] sm:$0xff] %v10486_v7  ;;  %v10492_v63 = vrot.slane %v6367_v22, %v10471_v36 }
 0x31f   :  { %11363 = vst [vmem:[#allocation59_spill] sm:$0xff] %v10474_v47  ;;  %v10481_v30 = vadd.f32 %v5429_v23, %v10233_v18  ;;  %v6128_v4 = vadd.f32 %v5686_v52, %v10278_v32  ;;  %v6223_v44 = vadd.f32 %v10465_v13, %v6127_v50  ;;  %v10499_v50 = vpop.permute.xlu0 %6210  ;;  %11370 = vst [vmem:[#allocation27_spill] sm:$0xff] %v10519_v39 }
 0x320   :  { %v5431_v19 = vpop.f32.mrf.mxu1  ;;  %v5688_v42 = vpop.f32.mrf.mxu0 }
 0x321   :  { %11364 = vst [vmem:[#allocation24_spill] sm:$0xff] %v10481_v30  ;;  %v6224_v25 = vadd.f32 %v10465_v13, %v6128_v4  ;;  %v6295_v11 = vmax.f32 %v6223_v44, 0.0  ;;  %v10496_v18 = vadd.f32 %v5431_v19, %v10239_v40  ;;  %v6145_v32 = vadd.f32 %v5688_v42, %v10284_v28  ;;  %v10511_v40 = vpop.permute.xlu1 %6215 }
 0x322   :  { %v5433_v23 = vpop.f32.mrf.mxu1  ;;  %v5690_v52 = vpop.f32.mrf.mxu0  ;;  %v10505_v30 = vsub.s32 3, %v10451_v3  ;;  %v10514_v28 = vrot.slane %v6367_v22, %v10486_v7 }
 0x323   :  { %11366 = vst [vmem:[#allocation15_spill] sm:$0xff] %v10496_v18  ;;  %v6296_v47 = vmax.f32 %v6224_v25, 0.0  ;;  %v10508_v1 = vadd.f32 %v5433_v23, %v10245_v0  ;;  %v6146_v44 = vadd.f32 %v5690_v52, %v10290_v45  ;;  %v6463_v4 = vmul.f32 %v10489_v8, %v6295_v11 }
 0x324   :  { %11368 = vst [vmem:[#allocation25_spill] sm:$0xff] %v10505_v30  ;;  %v6241_v19 = vadd.f32 %v10499_v50, %v6145_v32  ;;  %v5437_v42 = vpop.f32.mrf.mxu1  ;;  %v5694_v18 = vpop.f32.mrf.mxu0  ;;  %v10522_v25 = vsub.s32 6, %v10451_v3  ;;  %v10534_v49 = vrot.slane %v6367_v22, %v10505_v30  ;;  %v10551_v3 = vrot.slane %v6367_v22, %v10519_v39 }
 0x325   :  { %11369 = vst [vmem:[#allocation26_spill] sm:$0xff] %v10508_v1  ;;  %v6464_v0 = vmul.f32 %v10492_v63, %v6296_v47  ;;  %v6242_v45 = vadd.f32 %v10499_v50, %v6146_v44  ;;  %v10527_v23 = vadd.f32 %v5437_v42, %v10251_v15  ;;  %v6163_v52 = vadd.f32 %v5694_v18, %v10296_v54  ;;  %v6368_v18 = vld [vmem:[%s10897_s3 + $0x8] sm:$0xff] }
 0x326   :  { %11371 = vst [vmem:[#allocation17_spill] sm:$0xff] %v10522_v25  ;;  %v6313_v11 = vmax.f32 %v6241_v19, 0.0  ;;  %v5439_v1 = vpop.f32.mrf.mxu1  ;;  %v5696_v32 = vpop.f32.mrf.mxu0 }
 0x327   :  { %11372 = vst [vmem:[#allocation28_spill] sm:$0xff] %v10527_v23  ;;  %v10539_v47 = vadd.f32 %v6464_v0, %v6463_v4  ;;  %v6314_v44 = vmax.f32 %v6242_v45, 0.0  ;;  %v10542_v15 = vadd.f32 %v5439_v1, %v10257_v38  ;;  %v6164_v54 = vadd.f32 %v5696_v32, %v10302_v57  ;;  %v10562_v45 = vpop.permute.xlu1 %6220 }
 0x328   :  { %v6481_v19 = vmul.f32 %v10489_v8, %v6313_v11  ;;  %v6259_v42 = vadd.f32 %v10511_v40, %v6163_v52  ;;  %v5441_v23 = vpop.f32.mrf.mxu1  ;;  %v5698_v37 = vpop.f32.mrf.mxu0  ;;  %v10554_v4 = vrot.slane %v6367_v22, %v10522_v25  ;;  %v10582_v22 = vrot.slane %v6368_v18, %v10486_v7 }
 0x329   :  { %11374 = vst [vmem:[#allocation61_spill] sm:$0xff] %v10542_v15  ;;  %v6482_v38 = vmul.f32 %v10492_v63, %v6314_v44  ;;  %v6260_v57 = vadd.f32 %v10511_v40, %v6164_v54  ;;  %v10559_v1 = vadd.f32 %v5441_v23, %v10263_v6  ;;  %v6181_v0 = vadd.f32 %v5698_v37, %v10308_v27 }
 0x32a   :  { %v6331_v52 = vmax.f32 %v6259_v42, 0.0  ;;  %v5443_v11 = vpop.f32.mrf.mxu1  ;;  %v5700_v32 = vpop.f32.mrf.mxu0  ;;  %v10565_v15 = vrot.slane %v6368_v18, %v10468_v33  ;;  %v10571_v44 = vrot.slane %v6368_v18, %v10471_v36  ;;  %v10585_v36 = vrot.slane %v6368_v18, %v10502_v58 }
 0x32b   :  { %11375 = vst [vmem:[#allocation29_spill] sm:$0xff] %v10559_v1  ;;  %v10573_v54 = vadd.f32 %v6482_v38, %v6481_v19  ;;  %v6332_v6 = vmax.f32 %v6260_v57, 0.0  ;;  %v10576_v23 = vadd.f32 %v5443_v11, %v10269_v51  ;;  %v6182_v27 = vadd.f32 %v5700_v32, %v10314_v24  ;;  %v10594_v57 = vld [vmem:[%s10897_s3 + $0x10] sm:$0x3] }
 0x32c   :  { %v6499_v37 = vmul.f32 %v10489_v8, %v6331_v52  ;;  %v6277_v42 = vadd.f32 %v10562_v45, %v6181_v0  ;;  %v5737_v1 = vpop.f32.mrf.mxu1  ;;  %v5790_v20 = vpop.f32.mrf.mxu0  ;;  %v10597_v32 = vrot.slane %v6368_v18, %v10505_v30  ;;  %v10600_v58 = vrot.slane %v6368_v18, %v10519_v39 }
 0x32d   :  { %11376 = vst [vmem:[#allocation63_spill] sm:$0xff] %v10576_v23  ;;  %v6500_v19 = vmul.f32 %v10492_v63, %v6332_v6  ;;  %v6278_v38 = vadd.f32 %v10562_v45, %v6182_v27  ;;  %v6129_v51 = vadd.f32 %v5737_v1, %v10275_v46  ;;  %v6131_v24 = vadd.f32 %v5790_v20, %v10320_v16 }
 0x32e   :  { %v6349_v0 = vmax.f32 %v6277_v42, 0.0  ;;  %v5739_v52 = vpop.f32.mrf.mxu1  ;;  %v5792_v11 = vpop.f32.mrf.mxu0  ;;  %11377 = vst [vmem:[#allocation30_spill] sm:$0xff] %v10597_v32  ;;  %v10603_v6 = vrot.slane %v6368_v18, %v10522_v25  ;;  %v11378_v42 = vld [vmem:[#allocation43_spill] sm:$0xff]  ;;  %v10614_v39 = vrot.slane %v10594_v57, %v10468_v33 }
 0x32f   :  { %v10605_v46 = vadd.f32 %v6500_v19, %v6499_v37  ;;  %v6350_v20 = vmax.f32 %v6278_v38, 0.0  ;;  %v6225_v16 = vadd.f32 %v10465_v13, %v6129_v51  ;;  %v6227_v1 = vadd.f32 %v10465_v13, %v6131_v24 }
 0x330   :  { %v6517_v27 = vmul.f32 %v10489_v8, %v6349_v0  ;;  %v6130_v7 = vadd.f32 %v5739_v52, %v11378_v42  ;;  %v6132_v30 = vadd.f32 %v5792_v11, %v10326_v5  ;;  %v5741_v23 = vpop.f32.mrf.mxu1  ;;  %v5794_v32 = vpop.f32.mrf.mxu0  ;;  %11379 = vst [vmem:[#allocation64_spill] sm:$0xff] %v10614_v39  ;;  %v10622_v11 = vrot.slane %v6368_v18, %v10537_v12 }
 0x331   :  { %v6518_v37 = vmul.f32 %v10492_v63, %v6350_v20  ;;  %v6297_v19 = vmax.f32 %v6225_v16, 0.0  ;;  %v6299_v38 = vmax.f32 %v6227_v1, 0.0  ;;  %v6147_v51 = vadd.f32 %v5741_v23, %v10287_v14 }
 0x332   :  { %v6226_v24 = vadd.f32 %v10465_v13, %v6130_v7  ;;  %v6228_v8 = vadd.f32 %v10465_v13, %v6132_v30  ;;  %v6149_v0 = vadd.f32 %v5794_v32, %v10332_v61  ;;  %v5743_v52 = vpop.f32.mrf.mxu1  ;;  %v5796_v5 = vpop.f32.mrf.mxu0  ;;  %v11380_v30 = vld [vmem:[#allocation74_spill] sm:$0xff] }
 0x333   :  { %v10624_v42 = vadd.f32 %v6518_v37, %v6517_v27  ;;  %v6465_v25 = vmul.f32 %v10514_v28, %v6297_v19  ;;  %v6467_v63 = vmul.f32 %v10531_v41, %v6299_v38  ;;  %v6243_v20 = vadd.f32 %v10499_v50, %v6147_v51  ;;  %v11381_v37 = vld [vmem:[#allocation44_spill] sm:$0xff] }
 0x334   :  { %v6298_v14 = vmax.f32 %v6226_v24, 0.0  ;;  %v6300_v23 = vmax.f32 %v6228_v8, 0.0  ;;  %v6245_v7 = vadd.f32 %v10499_v50, %v6149_v0  ;;  %v6148_v16 = vadd.f32 %v5743_v52, %v11380_v30  ;;  %v5747_v61 = vpop.f32.mrf.mxu1  ;;  %v5800_v32 = vpop.f32.mrf.mxu0 }
 0x335   :  { %v6536_v1 = vadd.f32 %v10539_v47, %v6465_v25  ;;  %v6315_v18 = vmax.f32 %v6243_v20, 0.0  ;;  %v6150_v27 = vadd.f32 %v5796_v5, %v10338_v31  ;;  %v6165_v12 = vadd.f32 %v5747_v61, %v11381_v37 }
 0x336   :  { %v6466_v19 = vmul.f32 %v10534_v49, %v6298_v14  ;;  %v6468_v38 = vmul.f32 %v10551_v3, %v6300_v23  ;;  %v6317_v51 = vmax.f32 %v6245_v7, 0.0  ;;  %v6244_v24 = vadd.f32 %v10499_v50, %v6148_v16  ;;  %v5749_v8 = vpop.f32.mrf.mxu1  ;;  %v5802_v0 = vpop.f32.mrf.mxu0  ;;  %v11382_v14 = vld [vmem:[#allocation45_spill] sm:$0xff] }
 0x337   :  { %v6483_v52 = vmul.f32 %v10514_v28, %v6315_v18  ;;  %v6246_v30 = vadd.f32 %v10499_v50, %v6150_v27  ;;  %v6261_v25 = vadd.f32 %v10511_v40, %v6165_v12  ;;  %v6167_v47 = vadd.f32 %v5800_v32, %v10344_v34 }
 0x338   :  { %v6537_v31 = vadd.f32 %v6536_v1, %v6466_v19  ;;  %v6485_v5 = vmul.f32 %v10531_v41, %v6317_v51  ;;  %v6316_v20 = vmax.f32 %v6244_v24, 0.0  ;;  %v6166_v61 = vadd.f32 %v5749_v8, %v11382_v14  ;;  %v5751_v23 = vpop.f32.mrf.mxu1  ;;  %v5804_v7 = vpop.f32.mrf.mxu0  ;;  %v11383_v8 = vld [vmem:[#allocation46_spill] sm:$0xff] }
 0x339   :  { %v6555_v16 = vadd.f32 %v10573_v54, %v6483_v52  ;;  %v6318_v37 = vmax.f32 %v6246_v30, 0.0  ;;  %v6333_v33 = vmax.f32 %v6261_v25, 0.0  ;;  %v6263_v18 = vadd.f32 %v10511_v40, %v6167_v47 }
 0x33a   :  { %v6538_v39 = vadd.f32 %v6537_v31, %v6467_v63  ;;  %v6484_v27 = vmul.f32 %v10534_v49, %v6316_v20  ;;  %v6262_v12 = vadd.f32 %v10511_v40, %v6166_v61  ;;  %v6168_v34 = vadd.f32 %v5802_v0, %v10350_v17  ;;  %v5753_v32 = vpop.f32.mrf.mxu1  ;;  %v5806_v1 = vpop.f32.mrf.mxu0 }
 0x33b   :  { %v6486_v19 = vmul.f32 %v10551_v3, %v6318_v37  ;;  %v6501_v51 = vmul.f32 %v10514_v28, %v6333_v33  ;;  %v6335_v24 = vmax.f32 %v6263_v18, 0.0  ;;  %v6183_v54 = vadd.f32 %v5751_v23, %v11383_v8  ;;  %v11384_v23 = vld [vmem:[#allocation47_spill] sm:$0xff] }
 0x33c   :  { %v6539_v52 = vadd.f32 %v6538_v39, %v6468_v38  ;;  %v6556_v30 = vadd.f32 %v6555_v16, %v6484_v27  ;;  %v6334_v25 = vmax.f32 %v6262_v12, 0.0  ;;  %v6264_v63 = vadd.f32 %v10511_v40, %v6168_v34  ;;  %v5843_v47 = vpop.f32.mrf.mxu1  ;;  %v5896_v31 = vpop.f32.mrf.mxu0 }
 0x33d   :  { %v6574_v20 = vadd.f32 %v10605_v46, %v6501_v51  ;;  %v6503_v17 = vmul.f32 %v10531_v41, %v6335_v24  ;;  %v6279_v0 = vadd.f32 %v10562_v45, %v6183_v54  ;;  %v6185_v14 = vadd.f32 %v5804_v7, %v10356_v2  ;;  %v11385_v46 = vld [vmem:[#allocation75_spill] sm:$0xff] }
 0x33e   :  { %v6557_v61 = vadd.f32 %v6556_v30, %v6485_v5  ;;  %v6502_v33 = vmul.f32 %v10534_v49, %v6334_v25  ;;  %v6336_v37 = vmax.f32 %v6264_v63, 0.0  ;;  %v6184_v39 = vadd.f32 %v5753_v32, %v11384_v23  ;;  %v5845_v38 = vpop.f32.mrf.mxu1  ;;  %v5898_v16 = vpop.f32.mrf.mxu0 }
 0x33f   :  { %v6351_v18 = vmax.f32 %v6279_v0, 0.0  ;;  %v6281_v27 = vadd.f32 %v10562_v45, %v6185_v14  ;;  %v6186_v12 = vadd.f32 %v5806_v1, %v10362_v62  ;;  %v6133_v34 = vadd.f32 %v5843_v47, %v11385_v46 }
 0x340   :  { %v10661_v51 = vadd.f32 %v6557_v61, %v6486_v19  ;;  %v6575_v24 = vadd.f32 %v6574_v20, %v6502_v33  ;;  %v6504_v2 = vmul.f32 %v10551_v3, %v6336_v37  ;;  %v6280_v5 = vadd.f32 %v10562_v45, %v6184_v39  ;;  %v5847_v7 = vpop.f32.mrf.mxu1  ;;  %v5900_v8 = vpop.f32.mrf.mxu0  ;;  %v11386_v19 = vld [vmem:[#allocation48_spill] sm:$0xff] }
 0x341   :  { %v6519_v32 = vmul.f32 %v10514_v28, %v6351_v18  ;;  %v6353_v54 = vmax.f32 %v6281_v27, 0.0  ;;  %v6282_v30 = vadd.f32 %v10562_v45, %v6186_v12  ;;  %v6229_v25 = vadd.f32 %v10465_v13, %v6133_v34  ;;  %v11387_v27 = vld [vmem:[#allocation76_spill] sm:$0xff] }
 0x342   :  { %v6576_v63 = vadd.f32 %v6575_v24, %v6503_v17  ;;  %v6352_v62 = vmax.f32 %v6280_v5, 0.0  ;;  %v6135_v1 = vadd.f32 %v5896_v31, %v10368_v10  ;;  %v6134_v47 = vadd.f32 %v5845_v38, %v11386_v19  ;;  %v5849_v20 = vpop.f32.mrf.mxu1  ;;  %v5902_v0 = vpop.f32.mrf.mxu0 }
 0x343   :  { %v6593_v14 = vadd.f32 %v10624_v42, %v6519_v32  ;;  %v6521_v61 = vmul.f32 %v10531_v41, %v6353_v54  ;;  %v6354_v33 = vmax.f32 %v6282_v30, 0.0  ;;  %v6301_v37 = vmax.f32 %v6229_v25, 0.0  ;;  %v11388_v30 = vld [vmem:[#allocation49_spill] sm:$0xff] }
 0x344   :  { %v10672_v28 = vadd.f32 %v6576_v63, %v6504_v2  ;;  %v6520_v23 = vmul.f32 %v10534_v49, %v6352_v62  ;;  %v6231_v39 = vadd.f32 %v10465_v13, %v6135_v1  ;;  %v6230_v17 = vadd.f32 %v10465_v13, %v6134_v47  ;;  %v5853_v18 = vpop.f32.mrf.mxu1  ;;  %v5906_v10 = vpop.f32.mrf.mxu0 }
 0x345   :  { %v6522_v31 = vmul.f32 %v10551_v3, %v6354_v33  ;;  %v6469_v38 = vmul.f32 %v10554_v4, %v6301_v37  ;;  %v6136_v42 = vadd.f32 %v5898_v16, %v10374_v60  ;;  %v6151_v41 = vadd.f32 %v5847_v7, %v11387_v27 }
 0x346   :  { %v6594_v12 = vadd.f32 %v6593_v14, %v6520_v23  ;;  %v6303_v46 = vmax.f32 %v6231_v39, 0.0  ;;  %v6302_v34 = vmax.f32 %v6230_v17, 0.0  ;;  %v6153_v24 = vadd.f32 %v5900_v8, %v10380_v53  ;;  %v5855_v49 = vpop.f32.mrf.mxu1  ;;  %v5908_v2 = vpop.f32.mrf.mxu0 }
 0x347   :  { %v6540_v5 = vadd.f32 %v6539_v52, %v6469_v38  ;;  %v6232_v32 = vadd.f32 %v10465_v13, %v6136_v42  ;;  %v6247_v54 = vadd.f32 %v10499_v50, %v6151_v41  ;;  %v6152_v3 = vadd.f32 %v5849_v20, %v11388_v30  ;;  %v11389_v20 = vld [vmem:[#allocation77_spill] sm:$0xff] }
 0x348   :  { %v6595_v25 = vadd.f32 %v6594_v12, %v6521_v61  ;;  %v6471_v63 = vmul.f32 %v10565_v15, %v6303_v46  ;;  %v6470_v60 = vmul.f32 %v10568_v9, %v6302_v34  ;;  %v6249_v16 = vadd.f32 %v10499_v50, %v6153_v24  ;;  %v5857_v7 = vpop.f32.mrf.mxu1  ;;  %v5910_v62 = vpop.f32.mrf.mxu0  ;;  %v11390_v34 = vld [vmem:[#allocation81_spill] sm:$0xff] }
 0x349   :  { %v6304_v1 = vmax.f32 %v6232_v32, 0.0  ;;  %v6319_v53 = vmax.f32 %v6247_v54, 0.0  ;;  %v6248_v8 = vadd.f32 %v10499_v50, %v6152_v3  ;;  %v6154_v52 = vadd.f32 %v5902_v0, %v10386_v26 }
 0x34a   :  { %v10690_v19 = vadd.f32 %v6595_v25, %v6522_v31  ;;  %v6541_v47 = vadd.f32 %v6540_v5, %v6470_v60  ;;  %v6321_v14 = vmax.f32 %v6249_v16, 0.0  ;;  %v6169_v61 = vadd.f32 %v5853_v18, %v11389_v20  ;;  %v5859_v33 = vpop.f32.mrf.mxu1  ;;  %v5912_v37 = vpop.f32.mrf.mxu0 }
 0x34b   :  { %v6472_v23 = vmul.f32 %v10571_v44, %v6304_v1  ;;  %v6487_v39 = vmul.f32 %v10554_v4, %v6319_v53  ;;  %v6320_v17 = vmax.f32 %v6248_v8, 0.0  ;;  %v6250_v38 = vadd.f32 %v10499_v50, %v6154_v52 }
 0x34c   :  { %v6542_v42 = vadd.f32 %v6541_v47, %v6471_v63  ;;  %v6489_v27 = vmul.f32 %v10565_v15, %v6321_v14  ;;  %v6265_v26 = vadd.f32 %v10511_v40, %v6169_v61  ;;  %v6171_v0 = vadd.f32 %v5906_v10, %v10392_v35  ;;  %v5949_v31 = vpop.f32.mrf.mxu1  ;;  %v6002_v41 = vpop.f32.mrf.mxu0 }
 0x34d   :  { %v6559_v18 = vadd.f32 %v10661_v51, %v6487_v39  ;;  %v6488_v12 = vmul.f32 %v10568_v9, %v6320_v17  ;;  %v6322_v46 = vmax.f32 %v6250_v38, 0.0  ;;  %v6170_v24 = vadd.f32 %v5855_v49, %v11390_v34  ;;  %v11391_v51 = vld [vmem:[#allocation50_spill] sm:$0xff] }
 0x34e   :  { %v10702_v5 = vadd.f32 %v6542_v42, %v6472_v23  ;;  %v6337_v32 = vmax.f32 %v6265_v26, 0.0  ;;  %v6267_v54 = vadd.f32 %v10511_v40, %v6171_v0  ;;  %v6172_v30 = vadd.f32 %v5908_v2, %v10398_v55  ;;  %v5951_v3 = vpop.f32.mrf.mxu1  ;;  %v6004_v25 = vpop.f32.mrf.mxu0 }
 0x34f   :  { %v6560_v63 = vadd.f32 %v6559_v18, %v6488_v12  ;;  %v6490_v35 = vmul.f32 %v10571_v44, %v6322_v46  ;;  %v6266_v10 = vadd.f32 %v10511_v40, %v6170_v24  ;;  %v6187_v60 = vadd.f32 %v5857_v7, %v11391_v51 }
 0x350   :  { %v6505_v16 = vmul.f32 %v10554_v4, %v6337_v32  ;;  %v6339_v1 = vmax.f32 %v6267_v54, 0.0  ;;  %v6268_v49 = vadd.f32 %v10511_v40, %v6172_v30  ;;  %v6189_v53 = vadd.f32 %v5910_v62, %v10404_v48  ;;  %v5953_v8 = vpop.f32.mrf.mxu1  ;;  %v6006_v52 = vpop.f32.mrf.mxu0 }
 0x351   :  { %v6561_v47 = vadd.f32 %v6560_v63, %v6489_v27  ;;  %v6338_v55 = vmax.f32 %v6266_v10, 0.0  ;;  %v6283_v2 = vadd.f32 %v10562_v45, %v6187_v60  ;;  %v6188_v14 = vadd.f32 %v5859_v33, %v10365_v59  ;;  %v11393_v63 = vld [vmem:[#allocation78_spill] sm:$0xff] }
 0x352   :  { %v6578_v20 = vadd.f32 %v10672_v28, %v6505_v16  ;;  %v6507_v61 = vmul.f32 %v10565_v15, %v6339_v1  ;;  %v6340_v7 = vmax.f32 %v6268_v49, 0.0  ;;  %v6285_v23 = vadd.f32 %v10562_v45, %v6189_v53  ;;  %v5955_v39 = vpop.f32.mrf.mxu1  ;;  %v6008_v17 = vpop.f32.mrf.mxu0  ;;  %v11392_v28 = vld [vmem:[#allocation83_spill] sm:$0xff] }
 0x353   :  { %v10717_v38 = vadd.f32 %v6561_v47, %v6490_v35  ;;  %v6506_v48 = vmul.f32 %v10568_v9, %v6338_v55  ;;  %v6355_v62 = vmax.f32 %v6283_v2, 0.0  ;;  %v6284_v42 = vadd.f32 %v10562_v45, %v6188_v14  ;;  %v11394_v47 = vld [vmem:[#allocation51_spill] sm:$0xff] }
 0x354   :  { %v6508_v27 = vmul.f32 %v10571_v44, %v6340_v7  ;;  %v6357_v26 = vmax.f32 %v6285_v23, 0.0  ;;  %v6190_v59 = vadd.f32 %v5912_v37, %v10410_v21  ;;  %v6137_v33 = vadd.f32 %v5949_v31, %v11392_v28  ;;  %v5959_v0 = vpop.f32.mrf.mxu1  ;;  %v6012_v18 = vpop.f32.mrf.mxu0 }
 0x355   :  { %v6579_v12 = vadd.f32 %v6578_v20, %v6506_v48  ;;  %v6523_v46 = vmul.f32 %v10554_v4, %v6355_v62  ;;  %v6356_v34 = vmax.f32 %v6284_v42, 0.0  ;;  %v6139_v24 = vadd.f32 %v6002_v41, %v10416_v43  ;;  %v11395_v62 = vld [vmem:[#allocation30_spill] sm:$0xff] }
 0x356   :  { %v6525_v32 = vmul.f32 %v10565_v15, %v6357_v26  ;;  %v6286_v54 = vadd.f32 %v10562_v45, %v6190_v59  ;;  %v6233_v30 = vadd.f32 %v10465_v13, %v6137_v33  ;;  %v6138_v35 = vadd.f32 %v5951_v3, %v11393_v63  ;;  %v5961_v10 = vpop.f32.mrf.mxu1  ;;  %v6014_v21 = vpop.f32.mrf.mxu0 }
 0x357   :  { %v6580_v37 = vadd.f32 %v6579_v12, %v6507_v61  ;;  %v6597_v31 = vadd.f32 %v10690_v19, %v6523_v46  ;;  %v6524_v51 = vmul.f32 %v10568_v9, %v6356_v34  ;;  %v6235_v4 = vadd.f32 %v10465_v13, %v6139_v24  ;;  %v11397_v46 = vld [vmem:[#allocation14_spill] sm:$0xff] }
 0x358   :  { %v6358_v60 = vmax.f32 %v6286_v54, 0.0  ;;  %v6305_v16 = vmax.f32 %v6233_v30, 0.0  ;;  %v6234_v43 = vadd.f32 %v10465_v13, %v6138_v35  ;;  %v6140_v15 = vadd.f32 %v6004_v25, %v10422_v56  ;;  %v5963_v41 = vpop.f32.mrf.mxu1  ;;  %v6016_v1 = vpop.f32.mrf.mxu0  ;;  %v11399_v35 = vld [vmem:[#allocation11_spill] sm:$0xff] }
 0x359   :  { %v6581_v49 = vadd.f32 %v6580_v37, %v6508_v27  ;;  %v6598_v53 = vadd.f32 %v6597_v31, %v6524_v51  ;;  %v6307_v3 = vmax.f32 %v6235_v4, 0.0  ;;  %v6155_v55 = vadd.f32 %v5953_v8, %v11394_v47 }
 0x35a   :  { %v6526_v2 = vmul.f32 %v10571_v44, %v6358_v60  ;;  %v6473_v19 = vmul.f32 %v10582_v22, %v6305_v16  ;;  %v6306_v9 = vmax.f32 %v6234_v43, 0.0  ;;  %v6236_v14 = vadd.f32 %v10465_v13, %v6140_v15  ;;  %v5965_v20 = vpop.f32.mrf.mxu1  ;;  %v6018_v61 = vpop.f32.mrf.mxu0  ;;  %v11396_v44 = vld [vmem:[#allocation79_spill] sm:$0xff]  ;;  %v11400_v60 = vld [vmem:[#allocation53_spill] sm:$0xff] }
 0x35b   :  { %v6599_v7 = vadd.f32 %v6598_v53, %v6525_v32  ;;  %v6475_v23 = vmul.f32 %v10585_v36, %v6307_v3  ;;  %v6251_v56 = vadd.f32 %v10499_v50, %v6155_v55  ;;  %v6157_v25 = vadd.f32 %v6006_v52, %v10428_v29 }
 0x35c   :  { %v6544_v48 = vadd.f32 %v10702_v5, %v6473_v19  ;;  %v6474_v8 = vmul.f32 %v11395_v62, %v6306_v9  ;;  %v6308_v42 = vmax.f32 %v6236_v14, 0.0  ;;  %v6156_v27 = vadd.f32 %v5955_v39, %v11396_v44  ;;  %v6055_v26 = vpop.f32.mrf.mxu1  ;;  %v6108_v59 = vpop.f32.mrf.mxu0  ;;  %v11398_v5 = vld [vmem:[#allocation52_spill] sm:$0xff] }
 0x35d   :  { %v10745_v28 = vadd.f32 %v6599_v7, %v6526_v2  ;;  %v6323_v33 = vmax.f32 %v6251_v56, 0.0  ;;  %v6253_v12 = vadd.f32 %v10499_v50, %v6157_v25  ;;  %v6158_v34 = vadd.f32 %v6008_v17, %v11397_v46  ;;  %v11401_v14 = vld [vmem:[#allocation20_spill] sm:$0xff] }
 0x35e   :  { %v6545_v24 = vadd.f32 %v6544_v48, %v6474_v8  ;;  %v6476_v32 = vmul.f32 %v10600_v58, %v6308_v42  ;;  %v6252_v29 = vadd.f32 %v10499_v50, %v6156_v27  ;;  %v6173_v52 = vadd.f32 %v5959_v0, %v11398_v5  ;;  %v6057_v54 = vpop.f32.mrf.mxu1  ;;  %v6110_v31 = vpop.f32.mrf.mxu0  ;;  %v11402_v7 = vld [vmem:[#allocation80_spill] sm:$0xff]  ;;  %v11403_v8 = vld [vmem:[#allocation13_spill] sm:$0xff] }
 0x35f   :  { %v6491_v30 = vmul.f32 %v10582_v22, %v6323_v33  ;;  %v6325_v39 = vmax.f32 %v6253_v12, 0.0  ;;  %v6254_v63 = vadd.f32 %v10499_v50, %v6158_v34  ;;  %v6175_v37 = vadd.f32 %v6012_v18, %v11399_v35  ;;  %v11404_v12 = vld [vmem:[#allocation82_spill] sm:$0xff] }
 0x360   :  { %v6546_v51 = vadd.f32 %v6545_v24, %v6475_v23  ;;  %v6324_v4 = vmax.f32 %v6252_v29, 0.0  ;;  %v6269_v17 = vadd.f32 %v10511_v40, %v6173_v52  ;;  %v6174_v16 = vadd.f32 %v5961_v10, %v11400_v60  ;;  %v6059_v2 = vpop.f32.mrf.mxu1  ;;  %v6112_v23 = vpop.f32.mrf.mxu0 }
 0x361   :  { %v6563_v43 = vadd.f32 %v10717_v38, %v6491_v30  ;;  %v6493_v15 = vmul.f32 %v10585_v36, %v6325_v39  ;;  %v6326_v0 = vmax.f32 %v6254_v63, 0.0  ;;  %v6271_v53 = vadd.f32 %v10511_v40, %v6175_v37 }
 0x362   :  { %v10760_v3 = vadd.f32 %v6546_v51, %v6476_v32  ;;  %v6492_v47 = vmul.f32 %v11395_v62, %v6324_v4  ;;  %v6341_v55 = vmax.f32 %v6269_v17, 0.0  ;;  %v6270_v18 = vadd.f32 %v10511_v40, %v6174_v16  ;;  %v6061_v32 = vpop.f32.mrf.mxu1  ;;  %v6114_v39 = vpop.f32.mrf.mxu0  ;;  %v11406_v51 = vld [vmem:[#allocation18_spill] sm:$0xff] }
 0x363   :  { %v6494_v19 = vmul.f32 %v10600_v58, %v6326_v0  ;;  %v6343_v9 = vmax.f32 %v6271_v53, 0.0  ;;  %v6176_v10 = vadd.f32 %v6014_v21, %v11401_v14  ;;  %v6191_v38 = vadd.f32 %v5963_v41, %v11402_v7  ;;  %v11407_v0 = vld [vmem:[#allocation59_spill] sm:$0xff]  ;;  %v11409_v7 = vld [vmem:[#allocation24_spill] sm:$0xff] }
 0x364   :  { %v6564_v56 = vadd.f32 %v6563_v43, %v6492_v47  ;;  %v6509_v25 = vmul.f32 %v10582_v22, %v6341_v55  ;;  %v6342_v48 = vmax.f32 %v6270_v18, 0.0  ;;  %v6193_v42 = vadd.f32 %v6016_v1, %v11403_v8  ;;  %v11405_v1 = vld [vmem:[#allocation56_spill] sm:$0xff]  ;;  %v6065_v53 = vpop.f32.mrf.mxu1  ;;  %v11408_v18 = vld [vmem:[#allocation58_spill] sm:$0xff] }
 0x365   :  { %v6511_v44 = vmul.f32 %v10585_v36, %v6343_v9  ;;  %v6272_v27 = vadd.f32 %v10511_v40, %v6176_v10  ;;  %v6287_v33 = vadd.f32 %v10562_v45, %v6191_v38  ;;  %v6192_v46 = vadd.f32 %v5965_v20, %v11404_v12  ;;  %v6118_v9 = vpop.f32.mrf.mxu0 }
 0x366   :  { %v6565_v34 = vadd.f32 %v6564_v56, %v6493_v15  ;;  %v6582_v24 = vadd.f32 %v6581_v49, %v6509_v25  ;;  %v6510_v21 = vmul.f32 %v11395_v62, %v6342_v48  ;;  %v6289_v41 = vadd.f32 %v10562_v45, %v6193_v42  ;;  %v11410_v25 = vld [vmem:[#allocation19_spill] sm:$0xff] }
 0x367   :  { %v6344_v29 = vmax.f32 %v6272_v27, 0.0  ;;  %v6359_v5 = vmax.f32 %v6287_v33, 0.0  ;;  %v6288_v52 = vadd.f32 %v10562_v45, %v6192_v46  ;;  %v6194_v30 = vadd.f32 %v6018_v61, %v11405_v1 }
 0x368   :  { %v6566_v63 = vadd.f32 %v6565_v34, %v6494_v19  ;;  %v6583_v35 = vadd.f32 %v6582_v24, %v6510_v21  ;;  %v6361_v37 = vmax.f32 %v6289_v41, 0.0  ;;  %v6141_v4 = vadd.f32 %v6055_v26, %v11406_v51  ;;  %v6120_v34 = vpop.f32.mrf.mxu0  ;;  %v11413_v24 = vld [vmem:[#allocation54_spill] sm:$0xff] }
 0x369   :  { %v6512_v20 = vmul.f32 %v10600_v58, %v6344_v29  ;;  %v6527_v49 = vmul.f32 %v10582_v22, %v6359_v5  ;;  %v6360_v17 = vmax.f32 %v6288_v52, 0.0  ;;  %v6290_v60 = vadd.f32 %v10562_v45, %v6194_v30  ;;  %v11414_v5 = vld [vmem:[#allocation64_spill] sm:$0xff]  ;;  %v11415_v30 = vld [vmem:[#allocation26_spill] sm:$0xff] }
 0x36a   :  { %v6584_v16 = vadd.f32 %v6583_v35, %v6511_v44  ;;  %v6529_v43 = vmul.f32 %v10585_v36, %v6361_v37  ;;  %v6237_v15 = vadd.f32 %v10465_v13, %v6141_v4  ;;  %v6143_v61 = vadd.f32 %v6108_v59, %v11407_v0  ;;  %v6067_v44 = vpop.f32.mrf.mxu1  ;;  %v11416_v35 = vld [vmem:[#allocation12_spill] sm:$0xff] }
 0x36b   :  { %v6601_v47 = vadd.f32 %v10745_v28, %v6527_v49  ;;  %v6528_v55 = vmul.f32 %v11395_v62, %v6360_v17  ;;  %v6362_v26 = vmax.f32 %v6290_v60, 0.0  ;;  %v6142_v19 = vadd.f32 %v6057_v54, %v11408_v18  ;;  %v11411_v54 = vld [vmem:[#allocation15_spill] sm:$0xff]  ;;  %v6122_v17 = vpop.f32.mrf.mxu0 }
 0x36c   :  { %v6585_v22 = vadd.f32 %v6584_v16, %v6512_v20  ;;  %v6309_v14 = vmax.f32 %v6237_v15, 0.0  ;;  %v6239_v10 = vadd.f32 %v10465_v13, %v6143_v61  ;;  %v6144_v38 = vadd.f32 %v6110_v31, %v11409_v7  ;;  %v11412_v31 = vld [vmem:[#allocation60_spill] sm:$0xff]  ;;  %v11418_v15 = vld [vmem:[#allocation62_spill] sm:$0xff] }
 0x36d   :  { %v6602_v36 = vadd.f32 %v6601_v47, %v6528_v55  ;;  %v6530_v56 = vmul.f32 %v10600_v58, %v6362_v26  ;;  %v6238_v59 = vadd.f32 %v10465_v13, %v6142_v19  ;;  %v6159_v48 = vadd.f32 %v6059_v2, %v11410_v25  ;;  %v11417_v20 = vld [vmem:[#allocation28_spill] sm:$0xff]  ;;  %v11419_v47 = vld [vmem:[#allocation61_spill] sm:$0xff] }
 0x36e   :  { %v6477_v28 = vmul.f32 %v10603_v6, %v6309_v14  ;;  %v6311_v62 = vmax.f32 %v6239_v10, 0.0  ;;  %v6240_v8 = vadd.f32 %v10465_v13, %v6144_v38  ;;  %v6161_v42 = vadd.f32 %v6112_v23, %v11411_v54 }
 0x36f   :  { %v6603_v27 = vadd.f32 %v6602_v36, %v6529_v43  ;;  %v6310_v33 = vmax.f32 %v6238_v59, 0.0  ;;  %v6255_v12 = vadd.f32 %v10499_v50, %v6159_v48  ;;  %v6160_v46 = vadd.f32 %v6061_v32, %v11412_v31  ;;  %v11421_v36 = vld [vmem:[#allocation29_spill] sm:$0xff] }
 0x370   :  { %v6548_v58 = vadd.f32 %v10760_v3, %v6477_v28  ;;  %v10800_v2 = vrot.slane %v10594_v57, %v11413_v24  ;;  %v6257_v21 = vadd.f32 %v10499_v50, %v6161_v42  ;;  %v6479_v52 = vmul.f32 %v11414_v5, %v6311_v62  ;;  %v6069_v3 = vpop.f32.mrf.mxu1  ;;  %v11422_v42 = vld [vmem:[#allocation23_spill] sm:$0xff] }
 0x371   :  { %v6604_v41 = vadd.f32 %v6603_v27, %v6530_v56  ;;  %v6478_v13 = vmul.f32 %v10622_v11, %v6310_v33  ;;  %v6327_v23 = vmax.f32 %v6255_v12, 0.0  ;;  %v6256_v29 = vadd.f32 %v10499_v50, %v6160_v46  ;;  %v11423_v12 = vld [vmem:[#allocation63_spill] sm:$0xff] }
 0x372   :  { %v6312_v1 = vmax.f32 %v6240_v8, 0.0  ;;  %v6162_v32 = vadd.f32 %v6114_v39, %v11415_v30  ;;  %v6177_v37 = vadd.f32 %v6065_v53, %v11416_v35  ;;  %v6179_v49 = vadd.f32 %v6118_v9, %v11417_v20  ;;  %v11420_v9 = vld [vmem:[#allocation22_spill] sm:$0xff]  ;;  %v6071_v10 = vpop.f32.mrf.mxu1 }
 0x373   :  { %v6549_v51 = vadd.f32 %v6548_v58, %v6478_v13  ;;  %v6495_v57 = vmul.f32 %v10603_v6, %v6327_v23  ;;  %v6328_v4 = vmax.f32 %v6256_v29, 0.0  ;;  %v6329_v60 = vmax.f32 %v6257_v21, 0.0 }
 0x374   :  { %v6258_v16 = vadd.f32 %v10499_v50, %v6162_v32  ;;  %v6273_v43 = vadd.f32 %v10511_v40, %v6177_v37  ;;  %v6178_v0 = vadd.f32 %v6067_v44, %v11418_v15  ;;  %v6275_v53 = vadd.f32 %v10511_v40, %v6179_v49 }
 0x375   :  { %v6567_v61 = vadd.f32 %v6566_v63, %v6495_v57  ;;  %v6496_v39 = vmul.f32 %v10622_v11, %v6328_v4  ;;  %v6180_v55 = vadd.f32 %v6120_v34, %v11419_v47  ;;  %v6195_v14 = vadd.f32 %v6069_v3, %v11420_v9  ;;  %v6124_v63 = vpop.f32.mrf.mxu0  ;;  %v6622_v47 = vld [vmem:[#allocation5 + $0x38] sm:$0xff] }
 0x376   :  { %v6330_v26 = vmax.f32 %v6258_v16, 0.0  ;;  %v6345_v18 = vmax.f32 %v6273_v43, 0.0  ;;  %v6274_v19 = vadd.f32 %v10511_v40, %v6178_v0  ;;  %v6347_v50 = vmax.f32 %v6275_v53, 0.0  ;;  %v6616_v43 = vld [vmem:[#allocation5 + $0x8] sm:$0xff]  ;;  %v6617_v0 = vld [vmem:[#allocation5 + $0x10] sm:$0xff] }
 0x377   :  { %v6568_v7 = vadd.f32 %v6567_v61, %v6496_v39  ;;  %v6276_v38 = vadd.f32 %v10511_v40, %v6180_v55  ;;  %v6197_v56 = vadd.f32 %v6122_v17, %v11421_v36  ;;  %v6480_v59 = vmul.f32 %v10800_v2, %v6312_v1  ;;  %v6618_v61 = vld [vmem:[#allocation5 + $0x18] sm:$0xff]  ;;  %v6620_v53 = vld [vmem:[#allocation5 + $0x28] sm:$0xff] }
 0x378   :  { %v6513_v25 = vmul.f32 %v10603_v6, %v6345_v18  ;;  %v6346_v48 = vmax.f32 %v6274_v19, 0.0  ;;  %v6291_v28 = vadd.f32 %v10562_v45, %v6195_v14  ;;  %v6497_v62 = vmul.f32 %v11414_v5, %v6329_v60  ;;  %v11424_v55 = vld [vmem:[#allocation57_spill] sm:$0xff]  ;;  %v11425_v19 = vld [vmem:[#allocation55_spill] sm:$0xff] }
 0x379   :  { %v6348_v8 = vmax.f32 %v6276_v38, 0.0  ;;  %v6293_v54 = vadd.f32 %v10562_v45, %v6197_v56  ;;  %v6196_v44 = vadd.f32 %v6071_v10, %v11422_v42  ;;  %v6198_v31 = vadd.f32 %v6124_v63, %v11423_v12  ;;  %v6625_v38 = vld [vmem:[#allocation5 + $0x50] sm:$0xff]  ;;  %v11426_v36 = vld [vmem:[#allocation25_spill] sm:$0xff] }
 0x37a   :  { %v6586_v27 = vadd.f32 %v6585_v22, %v6513_v25  ;;  %v6514_v40 = vmul.f32 %v10622_v11, %v6346_v48  ;;  %v6363_v33 = vmax.f32 %v6291_v28, 0.0  ;;  %v6498_v46 = vmul.f32 %v10800_v2, %v6330_v26  ;;  %v11427_v63 = vld [vmem:[#allocation16_spill] sm:$0xff]  ;;  %v11428_v25 = vld [vmem:[#allocation27_spill] sm:$0xff]  ;;  %v11429_v42 = vld [vmem:[#allocation17_spill] sm:$0xff] }
 0x37b   :  { %v6515_v34 = vmul.f32 %v11414_v5, %v6347_v50  ;;  %v6292_v58 = vadd.f32 %v10562_v45, %v6196_v44  ;;  %v6550_v21 = vadd.f32 %v6549_v51, %v6479_v52  ;;  %v6294_v29 = vadd.f32 %v10562_v45, %v6198_v31  ;;  %v6624_v50 = vld [vmem:[#allocation5 + $0x48] sm:$0xff]  ;;  %v6629_v31 = vld [vmem:[#allocation5 + $0x70] sm:$0xff] }
 0x37c   :  { %v6587_v13 = vadd.f32 %v6586_v27, %v6514_v40  ;;  %v6531_v23 = vmul.f32 %v10603_v6, %v6363_v33  ;;  %v6569_v1 = vadd.f32 %v6568_v7, %v6497_v62  ;;  %v6365_v30 = vmax.f32 %v6293_v54, 0.0  ;;  %v6623_v7 = vld [vmem:[#allocation5 + $0x40] sm:$0xff]  ;;  %v6626_v62 = vld [vmem:[#allocation5 + $0x58] sm:$0xff]  ;;  %v6628_v54 = vld [vmem:[#allocation5 + $0x68] sm:$0xff] }
 0x37d   :  { %v6364_v22 = vmax.f32 %v6292_v58, 0.0  ;;  %v6551_v32 = vadd.f32 %v6550_v21, %v6480_v59  ;;  %v6516_v35 = vmul.f32 %v10800_v2, %v6348_v8  ;;  %v6366_v20 = vmax.f32 %v6294_v29, 0.0  ;;  %v6627_v8 = vld [vmem:[#allocation5 + $0x60] sm:$0xff]  ;;  %v11430_v27 = vld [vmem:[#allocation71_spill] sm:$0xff]  ;;  %v11431_v33 = vld [vmem:[#allocation21_spill] sm:$0xff] }
 0x37e   :  { %v6605_v37 = vadd.f32 %v6604_v41, %v6531_v23  ;;  %v6570_v3 = vadd.f32 %v6569_v1, %v6498_v46  ;;  %v6588_v57 = vadd.f32 %v6587_v13, %v6515_v34  ;;  %v6533_v51 = vmul.f32 %v11414_v5, %v6365_v30  ;;  %v10840_v41 = vld [vmem:[%s10899_s5] sm:$0xff]  ;;  %v6619_v5 = vld [vmem:[#allocation5 + $0x20] sm:$0xff]  ;;  %v6630_v46 = vld [vmem:[#allocation5 + $0x78] sm:$0xff]  ;;  %s7503_s5 = smov [#allocation7]  }
 0x37f   :  { %v6532_v4 = vmul.f32 %v10622_v11, %v6364_v22  ;;  %6552 = vadd.xlane.f32.xlu0 %v6551_v32  ;;  %v6534_v45 = vmul.f32 %v10800_v2, %v6366_v20  ;;  %v7502_v60 = vmov 1966171168   ;;  %v6615_v11 = vld [vmem:[#allocation5] sm:$0xff]  ;;  %v6621_v2 = vld [vmem:[#allocation5 + $0x30] sm:$0xff]  ;;  %v6632_v1 = vld [vmem:[#allocation5 + $0x88] sm:$0xff]  ;;  %s6866_s0 = sshll.u32 %s7503_s5, 4  ;;  %s6867_s0 = int_to_ptr.vmem [resolvable:$true] %s6866_s0 }
 0x380   :  { %6571 = vadd.xlane.f32.xlu1 %v6570_v3  ;;  %v6589_v52 = vadd.f32 %v6588_v57, %v6516_v35  ;;  %v6814_v16 = vunpack.c.l.s4 %v7502_v60  ;;  %v6631_v34 = vld [vmem:[#allocation5 + $0x80] sm:$0xff]  ;;  %v6633_v30 = vld [vmem:[#allocation5 + $0x90] sm:$0xff]  ;;  %v6634_v22 = vld [vmem:[#allocation5 + $0x98] sm:$0xff]  ;;  %s7466_s4 = scalar_lea.vmem %s6867_s0, 128  ;;  %p7471_p11 = scmp.lt.s32.totalorder %s6867_s0, %s6867_s0 }
 0x381   :  { %v6606_v6 = vadd.f32 %v6605_v37, %v6532_v4  ;;  %v6635_v4 = vld [vmem:[#allocation5 + $0xa0] sm:$0xff]  ;;  %v6636_v20 = vld [vmem:[#allocation5 + $0xa8] sm:$0xff]  ;;  %p7467_p10 = scmp.ne.s32.totalorder %s6867_s0, %s7466_s4  ;;  %p7472_p12 = scmp.lt.s32.totalorder %s7466_s4, %s7466_s4 }
 0x382   :  { %v6815_v15 = vunpack.c.0.s8 %v6814_v16 }
 0x383   :  { %6590 = vadd.xlane.f32.xlu0 %v6589_v52  ;;  %v6607_v49 = vadd.f32 %v6606_v6, %v6533_v51  ;;  %v6637_v52 = vld [vmem:[#allocation5 + $0xb0] sm:$0xff]  ;;  %p7473_p13 = por %p7472_p12, %p7471_p11 }
 0x384   :  { %v10859_v12 = vsub.s32 %v6815_v15, %v11431_v33  ;;  %v6640_v15 = vld [vmem:[#allocation5 + $0xc8] sm:$0xff] }
 0x385   :  { %v6608_v17 = vadd.f32 %v6607_v49, %v6534_v45  ;;  %v6638_v49 = vld [vmem:[#allocation5 + $0xb8] sm:$0xff]  ;;  %p7474_p0 = pnand %p7473_p13, %p7467_p10 }
 0x387   :  { %6609 = vadd.xlane.f32.xlu0 %v6608_v17 }
 0x408   :  { %v6553_v39 = vpop.xlane.xlu0 %6552 }
 0x409   :  { %v6611_v14 = vmul.f32 0.00045269352, %v6553_v39  ;;  %v6572_v10 = vpop.xlane.xlu1 %6571 }
 0x40a   :  { %v6612_v28 = vmul.f32 0.00045269352, %v6572_v10 }
 0x40b   :  { %v6647_v58 = vmul.f32 %v6615_v11, %v6611_v14  ;;  %v6648_v21 = vmul.f32 %v6616_v43, %v6611_v14  ;;  %v6649_v13 = vmul.f32 %v6617_v0, %v6611_v14  ;;  %v6650_v23 = vmul.f32 %v6618_v61, %v6611_v14  ;;  %v6639_v43 = vld [vmem:[#allocation5 + $0xc0] sm:$0xff] }
 0x40c   :  { %v6591_v29 = vpop.xlane.xlu0 %6590  ;;  %v6651_v32 = vmul.f32 %v6619_v5, %v6611_v14  ;;  %v6652_v35 = vmul.f32 %v6620_v53, %v6611_v14  ;;  %v6653_v37 = vmul.f32 %v6621_v2, %v6611_v14  ;;  %v6654_v3 = vmul.f32 %v6622_v47, %v6611_v14  ;;  %v6641_v2 = vld [vmem:[#allocation5 + $0xd0] sm:$0xff]  ;;  %v6642_v47 = vld [vmem:[#allocation5 + $0xd8] sm:$0xff]  ;;  %v6643_v14 = vld [vmem:[#allocation5 + $0xe0] sm:$0xff] }
 0x40d   :  { %v6613_v57 = vmul.f32 0.00045269352, %v6591_v29  ;;  %v6655_v51 = vmul.f32 %v6623_v7, %v6612_v28  ;;  %v6656_v6 = vmul.f32 %v6624_v50, %v6612_v28  ;;  %v6657_v45 = vmul.f32 %v6625_v38, %v6612_v28  ;;  %v6644_v29 = vld [vmem:[#allocation5 + $0xe8] sm:$0xff] }
 0x40e   :  { %v6658_v17 = vmul.f32 %v6626_v62, %v6612_v28  ;;  %v6659_v60 = vmul.f32 %v6627_v8, %v6612_v28  ;;  %v6660_v16 = vmul.f32 %v6628_v54, %v6612_v28  ;;  %v6661_v11 = vmul.f32 %v6629_v31, %v6612_v28  ;;  %v6645_v62 = vld [vmem:[#allocation5 + $0xf0] sm:$0xff]  ;;  %v6646_v8 = vld [vmem:[#allocation5 + $0xf8] sm:$0xff] }
 0x40f   :  { %v6662_v0 = vmul.f32 %v6630_v46, %v6612_v28  ;;  %v6663_v61 = vmul.f32 %v6631_v34, %v6613_v57  ;;  %v6664_v5 = vmul.f32 %v6632_v1, %v6613_v57  ;;  %v6665_v39 = vmul.f32 %v6633_v30, %v6613_v57 }
 0x410   :  { %v6610_v53 = vpop.xlane.xlu0 %6609  ;;  %v6666_v10 = vmul.f32 %v6634_v22, %v6613_v57  ;;  %v6667_v33 = vmul.f32 %v6635_v4, %v6613_v57  ;;  %v6668_v7 = vmul.f32 %v6636_v20, %v6613_v57  ;;  %v6669_v50 = vmul.f32 %v6637_v52, %v6613_v57 }
 0x411   :  { %v6614_v38 = vmul.f32 0.00045269352, %v6610_v53  ;;  %v6670_v54 = vmul.f32 %v6638_v49, %v6613_v57  ;;  %v6679_v31 = vadd.f32 %v6655_v51, %v6647_v58  ;;  %v6688_v40 = vadd.f32 %v6656_v6, %v6648_v21 }
 0x412   :  { %v6697_v44 = vadd.f32 %v6657_v45, %v6649_v13  ;;  %v6706_v28 = vadd.f32 %v6658_v17, %v6650_v23  ;;  %v6715_v46 = vadd.f32 %v6659_v60, %v6651_v32  ;;  %v6724_v34 = vadd.f32 %v6660_v16, %v6652_v35 }
 0x413   :  { %v6671_v1 = vmul.f32 %v6639_v43, %v6614_v38  ;;  %v6672_v30 = vmul.f32 %v6640_v15, %v6614_v38  ;;  %v6673_v48 = vmul.f32 %v6641_v2, %v6614_v38  ;;  %v6674_v59 = vmul.f32 %v6642_v47, %v6614_v38 }
 0x414   :  { %v6675_v56 = vmul.f32 %v6643_v14, %v6614_v38  ;;  %v6676_v22 = vmul.f32 %v6644_v29, %v6614_v38  ;;  %v6677_v4 = vmul.f32 %v6645_v62, %v6614_v38  ;;  %v6678_v20 = vmul.f32 %v6646_v8, %v6614_v38 }
 0x415   :  { %v6680_v52 = vadd.f32 %v6679_v31, %v6663_v61  ;;  %v6689_v53 = vadd.f32 %v6688_v40, %v6664_v5  ;;  %v6698_v9 = vadd.f32 %v6697_v44, %v6665_v39  ;;  %v6707_v18 = vadd.f32 %v6706_v28, %v6666_v10 }
 0x416   :  { %v6716_v26 = vadd.f32 %v6715_v46, %v6667_v33  ;;  %v6725_v57 = vadd.f32 %v6724_v34, %v6668_v7  ;;  %v6733_v58 = vadd.f32 %v6661_v11, %v6653_v37  ;;  %v6742_v21 = vadd.f32 %v6662_v0, %v6654_v3 }
 0x417   :  { %v6681_v13 = vadd.f32 %v6680_v52, %v6671_v1  ;;  %v6690_v23 = vadd.f32 %v6689_v53, %v6672_v30  ;;  %v6699_v32 = vadd.f32 %v6698_v9, %v6673_v48  ;;  %v6708_v35 = vadd.f32 %v6707_v18, %v6674_v59 }
 0x418   :  { %v6717_v51 = vadd.f32 %v6716_v26, %v6675_v56  ;;  %v6726_v6 = vadd.f32 %v6725_v57, %v6676_v22  ;;  %v6734_v45 = vadd.f32 %v6733_v58, %v6669_v50  ;;  %v6743_v49 = vadd.f32 %v6742_v21, %v6670_v54 }
 0x419   :  { %v6682_v17 = vrot.slane %v6681_v13, 4  ;;  %v6691_v60 = vrot.slane %v6690_v23, 4  ;;  %v6700_v16 = vrot.slane %v6699_v32, 4  ;;  %v6709_v43 = vrot.slane %v6708_v35, 4 }
 0x41a   :  { %v6718_v15 = vrot.slane %v6717_v51, 4  ;;  %v6727_v40 = vrot.slane %v6726_v6, 4  ;;  %v6735_v44 = vadd.f32 %v6734_v45, %v6677_v4  ;;  %v6744_v61 = vadd.f32 %v6743_v49, %v6678_v20 }
 0x41b   :  { %v6683_v5 = vadd.f32 %v6682_v17, %v6681_v13  ;;  %v6692_v39 = vadd.f32 %v6691_v60, %v6690_v23  ;;  %v6701_v37 = vadd.f32 %v6700_v16, %v6699_v32  ;;  %v6710_v3 = vadd.f32 %v6709_v43, %v6708_v35 }
 0x41c   :  { %v6719_v11 = vadd.f32 %v6718_v15, %v6717_v51  ;;  %v6728_v0 = vadd.f32 %v6727_v40, %v6726_v6  ;;  %v6736_v9 = vrot.slane %v6735_v44, 4  ;;  %v6745_v18 = vrot.slane %v6744_v61, 4 }
 0x41d   :  { %v6684_v26 = vrot.slane %v6683_v5, 2  ;;  %v6693_v56 = vrot.slane %v6692_v39, 2  ;;  %v6702_v59 = vrot.slane %v6701_v37, 2  ;;  %v6711_v48 = vrot.slane %v6710_v3, 2 }
 0x41e   :  { %v6720_v2 = vrot.slane %v6719_v11, 2  ;;  %v6729_v47 = vrot.slane %v6728_v0, 2  ;;  %v6737_v14 = vadd.f32 %v6736_v9, %v6735_v44  ;;  %v6746_v10 = vadd.f32 %v6745_v18, %v6744_v61 }
 0x41f   :  { %v6685_v33 = vadd.f32 %v6684_v26, %v6683_v5  ;;  %v6694_v7 = vadd.f32 %v6693_v56, %v6692_v39  ;;  %v6703_v50 = vadd.f32 %v6702_v59, %v6701_v37  ;;  %v6712_v38 = vadd.f32 %v6711_v48, %v6710_v3 }
 0x420   :  { %v6721_v29 = vadd.f32 %v6720_v2, %v6719_v11  ;;  %v6730_v62 = vadd.f32 %v6729_v47, %v6728_v0  ;;  %v6738_v8 = vrot.slane %v6737_v14, 2  ;;  %v6747_v54 = vrot.slane %v6746_v10, 2 }
 0x421   :  { %v6686_v31 = vrot.slane %v6685_v33, 1  ;;  %v6695_v28 = vrot.slane %v6694_v7, 1  ;;  %v6704_v46 = vrot.slane %v6703_v50, 1  ;;  %v6713_v34 = vrot.slane %v6712_v38, 1 }
 0x422   :  { %v6722_v1 = vrot.slane %v6721_v29, 1  ;;  %v6731_v30 = vrot.slane %v6730_v62, 1  ;;  %v6739_v22 = vadd.f32 %v6738_v8, %v6737_v14  ;;  %v6748_v4 = vadd.f32 %v6747_v54, %v6746_v10 }
 0x423   :  { %v6687_v20 = vadd.f32 %v6686_v31, %v6685_v33  ;;  %v6696_v52 = vadd.f32 %v6695_v28, %v6694_v7  ;;  %v6705_v53 = vadd.f32 %v6704_v46, %v6703_v50  ;;  %v6714_v57 = vadd.f32 %v6713_v34, %v6712_v38 }
 0x424   :  { %v6723_v58 = vadd.f32 %v6722_v1, %v6721_v29  ;;  %v6732_v21 = vadd.f32 %v6731_v30, %v6730_v62  ;;  %v6740_v13 = vrot.slane %v6739_v22, 1  ;;  %v6749_v23 = vrot.slane %v6748_v4, 1 }
 0x425   :  { %v11432_v32 = vrot.slane %v10840_v41, %v11424_v55  ;;  %v11433_v51 = vrot.slane %v10840_v41, %v11413_v24  ;;  %v11434_v45 = vrot.slane %v10840_v41, %v11425_v19  ;;  %v11435_v17 = vrot.slane %v10840_v41, %v11426_v36 }
 0x426   :  { %v6741_v16 = vadd.f32 %v6740_v13, %v6739_v22  ;;  %v6750_v43 = vadd.f32 %v6749_v23, %v6748_v4  ;;  %v11436_v15 = vrot.slane %v10840_v41, %v11427_v63  ;;  %v11437_v55 = vrot.slane %v10840_v41, %v11428_v25 }
 0x427   :  { %v6793_v35 = vadd.f32 %v11432_v32, %v6687_v20  ;;  %v6794_v6 = vadd.f32 %v11433_v51, %v6696_v52  ;;  %v6795_v49 = vadd.f32 %v11434_v45, %v6705_v53  ;;  %v6796_v60 = vadd.f32 %v11435_v17, %v6714_v57 }
 0x428   :  { %v6797_v40 = vadd.f32 %v11436_v15, %v6723_v58  ;;  %v6798_v44 = vadd.f32 %v11437_v55, %v6732_v21  ;;  %v11438_v19 = vrot.slane %v10840_v41, %v11429_v42  ;;  %v11439_v36 = vrot.slane %v10840_v41, %v11430_v27 }
 0x429   :  { %v6809_v24 = vcombine.low %v6793_v35, %v6794_v6  ;;  %v6810_v61 = vcombine.low %v6795_v49, %v6796_v60 }
 0x42a   :  { %v6799_v5 = vadd.f32 %v11438_v19, %v6741_v16  ;;  %v6800_v39 = vadd.f32 %v11439_v36, %v6750_v43  ;;  %v6811_v37 = vcombine.low %v6797_v40, %v6798_v44 }
 0x42b   :  { %v6819_v3 = vrot.slane %v6809_v24, %v10859_v12  ;;  %v6826_v63 = vrot.slane %v6810_v61, %v10859_v12 }
 0x42c   :  { %v6812_v11 = vcombine.low %v6799_v5, %v6800_v39  ;;  %v6833_v0 = vrot.slane %v6811_v37, %v10859_v12 }
 0x42d   :  { %v6841_v25 = vcombine.low %v6819_v3, %v6826_v63 }
 0x42e   :  { %v6840_v9 = vrot.slane %v6812_v11, %v10859_v12 }
 0x42f   :  { %v6849_v26 = vrot.slane %v6841_v25, %v10859_v12 }
 0x430   :  { %v6842_v18 = vcombine.low %v6833_v0, %v6840_v9 }
 0x432   :  { %v6856_v42 = vrot.slane %v6842_v18, %v10859_v12 }
 0x434   :  { %v6857_v41 = vcombine.low %v6849_v26, %v6856_v42 }
 0x436   :  { %6859 = vst [vmem:[#allocation7] sm:$0xff] %v6857_v41 }
 0x437   :  { %7477 = shalt.err (!%p7474_p0)
}
 0x438   :  { %6869 = dma.vmem_to_hbm [thread:$0]  %s6867_s0, 128, %s10900_s6, [#allocation4]  }
 0x439   :  { %7490 = dma.done.wait [#allocation4], 128  }
 0x43a   :  { %7491 = vsyncadd [#allocation4], 4294967168 }
 0x43b   :  { %6873 = vsyncpa [#allocation3], 1 }
 0x43c   :  { %6874 = vsyncpa [#allocation6], 1 }
 0x43d   :  { %6875 = vsyncpa [#allocation4], 1 }

</bundles_post_ra>
